<compile_context>
chip_gen: v7x
topology: tpu7x:2x2x1
jax: 0.10.0
libtpu: 0.0.40
codegen_flags: <defaults>
</compile_context>

<pallas_src>
import functools

import jax
import jax.numpy as jnp
import numpy as np
from jax.experimental import pallas as pl
from jax.experimental.pallas import tpu as pltpu


def _round_up(x, m):
    return (x + m - 1) // m * m


# ----------------------------- Pallas kernel -----------------------------

def _e_makeup_kernel(a1_ref, w1_ref, b1_ref, s2_ref, w2_ref, b2_ref,
                     s3_ref, w3_ref, b3_ref, o_ref, *, eps, slope):
    """Whole E_makeup forward for ONE sample, fully resident in VMEM."""

    def inorm_lrelu(y, b):
        # bias + InstanceNorm2d (biased var, no affine) + LeakyReLU, fused.
        y = y + b
        mean = jnp.mean(y, axis=0, keepdims=True)
        yc = y - mean
        var = jnp.mean(yc * yc, axis=0, keepdims=True)
        yn = yc * jax.lax.rsqrt(var + eps)
        return jnp.where(yn >= 0, yn, slope * yn)

    # ---- layer 1: 7x7 s1 conv as a single full-K matmul (K folded).
    y1 = jnp.dot(a1_ref[0], w1_ref[...], preferred_element_type=jnp.float32)
    h1 = inorm_lrelu(y1, b1_ref[...]).astype(jnp.bfloat16)        # (M1, C1)

    # ---- layers 2/3: 3x3 s2 convs as 9-tap sums of matmuls.
    # For each tap t, rows are gathered with a constant 0/1 selection matrix
    # (exact in bf16; also realizes the zero padding), then hit the per-tap
    # weight slice.  Everything stays in VMEM / vregs.
    def tap_conv(h, s_ref, w_ref):
        taps, m_out, _ = s_ref.shape
        c_out = w_ref.shape[2]
        y = jnp.zeros((m_out, c_out), jnp.float32)
        for t in range(taps):                        # unrolled at trace time
            g = jnp.dot(s_ref[t], h, preferred_element_type=jnp.float32)
            y = y + jnp.dot(g.astype(jnp.bfloat16), w_ref[t],
                            preferred_element_type=jnp.float32)
        return y

    h2 = inorm_lrelu(tap_conv(h1, s2_ref, w2_ref),
                     b2_ref[...]).astype(jnp.bfloat16)            # (M2, C2)
    h3 = inorm_lrelu(tap_conv(h2, s3_ref, w3_ref), b3_ref[...])   # (M3, C3)
    o_ref[0] = h3.astype(o_ref.dtype)


# ----------------------------- wrapper helpers -----------------------------

def _im2col_nhwc(x, ksize, stride, pad):
    # x: (N, H, W, C) -> (N, OH*OW, ksize*ksize*C), K order [(i,j), c].
    N, H, W, C = x.shape
    OH = (H + 2 * pad - ksize) // stride + 1
    OW = (W + 2 * pad - ksize) // stride + 1
    xp = jnp.pad(x, ((0, 0), (pad, pad), (pad, pad), (0, 0)))
    cols = []
    for i in range(ksize):
        for j in range(ksize):
            cols.append(
                xp[:, i:i + stride * OH:stride, j:j + stride * OW:stride, :])
    cols = jnp.concatenate(cols, axis=-1)
    return cols.reshape(N, OH * OW, ksize * ksize * C), OH, OW


def _selection_matrices(h_in, w_in, ksize, stride, pad):
    """Per-tap 0/1 row-selection matrices implementing im2col for one tap."""
    h_out = (h_in + 2 * pad - ksize) // stride + 1
    w_out = (w_in + 2 * pad - ksize) // stride + 1
    s = np.zeros((ksize * ksize, h_out * w_out, h_in * w_in), np.float32)
    for di in range(ksize):
        for dj in range(ksize):
            t = di * ksize + dj
            for oy in range(h_out):
                iy = oy * stride - pad + di
                if iy < 0 or iy >= h_in:
                    continue
                for ox in range(w_out):
                    ix = ox * stride - pad + dj
                    if 0 <= ix < w_in:
                        s[t, oy * w_out + ox, iy * w_in + ix] = 1.0
    return s, h_out, w_out


def _tap_weights(w_oihw):
    """(Cout, Cin, KH, KW) -> (KH*KW, Cin, Cout), tap order t = di*KW + dj."""
    kh, kw = w_oihw.shape[2], w_oihw.shape[3]
    return jnp.stack([jnp.transpose(w_oihw[:, :, di, dj], (1, 0))
                      for di in range(kh) for dj in range(kw)], axis=0)


# ----------------------------- forward -----------------------------

def e_makeup_forward(params, x_nchw, *, eps=1e-5, slope=0.2):
    N, Cin, H, W = x_nchw.shape
    C1 = params["w1"].shape[0]
    C2 = params["w2"].shape[0]
    C3 = params["w3"].shape[0]

    # Layer-1 im2col, wrapper side (tiny at 16x16). NCHW -> NHWC once.
    x = jnp.transpose(x_nchw, (0, 2, 3, 1))
    a1, H1, W1 = _im2col_nhwc(x, ksize=7, stride=1, pad=3)
    M1 = H1 * W1
    K1 = 7 * 7 * Cin
    K1p = _round_up(K1, 128)                  # lane-align; zero pad is exact
    if K1p != K1:
        a1 = jnp.pad(a1, ((0, 0), (0, 0), (0, K1p - K1)))
    a1 = a1.astype(jnp.bfloat16)

    w1m = jnp.transpose(params["w1"], (2, 3, 1, 0)).reshape(K1, C1)
    if K1p != K1:
        w1m = jnp.pad(w1m, ((0, K1p - K1), (0, 0)))
    w1m = w1m.astype(jnp.bfloat16)

    # Constant selection matrices for the two stride-2 3x3 layers.
    s2_np, H2, W2 = _selection_matrices(H1, W1, 3, 2, 1)
    s3_np, H3, W3 = _selection_matrices(H2, W2, 3, 2, 1)
    M2, M3 = H2 * W2, H3 * W3
    s2 = jnp.asarray(s2_np, jnp.bfloat16)     # 0/1 -> exact in bf16
    s3 = jnp.asarray(s3_np, jnp.bfloat16)
    w2t = _tap_weights(params["w2"]).astype(jnp.bfloat16)   # (9, C1, C2)
    w3t = _tap_weights(params["w3"]).astype(jnp.bfloat16)   # (9, C2, C3)

    b1m = params["b1"].reshape(1, C1).astype(jnp.float32)
    b2m = params["b2"].reshape(1, C2).astype(jnp.float32)
    b3m = params["b3"].reshape(1, C3).astype(jnp.float32)

    # Everything fits easily; keep the VMEM request modest (<=48 MiB, v7x-safe).
    est = (2 * M1 * K1p + K1p * C1 + 9 * M2 * M1 + 9 * C1 * C2
           + 9 * M3 * M2 + 9 * C2 * C3) * 2 + (C1 + C2 + C3) * 4 \
          + 2 * M3 * C3 * 4
    vmem_bytes = int(min(max(2 * est, 16 << 20), 48 << 20))

    out = pl.pallas_call(
        functools.partial(_e_makeup_kernel, eps=eps, slope=slope),
        out_shape=jax.ShapeDtypeStruct((N, M3, C3), jnp.float32),
        grid_spec=pltpu.PrefetchScalarGridSpec(
            num_scalar_prefetch=0,
            grid=(N,),                                           # one step / sample
            in_specs=[
                pl.BlockSpec((1, M1, K1p), lambda n: (n, 0, 0)),  # per-sample im2col
                pl.BlockSpec((K1p, C1), lambda n: (0, 0)),        # resident weights
                pl.BlockSpec((1, C1), lambda n: (0, 0)),
                pl.BlockSpec((9, M2, M1), lambda n: (0, 0, 0)),   # resident S2
                pl.BlockSpec((9, C1, C2), lambda n: (0, 0, 0)),
                pl.BlockSpec((1, C2), lambda n: (0, 0)),
                pl.BlockSpec((9, M3, M2), lambda n: (0, 0, 0)),   # resident S3
                pl.BlockSpec((9, C2, C3), lambda n: (0, 0, 0)),
                pl.BlockSpec((1, C3), lambda n: (0, 0)),
            ],
            out_specs=pl.BlockSpec((1, M3, C3), lambda n: (n, 0, 0)),
        ),
        compiler_params=pltpu.CompilerParams(
            dimension_semantics=("parallel",),     # batch sharded across TCs
            vmem_limit_bytes=vmem_bytes,
        ),
    )(a1, w1m, b1m, s2, w2t, b2m, s3, w3t, b3m)

    out = out.reshape(N, H3, W3, C3)
    return jnp.transpose(out, (0, 3, 1, 2))        # back to NCHW


# ----------------------------- pure-JAX reference -----------------------------

def _ref_forward(params, x):
    def block(x, w, b, stride, pad, slope=0.2, eps=1e-5):
        y = jax.lax.conv_general_dilated(
            x, w, window_strides=(stride, stride),
            padding=((pad, pad), (pad, pad)),
            dimension_numbers=("NCHW", "OIHW", "NCHW"),
            precision=jax.lax.Precision.HIGHEST)
        y = y + b[None, :, None, None]
        mean = jnp.mean(y, axis=(2, 3), keepdims=True)
        var = jnp.mean((y - mean) ** 2, axis=(2, 3), keepdims=True)
        y = (y - mean) * jax.lax.rsqrt(var + eps)
        return jnp.where(y >= 0, y, slope * y)

    y = block(x, params["w1"], params["b1"], 1, 3)
    y = block(y, params["w2"], params["b2"], 2, 1)
    y = block(y, params["w3"], params["b3"], 2, 1)
    return y


# ----------------------------- Main -----------------------------

if __name__ == "__main__":
    key = jax.random.PRNGKey(0)
    keys = jax.random.split(key, 8)

    N, input_dim, H, W = 2, 4, 16, 16
    ngf = 64

    x = jax.random.normal(keys[0], (N, input_dim, H, W), jnp.float32)
    params = {
        "w1": 0.05 * jax.random.normal(keys[1], (ngf, input_dim, 7, 7), jnp.float32),
        "b1": 0.05 * jax.random.normal(keys[2], (ngf,), jnp.float32),
        "w2": 0.05 * jax.random.normal(keys[3], (ngf * 2, ngf, 3, 3), jnp.float32),
        "b2": 0.05 * jax.random.normal(keys[4], (ngf * 2,), jnp.float32),
        "w3": 0.05 * jax.random.normal(keys[5], (ngf * 4, ngf * 2, 3, 3), jnp.float32),
        "b3": 0.05 * jax.random.normal(keys[6], (ngf * 4,), jnp.float32),
    }

    out = jax.jit(e_makeup_forward)(params, x)
    out = jax.block_until_ready(out)
    assert out.shape == (N, ngf * 4, H // 4, W // 4), out.shape

    ref = _ref_forward(params, x)
    max_err = float(jnp.max(jnp.abs(out - ref)))
    # bf16 MXU inputs with f32 accumulation; outputs are unit-scale after
    # InstanceNorm, so 1e-1 absolute comfortably separates "correct" from bugs.
    assert max_err < 1e-1, f"numerics mismatch vs reference: {max_err}"

    print("KERNEL_OK")
</pallas_src>

<mosaic_0001>
module attributes {stable_mosaic.version = 11 : i64} {
  func.func @_e_makeup_kernel(%arg0: i32, %arg1: memref<1x256x256xbf16, #tpu.memory_space<vmem>>, %arg2: memref<256x64xbf16, #tpu.memory_space<vmem>>, %arg3: memref<1x64xf32, #tpu.memory_space<vmem>>, %arg4: memref<9x64x256xbf16, #tpu.memory_space<vmem>>, %arg5: memref<9x64x128xbf16, #tpu.memory_space<vmem>>, %arg6: memref<1x128xf32, #tpu.memory_space<vmem>>, %arg7: memref<9x16x64xbf16, #tpu.memory_space<vmem>>, %arg8: memref<9x128x256xbf16, #tpu.memory_space<vmem>>, %arg9: memref<1x256xf32, #tpu.memory_space<vmem>>, %arg10: memref<1x16x256xf32, #tpu.memory_space<vmem>>) attributes {dimension_semantics = [#tpu.dimension_semantics<parallel>], iteration_bounds = array<i64: 2>, scalar_prefetch = 0 : i64, scratch_operands = 0 : i64, tpu.core_type = #tpu.core_type<tc>, window_params = [{transform_indices = @transform_0, window_bounds = array<i64: 1, 256, 256>}, {pipeline_mode = #tpu.pipeline_mode<synchronous>, transform_indices = @transform_1, window_bounds = array<i64: 256, 64>}, {pipeline_mode = #tpu.pipeline_mode<synchronous>, transform_indices = @transform_2, window_bounds = array<i64: 1, 64>}, {pipeline_mode = #tpu.pipeline_mode<synchronous>, transform_indices = @transform_3, window_bounds = array<i64: 9, 64, 256>}, {pipeline_mode = #tpu.pipeline_mode<synchronous>, transform_indices = @transform_4, window_bounds = array<i64: 9, 64, 128>}, {pipeline_mode = #tpu.pipeline_mode<synchronous>, transform_indices = @transform_5, window_bounds = array<i64: 1, 128>}, {pipeline_mode = #tpu.pipeline_mode<synchronous>, transform_indices = @transform_6, window_bounds = array<i64: 9, 16, 64>}, {pipeline_mode = #tpu.pipeline_mode<synchronous>, transform_indices = @transform_7, window_bounds = array<i64: 9, 128, 256>}, {pipeline_mode = #tpu.pipeline_mode<synchronous>, transform_indices = @transform_8, window_bounds = array<i64: 1, 256>}, {transform_indices = @transform_9, window_bounds = array<i64: 1, 16, 256>}]} {
    %c0 = arith.constant 0 : index
    %c0_0 = arith.constant 0 : index
    %c0_1 = arith.constant 0 : index
    %0 = vector.load %arg1[%c0, %c0_0, %c0_1] : memref<1x256x256xbf16, #tpu.memory_space<vmem>>, vector<1x256x256xbf16>
    %1 = vector.shape_cast %0 : vector<1x256x256xbf16> to vector<256x256xbf16>
    %c0_2 = arith.constant 0 : index
    %c0_3 = arith.constant 0 : index
    %2 = vector.load %arg2[%c0_2, %c0_3] : memref<256x64xbf16, #tpu.memory_space<vmem>>, vector<256x64xbf16>
    %cst = arith.constant dense<0.000000e+00> : vector<256x64xf32>
    %3 = tpu.matmul %1, %2, %cst {dimension_numbers = #tpu.dot_dimension_numbers<[1], [0], [0], [1], [0, 0, 1, 1], [], []>} : vector<256x256xbf16>, vector<256x64xbf16>, vector<256x64xf32> -> vector<256x64xf32>
    %c0_4 = arith.constant 0 : index
    %c0_5 = arith.constant 0 : index
    %4 = vector.load %arg3[%c0_4, %c0_5] : memref<1x64xf32, #tpu.memory_space<vmem>>, vector<1x64xf32>
    %5 = vector.broadcast %4 : vector<1x64xf32> to vector<256x64xf32>
    %6 = arith.addf %3, %5 : vector<256x64xf32>
    %cst_6 = arith.constant dense<0.000000e+00> : vector<64xf32>
    %7 = vector.multi_reduction <add>, %6, %cst_6 [0] : vector<256x64xf32> to vector<64xf32>
    %8 = vector.shape_cast %7 : vector<64xf32> to vector<1x64xf32>
    %cst_7 = arith.constant 2.560000e+02 : f32
    %9 = vector.broadcast %cst_7 : f32 to vector<1x64xf32>
    %10 = arith.divf %8, %9 : vector<1x64xf32>
    %11 = vector.broadcast %10 : vector<1x64xf32> to vector<256x64xf32>
    %12 = arith.subf %6, %11 : vector<256x64xf32>
    %13 = arith.mulf %12, %12 : vector<256x64xf32>
    %cst_8 = arith.constant dense<0.000000e+00> : vector<64xf32>
    %14 = vector.multi_reduction <add>, %13, %cst_8 [0] : vector<256x64xf32> to vector<64xf32>
    %15 = vector.shape_cast %14 : vector<64xf32> to vector<1x64xf32>
    %cst_9 = arith.constant 2.560000e+02 : f32
    %16 = vector.broadcast %cst_9 : f32 to vector<1x64xf32>
    %17 = arith.divf %15, %16 : vector<1x64xf32>
    %cst_10 = arith.constant 9.99999974E-6 : f32
    %18 = vector.broadcast %cst_10 : f32 to vector<1x64xf32>
    %19 = arith.addf %17, %18 : vector<1x64xf32>
    %20 = math.rsqrt %19 : vector<1x64xf32>
    %21 = vector.broadcast %20 : vector<1x64xf32> to vector<256x64xf32>
    %22 = arith.mulf %12, %21 : vector<256x64xf32>
    %cst_11 = arith.constant 0.000000e+00 : f32
    %23 = vector.broadcast %cst_11 : f32 to vector<256x64xf32>
    %24 = arith.cmpf oge, %22, %23 : vector<256x64xf32>
    %cst_12 = arith.constant 2.000000e-01 : f32
    %25 = vector.broadcast %cst_12 : f32 to vector<256x64xf32>
    %26 = arith.mulf %25, %22 : vector<256x64xf32>
    %27 = arith.select %24, %22, %26 : vector<256x64xi1>, vector<256x64xf32>
    %28 = arith.truncf %27 : vector<256x64xf32> to vector<256x64xbf16>
    %cst_13 = arith.constant 0.000000e+00 : f32
    %29 = vector.broadcast %cst_13 : f32 to vector<64x128xf32>
    %c0_14 = arith.constant 0 : index
    %c0_15 = arith.constant 0 : index
    %c0_16 = arith.constant 0 : index
    %30 = vector.load %arg4[%c0_14, %c0_15, %c0_16] : memref<9x64x256xbf16, #tpu.memory_space<vmem>>, vector<1x64x256xbf16>
    %31 = vector.shape_cast %30 : vector<1x64x256xbf16> to vector<64x256xbf16>
    %cst_17 = arith.constant dense<0.000000e+00> : vector<64x64xf32>
    %32 = tpu.matmul %31, %28, %cst_17 {dimension_numbers = #tpu.dot_dimension_numbers<[1], [0], [0], [1], [0, 0, 1, 1], [], []>} : vector<64x256xbf16>, vector<256x64xbf16>, vector<64x64xf32> -> vector<64x64xf32>
    %33 = arith.truncf %32 : vector<64x64xf32> to vector<64x64xbf16>
    %c0_18 = arith.constant 0 : index
    %c0_19 = arith.constant 0 : index
    %c0_20 = arith.constant 0 : index
    %34 = vector.load %arg5[%c0_18, %c0_19, %c0_20] : memref<9x64x128xbf16, #tpu.memory_space<vmem>>, vector<1x64x128xbf16>
    %35 = vector.shape_cast %34 : vector<1x64x128xbf16> to vector<64x128xbf16>
    %cst_21 = arith.constant dense<0.000000e+00> : vector<64x128xf32>
    %36 = tpu.matmul %33, %35, %cst_21 {dimension_numbers = #tpu.dot_dimension_numbers<[1], [0], [0], [1], [0, 0, 1, 1], [], []>} : vector<64x64xbf16>, vector<64x128xbf16>, vector<64x128xf32> -> vector<64x128xf32>
    %37 = arith.addf %29, %36 : vector<64x128xf32>
    %c1 = arith.constant 1 : index
    %c0_22 = arith.constant 0 : index
    %c0_23 = arith.constant 0 : index
    %38 = vector.load %arg4[%c1, %c0_22, %c0_23] : memref<9x64x256xbf16, #tpu.memory_space<vmem>>, vector<1x64x256xbf16>
    %39 = vector.shape_cast %38 : vector<1x64x256xbf16> to vector<64x256xbf16>
    %cst_24 = arith.constant dense<0.000000e+00> : vector<64x64xf32>
    %40 = tpu.matmul %39, %28, %cst_24 {dimension_numbers = #tpu.dot_dimension_numbers<[1], [0], [0], [1], [0, 0, 1, 1], [], []>} : vector<64x256xbf16>, vector<256x64xbf16>, vector<64x64xf32> -> vector<64x64xf32>
    %41 = arith.truncf %40 : vector<64x64xf32> to vector<64x64xbf16>
    %c1_25 = arith.constant 1 : index
    %c0_26 = arith.constant 0 : index
    %c0_27 = arith.constant 0 : index
    %42 = vector.load %arg5[%c1_25, %c0_26, %c0_27] : memref<9x64x128xbf16, #tpu.memory_space<vmem>>, vector<1x64x128xbf16>
    %43 = vector.shape_cast %42 : vector<1x64x128xbf16> to vector<64x128xbf16>
    %cst_28 = arith.constant dense<0.000000e+00> : vector<64x128xf32>
    %44 = tpu.matmul %41, %43, %cst_28 {dimension_numbers = #tpu.dot_dimension_numbers<[1], [0], [0], [1], [0, 0, 1, 1], [], []>} : vector<64x64xbf16>, vector<64x128xbf16>, vector<64x128xf32> -> vector<64x128xf32>
    %45 = arith.addf %37, %44 : vector<64x128xf32>
    %c2 = arith.constant 2 : index
    %c0_29 = arith.constant 0 : index
    %c0_30 = arith.constant 0 : index
    %46 = vector.load %arg4[%c2, %c0_29, %c0_30] : memref<9x64x256xbf16, #tpu.memory_space<vmem>>, vector<1x64x256xbf16>
    %47 = vector.shape_cast %46 : vector<1x64x256xbf16> to vector<64x256xbf16>
    %cst_31 = arith.constant dense<0.000000e+00> : vector<64x64xf32>
    %48 = tpu.matmul %47, %28, %cst_31 {dimension_numbers = #tpu.dot_dimension_numbers<[1], [0], [0], [1], [0, 0, 1, 1], [], []>} : vector<64x256xbf16>, vector<256x64xbf16>, vector<64x64xf32> -> vector<64x64xf32>
    %49 = arith.truncf %48 : vector<64x64xf32> to vector<64x64xbf16>
    %c2_32 = arith.constant 2 : index
    %c0_33 = arith.constant 0 : index
    %c0_34 = arith.constant 0 : index
    %50 = vector.load %arg5[%c2_32, %c0_33, %c0_34] : memref<9x64x128xbf16, #tpu.memory_space<vmem>>, vector<1x64x128xbf16>
    %51 = vector.shape_cast %50 : vector<1x64x128xbf16> to vector<64x128xbf16>
    %cst_35 = arith.constant dense<0.000000e+00> : vector<64x128xf32>
    %52 = tpu.matmul %49, %51, %cst_35 {dimension_numbers = #tpu.dot_dimension_numbers<[1], [0], [0], [1], [0, 0, 1, 1], [], []>} : vector<64x64xbf16>, vector<64x128xbf16>, vector<64x128xf32> -> vector<64x128xf32>
    %53 = arith.addf %45, %52 : vector<64x128xf32>
    %c3 = arith.constant 3 : index
    %c0_36 = arith.constant 0 : index
    %c0_37 = arith.constant 0 : index
    %54 = vector.load %arg4[%c3, %c0_36, %c0_37] : memref<9x64x256xbf16, #tpu.memory_space<vmem>>, vector<1x64x256xbf16>
    %55 = vector.shape_cast %54 : vector<1x64x256xbf16> to vector<64x256xbf16>
    %cst_38 = arith.constant dense<0.000000e+00> : vector<64x64xf32>
    %56 = tpu.matmul %55, %28, %cst_38 {dimension_numbers = #tpu.dot_dimension_numbers<[1], [0], [0], [1], [0, 0, 1, 1], [], []>} : vector<64x256xbf16>, vector<256x64xbf16>, vector<64x64xf32> -> vector<64x64xf32>
    %57 = arith.truncf %56 : vector<64x64xf32> to vector<64x64xbf16>
    %c3_39 = arith.constant 3 : index
    %c0_40 = arith.constant 0 : index
    %c0_41 = arith.constant 0 : index
    %58 = vector.load %arg5[%c3_39, %c0_40, %c0_41] : memref<9x64x128xbf16, #tpu.memory_space<vmem>>, vector<1x64x128xbf16>
    %59 = vector.shape_cast %58 : vector<1x64x128xbf16> to vector<64x128xbf16>
    %cst_42 = arith.constant dense<0.000000e+00> : vector<64x128xf32>
    %60 = tpu.matmul %57, %59, %cst_42 {dimension_numbers = #tpu.dot_dimension_numbers<[1], [0], [0], [1], [0, 0, 1, 1], [], []>} : vector<64x64xbf16>, vector<64x128xbf16>, vector<64x128xf32> -> vector<64x128xf32>
    %61 = arith.addf %53, %60 : vector<64x128xf32>
    %c4 = arith.constant 4 : index
    %c0_43 = arith.constant 0 : index
    %c0_44 = arith.constant 0 : index
    %62 = vector.load %arg4[%c4, %c0_43, %c0_44] : memref<9x64x256xbf16, #tpu.memory_space<vmem>>, vector<1x64x256xbf16>
    %63 = vector.shape_cast %62 : vector<1x64x256xbf16> to vector<64x256xbf16>
    %cst_45 = arith.constant dense<0.000000e+00> : vector<64x64xf32>
    %64 = tpu.matmul %63, %28, %cst_45 {dimension_numbers = #tpu.dot_dimension_numbers<[1], [0], [0], [1], [0, 0, 1, 1], [], []>} : vector<64x256xbf16>, vector<256x64xbf16>, vector<64x64xf32> -> vector<64x64xf32>
    %65 = arith.truncf %64 : vector<64x64xf32> to vector<64x64xbf16>
    %c4_46 = arith.constant 4 : index
    %c0_47 = arith.constant 0 : index
    %c0_48 = arith.constant 0 : index
    %66 = vector.load %arg5[%c4_46, %c0_47, %c0_48] : memref<9x64x128xbf16, #tpu.memory_space<vmem>>, vector<1x64x128xbf16>
    %67 = vector.shape_cast %66 : vector<1x64x128xbf16> to vector<64x128xbf16>
    %cst_49 = arith.constant dense<0.000000e+00> : vector<64x128xf32>
    %68 = tpu.matmul %65, %67, %cst_49 {dimension_numbers = #tpu.dot_dimension_numbers<[1], [0], [0], [1], [0, 0, 1, 1], [], []>} : vector<64x64xbf16>, vector<64x128xbf16>, vector<64x128xf32> -> vector<64x128xf32>
    %69 = arith.addf %61, %68 : vector<64x128xf32>
    %c5 = arith.constant 5 : index
    %c0_50 = arith.constant 0 : index
    %c0_51 = arith.constant 0 : index
    %70 = vector.load %arg4[%c5, %c0_50, %c0_51] : memref<9x64x256xbf16, #tpu.memory_space<vmem>>, vector<1x64x256xbf16>
    %71 = vector.shape_cast %70 : vector<1x64x256xbf16> to vector<64x256xbf16>
    %cst_52 = arith.constant dense<0.000000e+00> : vector<64x64xf32>
    %72 = tpu.matmul %71, %28, %cst_52 {dimension_numbers = #tpu.dot_dimension_numbers<[1], [0], [0], [1], [0, 0, 1, 1], [], []>} : vector<64x256xbf16>, vector<256x64xbf16>, vector<64x64xf32> -> vector<64x64xf32>
    %73 = arith.truncf %72 : vector<64x64xf32> to vector<64x64xbf16>
    %c5_53 = arith.constant 5 : index
    %c0_54 = arith.constant 0 : index
    %c0_55 = arith.constant 0 : index
    %74 = vector.load %arg5[%c5_53, %c0_54, %c0_55] : memref<9x64x128xbf16, #tpu.memory_space<vmem>>, vector<1x64x128xbf16>
    %75 = vector.shape_cast %74 : vector<1x64x128xbf16> to vector<64x128xbf16>
    %cst_56 = arith.constant dense<0.000000e+00> : vector<64x128xf32>
    %76 = tpu.matmul %73, %75, %cst_56 {dimension_numbers = #tpu.dot_dimension_numbers<[1], [0], [0], [1], [0, 0, 1, 1], [], []>} : vector<64x64xbf16>, vector<64x128xbf16>, vector<64x128xf32> -> vector<64x128xf32>
    %77 = arith.addf %69, %76 : vector<64x128xf32>
    %c6 = arith.constant 6 : index
    %c0_57 = arith.constant 0 : index
    %c0_58 = arith.constant 0 : index
    %78 = vector.load %arg4[%c6, %c0_57, %c0_58] : memref<9x64x256xbf16, #tpu.memory_space<vmem>>, vector<1x64x256xbf16>
    %79 = vector.shape_cast %78 : vector<1x64x256xbf16> to vector<64x256xbf16>
    %cst_59 = arith.constant dense<0.000000e+00> : vector<64x64xf32>
    %80 = tpu.matmul %79, %28, %cst_59 {dimension_numbers = #tpu.dot_dimension_numbers<[1], [0], [0], [1], [0, 0, 1, 1], [], []>} : vector<64x256xbf16>, vector<256x64xbf16>, vector<64x64xf32> -> vector<64x64xf32>
    %81 = arith.truncf %80 : vector<64x64xf32> to vector<64x64xbf16>
    %c6_60 = arith.constant 6 : index
    %c0_61 = arith.constant 0 : index
    %c0_62 = arith.constant 0 : index
    %82 = vector.load %arg5[%c6_60, %c0_61, %c0_62] : memref<9x64x128xbf16, #tpu.memory_space<vmem>>, vector<1x64x128xbf16>
    %83 = vector.shape_cast %82 : vector<1x64x128xbf16> to vector<64x128xbf16>
    %cst_63 = arith.constant dense<0.000000e+00> : vector<64x128xf32>
    %84 = tpu.matmul %81, %83, %cst_63 {dimension_numbers = #tpu.dot_dimension_numbers<[1], [0], [0], [1], [0, 0, 1, 1], [], []>} : vector<64x64xbf16>, vector<64x128xbf16>, vector<64x128xf32> -> vector<64x128xf32>
    %85 = arith.addf %77, %84 : vector<64x128xf32>
    %c7 = arith.constant 7 : index
    %c0_64 = arith.constant 0 : index
    %c0_65 = arith.constant 0 : index
    %86 = vector.load %arg4[%c7, %c0_64, %c0_65] : memref<9x64x256xbf16, #tpu.memory_space<vmem>>, vector<1x64x256xbf16>
    %87 = vector.shape_cast %86 : vector<1x64x256xbf16> to vector<64x256xbf16>
    %cst_66 = arith.constant dense<0.000000e+00> : vector<64x64xf32>
    %88 = tpu.matmul %87, %28, %cst_66 {dimension_numbers = #tpu.dot_dimension_numbers<[1], [0], [0], [1], [0, 0, 1, 1], [], []>} : vector<64x256xbf16>, vector<256x64xbf16>, vector<64x64xf32> -> vector<64x64xf32>
    %89 = arith.truncf %88 : vector<64x64xf32> to vector<64x64xbf16>
    %c7_67 = arith.constant 7 : index
    %c0_68 = arith.constant 0 : index
    %c0_69 = arith.constant 0 : index
    %90 = vector.load %arg5[%c7_67, %c0_68, %c0_69] : memref<9x64x128xbf16, #tpu.memory_space<vmem>>, vector<1x64x128xbf16>
    %91 = vector.shape_cast %90 : vector<1x64x128xbf16> to vector<64x128xbf16>
    %cst_70 = arith.constant dense<0.000000e+00> : vector<64x128xf32>
    %92 = tpu.matmul %89, %91, %cst_70 {dimension_numbers = #tpu.dot_dimension_numbers<[1], [0], [0], [1], [0, 0, 1, 1], [], []>} : vector<64x64xbf16>, vector<64x128xbf16>, vector<64x128xf32> -> vector<64x128xf32>
    %93 = arith.addf %85, %92 : vector<64x128xf32>
    %c8 = arith.constant 8 : index
    %c0_71 = arith.constant 0 : index
    %c0_72 = arith.constant 0 : index
    %94 = vector.load %arg4[%c8, %c0_71, %c0_72] : memref<9x64x256xbf16, #tpu.memory_space<vmem>>, vector<1x64x256xbf16>
    %95 = vector.shape_cast %94 : vector<1x64x256xbf16> to vector<64x256xbf16>
    %cst_73 = arith.constant dense<0.000000e+00> : vector<64x64xf32>
    %96 = tpu.matmul %95, %28, %cst_73 {dimension_numbers = #tpu.dot_dimension_numbers<[1], [0], [0], [1], [0, 0, 1, 1], [], []>} : vector<64x256xbf16>, vector<256x64xbf16>, vector<64x64xf32> -> vector<64x64xf32>
    %97 = arith.truncf %96 : vector<64x64xf32> to vector<64x64xbf16>
    %c8_74 = arith.constant 8 : index
    %c0_75 = arith.constant 0 : index
    %c0_76 = arith.constant 0 : index
    %98 = vector.load %arg5[%c8_74, %c0_75, %c0_76] : memref<9x64x128xbf16, #tpu.memory_space<vmem>>, vector<1x64x128xbf16>
    %99 = vector.shape_cast %98 : vector<1x64x128xbf16> to vector<64x128xbf16>
    %cst_77 = arith.constant dense<0.000000e+00> : vector<64x128xf32>
    %100 = tpu.matmul %97, %99, %cst_77 {dimension_numbers = #tpu.dot_dimension_numbers<[1], [0], [0], [1], [0, 0, 1, 1], [], []>} : vector<64x64xbf16>, vector<64x128xbf16>, vector<64x128xf32> -> vector<64x128xf32>
    %101 = arith.addf %93, %100 : vector<64x128xf32>
    %c0_78 = arith.constant 0 : index
    %c0_79 = arith.constant 0 : index
    %102 = vector.load %arg6[%c0_78, %c0_79] : memref<1x128xf32, #tpu.memory_space<vmem>>, vector<1x128xf32>
    %103 = vector.broadcast %102 : vector<1x128xf32> to vector<64x128xf32>
    %104 = arith.addf %101, %103 : vector<64x128xf32>
    %cst_80 = arith.constant dense<0.000000e+00> : vector<128xf32>
    %105 = vector.multi_reduction <add>, %104, %cst_80 [0] : vector<64x128xf32> to vector<128xf32>
    %106 = vector.shape_cast %105 : vector<128xf32> to vector<1x128xf32>
    %cst_81 = arith.constant 6.400000e+01 : f32
    %107 = vector.broadcast %cst_81 : f32 to vector<1x128xf32>
    %108 = arith.divf %106, %107 : vector<1x128xf32>
    %109 = vector.broadcast %108 : vector<1x128xf32> to vector<64x128xf32>
    %110 = arith.subf %104, %109 : vector<64x128xf32>
    %111 = arith.mulf %110, %110 : vector<64x128xf32>
    %cst_82 = arith.constant dense<0.000000e+00> : vector<128xf32>
    %112 = vector.multi_reduction <add>, %111, %cst_82 [0] : vector<64x128xf32> to vector<128xf32>
    %113 = vector.shape_cast %112 : vector<128xf32> to vector<1x128xf32>
    %cst_83 = arith.constant 6.400000e+01 : f32
    %114 = vector.broadcast %cst_83 : f32 to vector<1x128xf32>
    %115 = arith.divf %113, %114 : vector<1x128xf32>
    %cst_84 = arith.constant 9.99999974E-6 : f32
    %116 = vector.broadcast %cst_84 : f32 to vector<1x128xf32>
    %117 = arith.addf %115, %116 : vector<1x128xf32>
    %118 = math.rsqrt %117 : vector<1x128xf32>
    %119 = vector.broadcast %118 : vector<1x128xf32> to vector<64x128xf32>
    %120 = arith.mulf %110, %119 : vector<64x128xf32>
    %cst_85 = arith.constant 0.000000e+00 : f32
    %121 = vector.broadcast %cst_85 : f32 to vector<64x128xf32>
    %122 = arith.cmpf oge, %120, %121 : vector<64x128xf32>
    %cst_86 = arith.constant 2.000000e-01 : f32
    %123 = vector.broadcast %cst_86 : f32 to vector<64x128xf32>
    %124 = arith.mulf %123, %120 : vector<64x128xf32>
    %125 = arith.select %122, %120, %124 : vector<64x128xi1>, vector<64x128xf32>
    %126 = arith.truncf %125 : vector<64x128xf32> to vector<64x128xbf16>
    %cst_87 = arith.constant 0.000000e+00 : f32
    %127 = vector.broadcast %cst_87 : f32 to vector<16x256xf32>
    %c0_88 = arith.constant 0 : index
    %c0_89 = arith.constant 0 : index
    %c0_90 = arith.constant 0 : index
    %128 = vector.load %arg7[%c0_88, %c0_89, %c0_90] : memref<9x16x64xbf16, #tpu.memory_space<vmem>>, vector<1x16x64xbf16>
    %129 = vector.shape_cast %128 : vector<1x16x64xbf16> to vector<16x64xbf16>
    %cst_91 = arith.constant dense<0.000000e+00> : vector<16x128xf32>
    %130 = tpu.matmul %129, %126, %cst_91 {dimension_numbers = #tpu.dot_dimension_numbers<[1], [0], [0], [1], [0, 0, 1, 1], [], []>} : vector<16x64xbf16>, vector<64x128xbf16>, vector<16x128xf32> -> vector<16x128xf32>
    %131 = arith.truncf %130 : vector<16x128xf32> to vector<16x128xbf16>
    %c0_92 = arith.constant 0 : index
    %c0_93 = arith.constant 0 : index
    %c0_94 = arith.constant 0 : index
    %132 = vector.load %arg8[%c0_92, %c0_93, %c0_94] : memref<9x128x256xbf16, #tpu.memory_space<vmem>>, vector<1x128x256xbf16>
    %133 = vector.shape_cast %132 : vector<1x128x256xbf16> to vector<128x256xbf16>
    %cst_95 = arith.constant dense<0.000000e+00> : vector<16x256xf32>
    %134 = tpu.matmul %131, %133, %cst_95 {dimension_numbers = #tpu.dot_dimension_numbers<[1], [0], [0], [1], [0, 0, 1, 1], [], []>} : vector<16x128xbf16>, vector<128x256xbf16>, vector<16x256xf32> -> vector<16x256xf32>
    %135 = arith.addf %127, %134 : vector<16x256xf32>
    %c1_96 = arith.constant 1 : index
    %c0_97 = arith.constant 0 : index
    %c0_98 = arith.constant 0 : index
    %136 = vector.load %arg7[%c1_96, %c0_97, %c0_98] : memref<9x16x64xbf16, #tpu.memory_space<vmem>>, vector<1x16x64xbf16>
    %137 = vector.shape_cast %136 : vector<1x16x64xbf16> to vector<16x64xbf16>
    %cst_99 = arith.constant dense<0.000000e+00> : vector<16x128xf32>
    %138 = tpu.matmul %137, %126, %cst_99 {dimension_numbers = #tpu.dot_dimension_numbers<[1], [0], [0], [1], [0, 0, 1, 1], [], []>} : vector<16x64xbf16>, vector<64x128xbf16>, vector<16x128xf32> -> vector<16x128xf32>
    %139 = arith.truncf %138 : vector<16x128xf32> to vector<16x128xbf16>
    %c1_100 = arith.constant 1 : index
    %c0_101 = arith.constant 0 : index
    %c0_102 = arith.constant 0 : index
    %140 = vector.load %arg8[%c1_100, %c0_101, %c0_102] : memref<9x128x256xbf16, #tpu.memory_space<vmem>>, vector<1x128x256xbf16>
    %141 = vector.shape_cast %140 : vector<1x128x256xbf16> to vector<128x256xbf16>
    %cst_103 = arith.constant dense<0.000000e+00> : vector<16x256xf32>
    %142 = tpu.matmul %139, %141, %cst_103 {dimension_numbers = #tpu.dot_dimension_numbers<[1], [0], [0], [1], [0, 0, 1, 1], [], []>} : vector<16x128xbf16>, vector<128x256xbf16>, vector<16x256xf32> -> vector<16x256xf32>
    %143 = arith.addf %135, %142 : vector<16x256xf32>
    %c2_104 = arith.constant 2 : index
    %c0_105 = arith.constant 0 : index
    %c0_106 = arith.constant 0 : index
    %144 = vector.load %arg7[%c2_104, %c0_105, %c0_106] : memref<9x16x64xbf16, #tpu.memory_space<vmem>>, vector<1x16x64xbf16>
    %145 = vector.shape_cast %144 : vector<1x16x64xbf16> to vector<16x64xbf16>
    %cst_107 = arith.constant dense<0.000000e+00> : vector<16x128xf32>
    %146 = tpu.matmul %145, %126, %cst_107 {dimension_numbers = #tpu.dot_dimension_numbers<[1], [0], [0], [1], [0, 0, 1, 1], [], []>} : vector<16x64xbf16>, vector<64x128xbf16>, vector<16x128xf32> -> vector<16x128xf32>
    %147 = arith.truncf %146 : vector<16x128xf32> to vector<16x128xbf16>
    %c2_108 = arith.constant 2 : index
    %c0_109 = arith.constant 0 : index
    %c0_110 = arith.constant 0 : index
    %148 = vector.load %arg8[%c2_108, %c0_109, %c0_110] : memref<9x128x256xbf16, #tpu.memory_space<vmem>>, vector<1x128x256xbf16>
    %149 = vector.shape_cast %148 : vector<1x128x256xbf16> to vector<128x256xbf16>
    %cst_111 = arith.constant dense<0.000000e+00> : vector<16x256xf32>
    %150 = tpu.matmul %147, %149, %cst_111 {dimension_numbers = #tpu.dot_dimension_numbers<[1], [0], [0], [1], [0, 0, 1, 1], [], []>} : vector<16x128xbf16>, vector<128x256xbf16>, vector<16x256xf32> -> vector<16x256xf32>
    %151 = arith.addf %143, %150 : vector<16x256xf32>
    %c3_112 = arith.constant 3 : index
    %c0_113 = arith.constant 0 : index
    %c0_114 = arith.constant 0 : index
    %152 = vector.load %arg7[%c3_112, %c0_113, %c0_114] : memref<9x16x64xbf16, #tpu.memory_space<vmem>>, vector<1x16x64xbf16>
    %153 = vector.shape_cast %152 : vector<1x16x64xbf16> to vector<16x64xbf16>
    %cst_115 = arith.constant dense<0.000000e+00> : vector<16x128xf32>
    %154 = tpu.matmul %153, %126, %cst_115 {dimension_numbers = #tpu.dot_dimension_numbers<[1], [0], [0], [1], [0, 0, 1, 1], [], []>} : vector<16x64xbf16>, vector<64x128xbf16>, vector<16x128xf32> -> vector<16x128xf32>
    %155 = arith.truncf %154 : vector<16x128xf32> to vector<16x128xbf16>
    %c3_116 = arith.constant 3 : index
    %c0_117 = arith.constant 0 : index
    %c0_118 = arith.constant 0 : index
    %156 = vector.load %arg8[%c3_116, %c0_117, %c0_118] : memref<9x128x256xbf16, #tpu.memory_space<vmem>>, vector<1x128x256xbf16>
    %157 = vector.shape_cast %156 : vector<1x128x256xbf16> to vector<128x256xbf16>
    %cst_119 = arith.constant dense<0.000000e+00> : vector<16x256xf32>
    %158 = tpu.matmul %155, %157, %cst_119 {dimension_numbers = #tpu.dot_dimension_numbers<[1], [0], [0], [1], [0, 0, 1, 1], [], []>} : vector<16x128xbf16>, vector<128x256xbf16>, vector<16x256xf32> -> vector<16x256xf32>
    %159 = arith.addf %151, %158 : vector<16x256xf32>
    %c4_120 = arith.constant 4 : index
    %c0_121 = arith.constant 0 : index
    %c0_122 = arith.constant 0 : index
    %160 = vector.load %arg7[%c4_120, %c0_121, %c0_122] : memref<9x16x64xbf16, #tpu.memory_space<vmem>>, vector<1x16x64xbf16>
    %161 = vector.shape_cast %160 : vector<1x16x64xbf16> to vector<16x64xbf16>
    %cst_123 = arith.constant dense<0.000000e+00> : vector<16x128xf32>
    %162 = tpu.matmul %161, %126, %cst_123 {dimension_numbers = #tpu.dot_dimension_numbers<[1], [0], [0], [1], [0, 0, 1, 1], [], []>} : vector<16x64xbf16>, vector<64x128xbf16>, vector<16x128xf32> -> vector<16x128xf32>
    %163 = arith.truncf %162 : vector<16x128xf32> to vector<16x128xbf16>
    %c4_124 = arith.constant 4 : index
    %c0_125 = arith.constant 0 : index
    %c0_126 = arith.constant 0 : index
    %164 = vector.load %arg8[%c4_124, %c0_125, %c0_126] : memref<9x128x256xbf16, #tpu.memory_space<vmem>>, vector<1x128x256xbf16>
    %165 = vector.shape_cast %164 : vector<1x128x256xbf16> to vector<128x256xbf16>
    %cst_127 = arith.constant dense<0.000000e+00> : vector<16x256xf32>
    %166 = tpu.matmul %163, %165, %cst_127 {dimension_numbers = #tpu.dot_dimension_numbers<[1], [0], [0], [1], [0, 0, 1, 1], [], []>} : vector<16x128xbf16>, vector<128x256xbf16>, vector<16x256xf32> -> vector<16x256xf32>
    %167 = arith.addf %159, %166 : vector<16x256xf32>
    %c5_128 = arith.constant 5 : index
    %c0_129 = arith.constant 0 : index
    %c0_130 = arith.constant 0 : index
    %168 = vector.load %arg7[%c5_128, %c0_129, %c0_130] : memref<9x16x64xbf16, #tpu.memory_space<vmem>>, vector<1x16x64xbf16>
    %169 = vector.shape_cast %168 : vector<1x16x64xbf16> to vector<16x64xbf16>
    %cst_131 = arith.constant dense<0.000000e+00> : vector<16x128xf32>
    %170 = tpu.matmul %169, %126, %cst_131 {dimension_numbers = #tpu.dot_dimension_numbers<[1], [0], [0], [1], [0, 0, 1, 1], [], []>} : vector<16x64xbf16>, vector<64x128xbf16>, vector<16x128xf32> -> vector<16x128xf32>
    %171 = arith.truncf %170 : vector<16x128xf32> to vector<16x128xbf16>
    %c5_132 = arith.constant 5 : index
    %c0_133 = arith.constant 0 : index
    %c0_134 = arith.constant 0 : index
    %172 = vector.load %arg8[%c5_132, %c0_133, %c0_134] : memref<9x128x256xbf16, #tpu.memory_space<vmem>>, vector<1x128x256xbf16>
    %173 = vector.shape_cast %172 : vector<1x128x256xbf16> to vector<128x256xbf16>
    %cst_135 = arith.constant dense<0.000000e+00> : vector<16x256xf32>
    %174 = tpu.matmul %171, %173, %cst_135 {dimension_numbers = #tpu.dot_dimension_numbers<[1], [0], [0], [1], [0, 0, 1, 1], [], []>} : vector<16x128xbf16>, vector<128x256xbf16>, vector<16x256xf32> -> vector<16x256xf32>
    %175 = arith.addf %167, %174 : vector<16x256xf32>
    %c6_136 = arith.constant 6 : index
    %c0_137 = arith.constant 0 : index
    %c0_138 = arith.constant 0 : index
    %176 = vector.load %arg7[%c6_136, %c0_137, %c0_138] : memref<9x16x64xbf16, #tpu.memory_space<vmem>>, vector<1x16x64xbf16>
    %177 = vector.shape_cast %176 : vector<1x16x64xbf16> to vector<16x64xbf16>
    %cst_139 = arith.constant dense<0.000000e+00> : vector<16x128xf32>
    %178 = tpu.matmul %177, %126, %cst_139 {dimension_numbers = #tpu.dot_dimension_numbers<[1], [0], [0], [1], [0, 0, 1, 1], [], []>} : vector<16x64xbf16>, vector<64x128xbf16>, vector<16x128xf32> -> vector<16x128xf32>
    %179 = arith.truncf %178 : vector<16x128xf32> to vector<16x128xbf16>
    %c6_140 = arith.constant 6 : index
    %c0_141 = arith.constant 0 : index
    %c0_142 = arith.constant 0 : index
    %180 = vector.load %arg8[%c6_140, %c0_141, %c0_142] : memref<9x128x256xbf16, #tpu.memory_space<vmem>>, vector<1x128x256xbf16>
    %181 = vector.shape_cast %180 : vector<1x128x256xbf16> to vector<128x256xbf16>
    %cst_143 = arith.constant dense<0.000000e+00> : vector<16x256xf32>
    %182 = tpu.matmul %179, %181, %cst_143 {dimension_numbers = #tpu.dot_dimension_numbers<[1], [0], [0], [1], [0, 0, 1, 1], [], []>} : vector<16x128xbf16>, vector<128x256xbf16>, vector<16x256xf32> -> vector<16x256xf32>
    %183 = arith.addf %175, %182 : vector<16x256xf32>
    %c7_144 = arith.constant 7 : index
    %c0_145 = arith.constant 0 : index
    %c0_146 = arith.constant 0 : index
    %184 = vector.load %arg7[%c7_144, %c0_145, %c0_146] : memref<9x16x64xbf16, #tpu.memory_space<vmem>>, vector<1x16x64xbf16>
    %185 = vector.shape_cast %184 : vector<1x16x64xbf16> to vector<16x64xbf16>
    %cst_147 = arith.constant dense<0.000000e+00> : vector<16x128xf32>
    %186 = tpu.matmul %185, %126, %cst_147 {dimension_numbers = #tpu.dot_dimension_numbers<[1], [0], [0], [1], [0, 0, 1, 1], [], []>} : vector<16x64xbf16>, vector<64x128xbf16>, vector<16x128xf32> -> vector<16x128xf32>
    %187 = arith.truncf %186 : vector<16x128xf32> to vector<16x128xbf16>
    %c7_148 = arith.constant 7 : index
    %c0_149 = arith.constant 0 : index
    %c0_150 = arith.constant 0 : index
    %188 = vector.load %arg8[%c7_148, %c0_149, %c0_150] : memref<9x128x256xbf16, #tpu.memory_space<vmem>>, vector<1x128x256xbf16>
    %189 = vector.shape_cast %188 : vector<1x128x256xbf16> to vector<128x256xbf16>
    %cst_151 = arith.constant dense<0.000000e+00> : vector<16x256xf32>
    %190 = tpu.matmul %187, %189, %cst_151 {dimension_numbers = #tpu.dot_dimension_numbers<[1], [0], [0], [1], [0, 0, 1, 1], [], []>} : vector<16x128xbf16>, vector<128x256xbf16>, vector<16x256xf32> -> vector<16x256xf32>
    %191 = arith.addf %183, %190 : vector<16x256xf32>
    %c8_152 = arith.constant 8 : index
    %c0_153 = arith.constant 0 : index
    %c0_154 = arith.constant 0 : index
    %192 = vector.load %arg7[%c8_152, %c0_153, %c0_154] : memref<9x16x64xbf16, #tpu.memory_space<vmem>>, vector<1x16x64xbf16>
    %193 = vector.shape_cast %192 : vector<1x16x64xbf16> to vector<16x64xbf16>
    %cst_155 = arith.constant dense<0.000000e+00> : vector<16x128xf32>
    %194 = tpu.matmul %193, %126, %cst_155 {dimension_numbers = #tpu.dot_dimension_numbers<[1], [0], [0], [1], [0, 0, 1, 1], [], []>} : vector<16x64xbf16>, vector<64x128xbf16>, vector<16x128xf32> -> vector<16x128xf32>
    %195 = arith.truncf %194 : vector<16x128xf32> to vector<16x128xbf16>
    %c8_156 = arith.constant 8 : index
    %c0_157 = arith.constant 0 : index
    %c0_158 = arith.constant 0 : index
    %196 = vector.load %arg8[%c8_156, %c0_157, %c0_158] : memref<9x128x256xbf16, #tpu.memory_space<vmem>>, vector<1x128x256xbf16>
    %197 = vector.shape_cast %196 : vector<1x128x256xbf16> to vector<128x256xbf16>
    %cst_159 = arith.constant dense<0.000000e+00> : vector<16x256xf32>
    %198 = tpu.matmul %195, %197, %cst_159 {dimension_numbers = #tpu.dot_dimension_numbers<[1], [0], [0], [1], [0, 0, 1, 1], [], []>} : vector<16x128xbf16>, vector<128x256xbf16>, vector<16x256xf32> -> vector<16x256xf32>
    %199 = arith.addf %191, %198 : vector<16x256xf32>
    %c0_160 = arith.constant 0 : index
    %c0_161 = arith.constant 0 : index
    %200 = vector.load %arg9[%c0_160, %c0_161] : memref<1x256xf32, #tpu.memory_space<vmem>>, vector<1x256xf32>
    %201 = vector.broadcast %200 : vector<1x256xf32> to vector<16x256xf32>
    %202 = arith.addf %199, %201 : vector<16x256xf32>
    %cst_162 = arith.constant dense<0.000000e+00> : vector<256xf32>
    %203 = vector.multi_reduction <add>, %202, %cst_162 [0] : vector<16x256xf32> to vector<256xf32>
    %204 = vector.shape_cast %203 : vector<256xf32> to vector<1x256xf32>
    %cst_163 = arith.constant 1.600000e+01 : f32
    %205 = vector.broadcast %cst_163 : f32 to vector<1x256xf32>
    %206 = arith.divf %204, %205 : vector<1x256xf32>
    %207 = vector.broadcast %206 : vector<1x256xf32> to vector<16x256xf32>
    %208 = arith.subf %202, %207 : vector<16x256xf32>
    %209 = arith.mulf %208, %208 : vector<16x256xf32>
    %cst_164 = arith.constant dense<0.000000e+00> : vector<256xf32>
    %210 = vector.multi_reduction <add>, %209, %cst_164 [0] : vector<16x256xf32> to vector<256xf32>
    %211 = vector.shape_cast %210 : vector<256xf32> to vector<1x256xf32>
    %cst_165 = arith.constant 1.600000e+01 : f32
    %212 = vector.broadcast %cst_165 : f32 to vector<1x256xf32>
    %213 = arith.divf %211, %212 : vector<1x256xf32>
    %cst_166 = arith.constant 9.99999974E-6 : f32
    %214 = vector.broadcast %cst_166 : f32 to vector<1x256xf32>
    %215 = arith.addf %213, %214 : vector<1x256xf32>
    %216 = math.rsqrt %215 : vector<1x256xf32>
    %217 = vector.broadcast %216 : vector<1x256xf32> to vector<16x256xf32>
    %218 = arith.mulf %208, %217 : vector<16x256xf32>
    %cst_167 = arith.constant 0.000000e+00 : f32
    %219 = vector.broadcast %cst_167 : f32 to vector<16x256xf32>
    %220 = arith.cmpf oge, %218, %219 : vector<16x256xf32>
    %cst_168 = arith.constant 2.000000e-01 : f32
    %221 = vector.broadcast %cst_168 : f32 to vector<16x256xf32>
    %222 = arith.mulf %221, %218 : vector<16x256xf32>
    %223 = arith.select %220, %218, %222 : vector<16x256xi1>, vector<16x256xf32>
    %c0_169 = arith.constant 0 : index
    %c0_170 = arith.constant 0 : index
    %c0_171 = arith.constant 0 : index
    %224 = vector.load %arg10[%c0_169, %c0_170, %c0_171] : memref<1x16x256xf32, #tpu.memory_space<vmem>>, vector<1x16x256xf32>
    %225 = vector.shape_cast %224 : vector<1x16x256xf32> to vector<16x256xf32>
    %226 = vector.shape_cast %223 : vector<16x256xf32> to vector<1x16x256xf32>
    tpu.vector_store %arg10[%c0_169, %c0_170, %c0_171], %226 {strides = array<i32>} : memref<1x16x256xf32, #tpu.memory_space<vmem>>, vector<1x16x256xf32>,
    return
  }
  func.func @transform_0(%arg0: i32) -> (i32, i32, i32) {
    %c0_i32 = arith.constant 0 : i32
    %c0_i32_0 = arith.constant 0 : i32
    %c0_i32_1 = arith.constant 0 : i32
    return %arg0, %c0_i32, %c0_i32_0 : i32, i32, i32
  }
  func.func @transform_1(%arg0: i32) -> (i32, i32) {
    %c0_i32 = arith.constant 0 : i32
    %c0_i32_0 = arith.constant 0 : i32
    %c0_i32_1 = arith.constant 0 : i32
    return %c0_i32, %c0_i32_0 : i32, i32
  }
  func.func @transform_2(%arg0: i32) -> (i32, i32) {
    %c0_i32 = arith.constant 0 : i32
    %c0_i32_0 = arith.constant 0 : i32
    %c0_i32_1 = arith.constant 0 : i32
    return %c0_i32, %c0_i32_0 : i32, i32
  }
  func.func @transform_3(%arg0: i32) -> (i32, i32, i32) {
    %c0_i32 = arith.constant 0 : i32
    %c0_i32_0 = arith.constant 0 : i32
    %c0_i32_1 = arith.constant 0 : i32
    %c0_i32_2 = arith.constant 0 : i32
    return %c0_i32, %c0_i32_0, %c0_i32_1 : i32, i32, i32
  }
  func.func @transform_4(%arg0: i32) -> (i32, i32, i32) {
    %c0_i32 = arith.constant 0 : i32
    %c0_i32_0 = arith.constant 0 : i32
    %c0_i32_1 = arith.constant 0 : i32
    %c0_i32_2 = arith.constant 0 : i32
    return %c0_i32, %c0_i32_0, %c0_i32_1 : i32, i32, i32
  }
  func.func @transform_5(%arg0: i32) -> (i32, i32) {
    %c0_i32 = arith.constant 0 : i32
    %c0_i32_0 = arith.constant 0 : i32
    %c0_i32_1 = arith.constant 0 : i32
    return %c0_i32, %c0_i32_0 : i32, i32
  }
  func.func @transform_6(%arg0: i32) -> (i32, i32, i32) {
    %c0_i32 = arith.constant 0 : i32
    %c0_i32_0 = arith.constant 0 : i32
    %c0_i32_1 = arith.constant 0 : i32
    %c0_i32_2 = arith.constant 0 : i32
    return %c0_i32, %c0_i32_0, %c0_i32_1 : i32, i32, i32
  }
  func.func @transform_7(%arg0: i32) -> (i32, i32, i32) {
    %c0_i32 = arith.constant 0 : i32
    %c0_i32_0 = arith.constant 0 : i32
    %c0_i32_1 = arith.constant 0 : i32
    %c0_i32_2 = arith.constant 0 : i32
    return %c0_i32, %c0_i32_0, %c0_i32_1 : i32, i32, i32
  }
  func.func @transform_8(%arg0: i32) -> (i32, i32) {
    %c0_i32 = arith.constant 0 : i32
    %c0_i32_0 = arith.constant 0 : i32
    %c0_i32_1 = arith.constant 0 : i32
    return %c0_i32, %c0_i32_0 : i32, i32
  }
  func.func @transform_9(%arg0: i32) -> (i32, i32, i32) {
    %c0_i32 = arith.constant 0 : i32
    %c0_i32_0 = arith.constant 0 : i32
    %c0_i32_1 = arith.constant 0 : i32
    return %arg0, %c0_i32, %c0_i32_0 : i32, i32, i32
  }
}

</mosaic_0001>

<bundles_post_ra>
// kernel: e_makeup_forward.1
= control target key start
LH: loop header
LB: loop body
LE: loop exit
PB: predicated region body
PF: predicated region fallthrough
CT: control target
= control target key end

     0   :  { %s7368_s30 = smov 0   ;;  %s9254_s0 = inlined_call_operand.vmem [shape: bf16[2,256,256], index: 0, kind: input, shape index: {}]   ;;  %s9255_s1 = inlined_call_operand.vmem [shape: bf16[256,64], index: 1, kind: input, shape index: {}]   ;;  %s9256_s2 = inlined_call_operand.vmem [shape: f32[1,64], index: 2, kind: input, shape index: {}]   ;;  %s9257_s3 = inlined_call_operand.vmem [shape: bf16[9,64,256], index: 3, kind: input, shape index: {}]   ;;  %s9258_s4 = inlined_call_operand.vmem [shape: bf16[9,64,128], index: 4, kind: input, shape index: {}]   ;;  %s9259_s5 = inlined_call_operand.vmem [shape: f32[1,128], index: 5, kind: input, shape index: {}]   ;;  %s9260_s6 = inlined_call_operand.vmem [shape: bf16[9,16,64], index: 6, kind: input, shape index: {}]   ;;  %s9261_s7 = inlined_call_operand.vmem [shape: bf16[9,128,256], index: 7, kind: input, shape index: {}]   ;;  %s9262_s8 = inlined_call_operand.vmem [shape: f32[1,256], index: 8, kind: input, shape index: {}]   ;;  %s9263_s9 = inlined_call_operand.vmem [shape: f32[2,16,256], index: 9, kind: output, shape index: {}]  }
   0x1 LB: > { %s5277_s10 = sadd.s32 4294967295, %s7313_s30   ;;  %p5281_p0 = scmp.ge.s32.totalorder %s7313_s30, 1  ;;  %s7313_s30 = sphi %s7368_s30, %s19_s30  }
   0x2   : > { %p287_p1 = scmp.lt.s32.totalorder %s7313_s30, 3 }
   0x4   : > { %p288_p2 = pnand %p5281_p0, %p287_p1 }
   0x5   : > { %v6866_v0 = vld [vmem:[%s9255_s1 + $0x40] sm:$0xff] (!%p288_p2)   ;;  %v6868_v2 = vld [vmem:[%s9255_s1 + $0x48] sm:$0xff] (!%p288_p2)   ;;  %p323_p3 = scmp.lt.s32.totalorder (!%p288_p2), %s5277_s10, 1  ;;  %v6870_v4 = vld [vmem:[%s9255_s1 + $0x50] sm:$0xff] (!%p288_p2)   ;;  %vm9264_vm0 = vcmask (!%p288_p2), 523264  }
   0x6   : > { %291 = sbr.rel (%p288_p2) target bundleno = 2048 (0x800), region = 56  ;;  %v6867_v1 = vld [vmem:[%s9255_s1] sm:$0xff] (!%p288_p2)   ;;  %5918 = vmatprep.subr.bf16.mxu0 (!%p288_p2), %v6866_v0  ;;  %v6869_v3 = vld [vmem:[%s9255_s1 + $0x8] sm:$0xff] (!%p288_p2)   ;;  %v6871_v5 = vld [vmem:[%s9255_s1 + $0x10] sm:$0xff] (!%p288_p2)  }
   0x7   : > { %5919 = vmatpush3.bf16.msra.mxu0 (!%p288_p2), %v6867_v1  ;;  %v6872_v6 = vld [vmem:[%s9255_s1 + $0x58] sm:$0xff] (!%p288_p2)   ;;  %v6874_v8 = vld [vmem:[%s9255_s1 + $0x60] sm:$0xff] (!%p288_p2)   ;;  %v6876_v10 = vld [vmem:[%s9255_s1 + $0x68] sm:$0xff] (!%p288_p2)  }
   0x8   : > { %5920 = vmatprep.subr.bf16.mxu0 (!%p288_p2), %v6868_v2  ;;  %v6873_v7 = vld [vmem:[%s9255_s1 + $0x18] sm:$0xff] (!%p288_p2)   ;;  %v6875_v9 = vld [vmem:[%s9255_s1 + $0x20] sm:$0xff] (!%p288_p2)   ;;  %v6877_v12 = vld [vmem:[%s9255_s1 + $0x28] sm:$0xff] (!%p288_p2)  }
   0x9   : > { %v6878_v13 = vld [vmem:[%s9255_s1 + $0x70] sm:$0xff] (!%p288_p2)   ;;  %v6880_v15 = vld [vmem:[%s9255_s1 + $0x78] sm:$0xff] (!%p288_p2)   ;;  %v7467_v2 = vld [vmem:[%s9256_s2] ss:$0 sm:$0xff] (!%p288_p2) }
   0xa   : > { %v6879_v14 = vld [vmem:[%s9255_s1 + $0x30] sm:$0xff] (!%p288_p2)   ;;  %v6881_v16 = vld [vmem:[%s9255_s1 + $0x38] sm:$0xff] (!%p288_p2)  }
   0xb   : > { %5921 = vmatpush3.bf16.msra.mxu0 (!%p288_p2), %v6869_v3 }
   0xc   : > { %5922 = vmatprep.subr.bf16.mxu0 (!%p288_p2), %v6870_v4 }
   0xd   : > { %s9312_s10 = smov (!%p323_p3, %s5277_s10), 1 }
   0xe   : > { %s5916_s27 = sshll.u32 %s9312_s10, 8  ;;  %s5917_s24 = sshll.u32 %s9312_s10, 5 }
   0xf   : > { %5923 = vmatpush3.bf16.msra.mxu0 %v6871_v5  ;;  %s7409_s13 = scalar_lea.vmem %s9254_s0, %s5916_s27  ;;  %s332_s27 = scalar_lea.vmem %s9263_s9, %s5917_s24 }
  0x10   : > { %5924 = vmatprep.subr.bf16.mxu0 %v6872_v6  ;;  %v6884_v11 = vld [vmem:[%s7409_s13 + $0x4] ss:$8 sps:$4 sm:$0xff]   ;;  %v6882_v17 = vld [vmem:[%s7409_s13] ss:$8 sps:$4 sm:$0xff]   ;;  %v6885_v18 = vld [vmem:[%s7409_s13 + $0x14] ss:$8 sps:$4 sm:$0xff]  }
  0x11   : > { %693 = vmatprep.mubr.bf16.mxu0 %v6884_v11  ;;  %v6887_v19 = vld [vmem:[%s7409_s13 + $0x10] ss:$8 sps:$4 sm:$0xff]   ;;  %v6888_v20 = vld [vmem:[%s7409_s13 + $0x24] ss:$8 sps:$4 sm:$0xff]   ;;  %v6890_v21 = vld [vmem:[%s7409_s13 + $0x20] ss:$8 sps:$4 sm:$0xff]  }
  0x12   : > { %v6891_v22 = vld [vmem:[%s7409_s13 + $0x34] ss:$8 sps:$4 sm:$0xff]   ;;  %v6893_v23 = vld [vmem:[%s7409_s13 + $0x30] ss:$8 sps:$4 sm:$0xff]   ;;  %v6894_v24 = vld [vmem:[%s7409_s13 + $0x44] ss:$8 sps:$4 sm:$0xff]  }
  0x13   : > { %5925 = vmatpush3.bf16.msra.mxu0 %v6873_v7  ;;  %v6896_v25 = vld [vmem:[%s7409_s13 + $0x40] ss:$8 sps:$4 sm:$0xff]   ;;  %v6897_v26 = vld [vmem:[%s7409_s13 + $0x54] ss:$8 sps:$4 sm:$0xff]   ;;  %v6899_v27 = vld [vmem:[%s7409_s13 + $0x50] ss:$8 sps:$4 sm:$0xff]  }
  0x14   : > { %5926 = vmatprep.subr.bf16.mxu0 %v6874_v8  ;;  %v6900_v28 = vld [vmem:[%s7409_s13 + $0x64] ss:$8 sps:$4 sm:$0xff]   ;;  %v6902_v29 = vld [vmem:[%s7409_s13 + $0x60] ss:$8 sps:$4 sm:$0xff]   ;;  %v6903_v30 = vld [vmem:[%s7409_s13 + $0x74] ss:$8 sps:$4 sm:$0xff]  }
  0x15   : > { %v6905_v31 = vld [vmem:[%s7409_s13 + $0x70] ss:$8 sps:$4 sm:$0xff]   ;;  %v6906_v32 = vld [vmem:[%s7409_s13 + $0x84] ss:$8 sps:$4 sm:$0xff]   ;;  %v6908_v33 = vld [vmem:[%s7409_s13 + $0x80] ss:$8 sps:$4 sm:$0xff]  }
  0x16   : > { %v6909_v34 = vld [vmem:[%s7409_s13 + $0x94] ss:$8 sps:$4 sm:$0xff]   ;;  %v6911_v35 = vld [vmem:[%s7409_s13 + $0x90] ss:$8 sps:$4 sm:$0xff]   ;;  %v6912_v36 = vld [vmem:[%s7409_s13 + $0xa4] ss:$8 sps:$4 sm:$0xff]  }
  0x17   : > { %5927 = vmatpush3.bf16.msra.mxu0 %v6875_v9  ;;  %v6914_v37 = vld [vmem:[%s7409_s13 + $0xa0] ss:$8 sps:$4 sm:$0xff]   ;;  %v6915_v38 = vld [vmem:[%s7409_s13 + $0xb4] ss:$8 sps:$4 sm:$0xff]   ;;  %v6917_v39 = vld [vmem:[%s7409_s13 + $0xb0] ss:$8 sps:$4 sm:$0xff]  }
  0x18   : > { %5928 = vmatprep.subr.bf16.mxu0 %v6876_v10  ;;  %v6918_v40 = vld [vmem:[%s7409_s13 + $0xc4] ss:$8 sps:$4 sm:$0xff]   ;;  %v6920_v41 = vld [vmem:[%s7409_s13 + $0xc0] ss:$8 sps:$4 sm:$0xff]   ;;  %v6921_v42 = vld [vmem:[%s7409_s13 + $0xd4] ss:$8 sps:$4 sm:$0xff]  }
  0x19   : > { %v6923_v43 = vld [vmem:[%s7409_s13 + $0xd0] ss:$8 sps:$4 sm:$0xff]   ;;  %v6924_v44 = vld [vmem:[%s7409_s13 + $0xe4] ss:$8 sps:$4 sm:$0xff]   ;;  %v6926_v45 = vld [vmem:[%s7409_s13 + $0xe0] ss:$8 sps:$4 sm:$0xff]  }
  0x1a   : > { %v6927_v46 = vld [vmem:[%s7409_s13 + $0xf4] ss:$8 sps:$4 sm:$0xff]   ;;  %v6929_v47 = vld [vmem:[%s7409_s13 + $0xf0] ss:$8 sps:$4 sm:$0xff]  }
  0x1b   : > { %5929 = vmatpush3.bf16.msra.mxu0 %v6877_v12 }
  0x1c   : > { %5930 = vmatprep.subr.bf16.mxu0 %v6878_v13 }
  0x1f   : > { %5931 = vmatpush3.bf16.msra.mxu0 %v6879_v14 }
  0x20   : > { %5932 = vmatprep.subr.bf16.mxu0 %v6880_v15 }
  0x23   : > { %5933 = vmatpush3.bf16.msra.mxu0 %v6881_v16 }
  0x26   : > { %694 = vmatmul.mubr.bf16.vlgmr.msra.gmra.mrb[0].mxu0 %v6882_v17 }
  0x27   : > { %701 = vmatprep.mubr.bf16.mxu0 %v6885_v18 }
  0x2e   : > { %702 = vmatmul.mubr.bf16.gmra.mrb[4].mxu0 %v6887_v19 }
  0x2f   : > { %709 = vmatprep.mubr.bf16.mxu0 %v6888_v20 }
  0x36   : > { %710 = vmatmul.mubr.bf16.gmra.mrb[8].mxu0 %v6890_v21 }
  0x37   : > { %717 = vmatprep.mubr.bf16.mxu0 %v6891_v22 }
  0x3e   : > { %718 = vmatmul.mubr.bf16.gmra.mrb[12].mxu0 %v6893_v23 }
  0x3f   : > { %725 = vmatprep.mubr.bf16.mxu0 %v6894_v24 }
  0x46   : > { %726 = vmatmul.mubr.bf16.gmra.mrb[16].mxu0 %v6896_v25 }
  0x47   : > { %733 = vmatprep.mubr.bf16.mxu0 %v6897_v26 }
  0x4e   : > { %734 = vmatmul.mubr.bf16.gmra.mrb[20].mxu0 %v6899_v27 }
  0x4f   : > { %741 = vmatprep.mubr.bf16.mxu0 %v6900_v28 }
  0x56   : > { %742 = vmatmul.mubr.bf16.gmra.mrb[24].mxu0 %v6902_v29 }
  0x57   : > { %749 = vmatprep.mubr.bf16.mxu0 %v6903_v30 }
  0x5e   : > { %750 = vmatmul.mubr.bf16.gmra.mrb[28].mxu0 %v6905_v31 }
  0x5f   : > { %757 = vmatprep.mubr.bf16.mxu0 %v6906_v32 }
  0x66   : > { %758 = vmatmul.mubr.bf16.gmra.mrb[32].mxu0 %v6908_v33 }
  0x67   : > { %765 = vmatprep.mubr.bf16.mxu0 %v6909_v34 }
  0x6e   : > { %766 = vmatmul.mubr.bf16.gmra.mrb[36].mxu0 %v6911_v35 }
  0x6f   : > { %773 = vmatprep.mubr.bf16.mxu0 %v6912_v36 }
  0x76   : > { %774 = vmatmul.mubr.bf16.gmra.mrb[40].mxu0 %v6914_v37 }
  0x77   : > { %781 = vmatprep.mubr.bf16.mxu0 %v6915_v38 }
  0x7e   : > { %782 = vmatmul.mubr.bf16.gmra.mrb[44].mxu0 %v6917_v39 }
  0x7f   : > { %789 = vmatprep.mubr.bf16.mxu0 %v6918_v40 }
  0x86   : > { %790 = vmatmul.mubr.bf16.gmra.mrb[48].mxu0 %v6920_v41 }
  0x87   : > { %797 = vmatprep.mubr.bf16.mxu0 %v6921_v42 }
  0x8e   : > { %798 = vmatmul.mubr.bf16.gmra.mrb[52].mxu0 %v6923_v43 }
  0x8f   : > { %805 = vmatprep.mubr.bf16.mxu0 %v6924_v44 }
  0x96   : > { %806 = vmatmul.mubr.bf16.gmra.mrb[56].mxu0 %v6926_v45 }
  0x97   : > { %813 = vmatprep.mubr.bf16.mxu0 %v6927_v46 }
  0x9e   : > { %814 = vmatmul.mubr.bf16.gmra.mrb[60].mxu0 %v6929_v47 }
  0xf9   : > { %v5934_v48 = vpop.f32.mrb[0].mxu0 }
  0xfa   : > { %v5935_v49 = vpop.f32.mrb[1].mxu0 }
  0xfb   : > { %v5936_v50 = vadd.f32 %v5935_v49, %v5934_v48  ;;  %v5937_v51 = vpop.f32.mrb[2].mxu0 }
  0xfc   : > { %v5938_v52 = vpop.f32.mrb[3].mxu0 }
  0xfd   : > { %v5939_v53 = vadd.f32 %v5938_v52, %v5937_v51  ;;  %v7473_v6 = vadd.f32 %v5936_v50, %v7467_v2 }
  0xff   : > { %v7470_v3 = vadd.f32 %v5939_v53, %v7467_v2  ;;  %v823_v13 = vsel %vm9264_vm0, %v7473_v6, 0.0 }
 0x101   : > { %v5940_v54 = vpop.f32.mrb[4].mxu0  ;;  %v824_v11 = vsel %vm9264_vm0, %v7470_v3, 0.0 }
 0x102   : > { %v5941_v55 = vpop.f32.mrb[5].mxu0  ;;  %v825_v16 = vadd.f32 %v824_v11, %v823_v13 }
 0x103   : > { %v5942_v56 = vadd.f32 %v5941_v55, %v5940_v54  ;;  %v5943_v57 = vpop.f32.mrb[6].mxu0 }
 0x104   : > { %v5944_v58 = vpop.f32.mrb[7].mxu0 }
 0x105   : > { %v5945_v59 = vadd.f32 %v5944_v58, %v5943_v57  ;;  %v7476_v7 = vadd.f32 %v5942_v56, %v7467_v2 }
 0x107   : > { %v826_v14 = vsel %vm9264_vm0, %v7476_v7, 0.0  ;;  %v7485_v15 = vadd.f32 %v5945_v59, %v7467_v2 }
 0x108   : > { %v827_v19 = vadd.f32 %v826_v14, %v825_v16 }
 0x109   : > { %v5946_v60 = vpop.f32.mrb[8].mxu0  ;;  %v828_v21 = vsel %vm9264_vm0, %v7485_v15, 0.0 }
 0x10a   : > { %v5947_v61 = vpop.f32.mrb[9].mxu0  ;;  %v829_v28 = vadd.f32 %v828_v21, %v827_v19 }
 0x10b   : > { %v5948_v62 = vadd.f32 %v5947_v61, %v5946_v60  ;;  %v5949_v63 = vpop.f32.mrb[10].mxu0 }
 0x10c   : > { %v5950_v0 = vpop.f32.mrb[11].mxu0 }
 0x10d   : > { %v5951_v1 = vadd.f32 %v5950_v0, %v5949_v63  ;;  %v7488_v17 = vadd.f32 %v5948_v62, %v7467_v2 }
 0x10f   : > { %v830_v25 = vsel %vm9264_vm0, %v7488_v17, 0.0  ;;  %v7495_v26 = vadd.f32 %v5951_v1, %v7467_v2 }
 0x110   : > { %v831_v30 = vadd.f32 %v830_v25, %v829_v28 }
 0x111   : > { %v5952_v4 = vpop.f32.mrb[12].mxu0  ;;  %v832_v31 = vsel %vm9264_vm0, %v7495_v26, 0.0 }
 0x112   : > { %v5953_v5 = vpop.f32.mrb[13].mxu0  ;;  %v833_v38 = vadd.f32 %v832_v31, %v831_v30 }
 0x113   : > { %v5954_v8 = vadd.f32 %v5953_v5, %v5952_v4  ;;  %v5955_v9 = vpop.f32.mrb[14].mxu0 }
 0x114   : > { %v5956_v10 = vpop.f32.mrb[15].mxu0 }
 0x115   : > { %v5957_v12 = vadd.f32 %v5956_v10, %v5955_v9  ;;  %v7498_v29 = vadd.f32 %v5954_v8, %v7467_v2 }
 0x117   : > { %v834_v34 = vsel %vm9264_vm0, %v7498_v29, 0.0  ;;  %v7505_v35 = vadd.f32 %v5957_v12, %v7467_v2 }
 0x118   : > { %v835_v42 = vadd.f32 %v834_v34, %v833_v38 }
 0x119   : > { %v5958_v18 = vpop.f32.mrb[16].mxu0  ;;  %v836_v43 = vsel %vm9264_vm0, %v7505_v35, 0.0 }
 0x11a   : > { %v5959_v20 = vpop.f32.mrb[17].mxu0  ;;  %v837_v47 = vadd.f32 %v836_v43, %v835_v42 }
 0x11b   : > { %v5960_v22 = vadd.f32 %v5959_v20, %v5958_v18  ;;  %v5961_v23 = vpop.f32.mrb[18].mxu0 }
 0x11c   : > { %v5962_v24 = vpop.f32.mrb[19].mxu0 }
 0x11d   : > { %v5963_v27 = vadd.f32 %v5962_v24, %v5961_v23  ;;  %v7508_v40 = vadd.f32 %v5960_v22, %v7467_v2 }
 0x11f   : > { %v838_v44 = vsel %vm9264_vm0, %v7508_v40, 0.0  ;;  %v7515_v45 = vadd.f32 %v5963_v27, %v7467_v2 }
 0x120   : > { %v839_v52 = vadd.f32 %v838_v44, %v837_v47 }
 0x121   : > { %v5964_v32 = vpop.f32.mrb[20].mxu0  ;;  %v840_v54 = vsel %vm9264_vm0, %v7515_v45, 0.0 }
 0x122   : > { %v5965_v33 = vpop.f32.mrb[21].mxu0  ;;  %v841_v58 = vadd.f32 %v840_v54, %v839_v52 }
 0x123   : > { %v5966_v36 = vadd.f32 %v5965_v33, %v5964_v32  ;;  %v5967_v37 = vpop.f32.mrb[22].mxu0 }
 0x124   : > { %v5968_v39 = vpop.f32.mrb[23].mxu0 }
 0x125   : > { %v5969_v41 = vadd.f32 %v5968_v39, %v5967_v37  ;;  %v7518_v49 = vadd.f32 %v5966_v36, %v7467_v2 }
 0x127   : > { %v842_v56 = vsel %vm9264_vm0, %v7518_v49, 0.0  ;;  %v7525_v57 = vadd.f32 %v5969_v41, %v7467_v2 }
 0x128   : > { %v843_v61 = vadd.f32 %v842_v56, %v841_v58 }
 0x129   : > { %v5970_v46 = vpop.f32.mrb[24].mxu0  ;;  %v844_v63 = vsel %vm9264_vm0, %v7525_v57, 0.0 }
 0x12a   : > { %v5971_v48 = vpop.f32.mrb[25].mxu0  ;;  %v845_v10 = vadd.f32 %v844_v63, %v843_v61 }
 0x12b   : > { %v5972_v50 = vadd.f32 %v5971_v48, %v5970_v46  ;;  %v5973_v51 = vpop.f32.mrb[26].mxu0 }
 0x12c   : > { %v5974_v53 = vpop.f32.mrb[27].mxu0 }
 0x12d   : > { %v5975_v55 = vadd.f32 %v5974_v53, %v5973_v51  ;;  %v7528_v59 = vadd.f32 %v5972_v50, %v7467_v2 }
 0x12f   : > { %v846_v5 = vsel %vm9264_vm0, %v7528_v59, 0.0  ;;  %v7535_v8 = vadd.f32 %v5975_v55, %v7467_v2 }
 0x130   : > { %v847_v12 = vadd.f32 %v846_v5, %v845_v10 }
 0x131   : > { %v5976_v60 = vpop.f32.mrb[28].mxu0  ;;  %v848_v13 = vsel %vm9264_vm0, %v7535_v8, 0.0 }
 0x132   : > { %v5977_v62 = vpop.f32.mrb[29].mxu0  ;;  %v849_v22 = vadd.f32 %v848_v13, %v847_v12 }
 0x133   : > { %v5978_v0 = vadd.f32 %v5977_v62, %v5976_v60  ;;  %v5979_v1 = vpop.f32.mrb[30].mxu0 }
 0x134   : > { %v5980_v4 = vpop.f32.mrb[31].mxu0 }
 0x135   : > { %v5981_v9 = vadd.f32 %v5980_v4, %v5979_v1  ;;  %v7538_v11 = vadd.f32 %v5978_v0, %v7467_v2 }
 0x137   : > { %v850_v18 = vsel %vm9264_vm0, %v7538_v11, 0.0  ;;  %v7545_v19 = vadd.f32 %v5981_v9, %v7467_v2 }
 0x138   : > { %v851_v27 = vadd.f32 %v850_v18, %v849_v22 }
 0x139   : > { %v5982_v14 = vpop.f32.mrb[32].mxu0  ;;  %v852_v28 = vsel %vm9264_vm0, %v7545_v19, 0.0 }
 0x13a   : > { %v5983_v16 = vpop.f32.mrb[33].mxu0  ;;  %v853_v33 = vadd.f32 %v852_v28, %v851_v27 }
 0x13b   : > { %v5984_v20 = vadd.f32 %v5983_v16, %v5982_v14  ;;  %v5985_v21 = vpop.f32.mrb[34].mxu0 }
 0x13c   : > { %v5986_v23 = vpop.f32.mrb[35].mxu0 }
 0x13d   : > { %v7548_v24 = vadd.f32 %v5984_v20, %v7467_v2  ;;  %v5987_v25 = vadd.f32 %v5986_v23, %v5985_v21 }
 0x13f   : > { %v854_v30 = vsel %vm9264_vm0, %v7548_v24, 0.0  ;;  %v7555_v31 = vadd.f32 %v5987_v25, %v7467_v2 }
 0x140   : > { %v855_v38 = vadd.f32 %v854_v30, %v853_v33 }
 0x141   : > { %v5988_v32 = vpop.f32.mrb[36].mxu0  ;;  %v856_v41 = vsel %vm9264_vm0, %v7555_v31, 0.0 }
 0x142   : > { %v5989_v34 = vpop.f32.mrb[37].mxu0  ;;  %v857_v47 = vadd.f32 %v856_v41, %v855_v38 }
 0x143   : > { %v5990_v36 = vadd.f32 %v5989_v34, %v5988_v32  ;;  %v5991_v37 = vpop.f32.mrb[38].mxu0 }
 0x144   : > { %v5992_v39 = vpop.f32.mrb[39].mxu0 }
 0x145   : > { %v7560_v42 = vadd.f32 %v5990_v36, %v7467_v2  ;;  %v5993_v43 = vadd.f32 %v5992_v39, %v5991_v37 }
 0x147   : > { %v858_v44 = vsel %vm9264_vm0, %v7560_v42, 0.0  ;;  %v7565_v46 = vadd.f32 %v5993_v43, %v7467_v2 }
 0x148   : > { %v859_v50 = vadd.f32 %v858_v44, %v857_v47 }
 0x149   : > { %v5994_v48 = vpop.f32.mrb[40].mxu0  ;;  %v860_v52 = vsel %vm9264_vm0, %v7565_v46, 0.0 }
 0x14a   : > { %v5995_v51 = vpop.f32.mrb[41].mxu0  ;;  %v861_v60 = vadd.f32 %v860_v52, %v859_v50 }
 0x14b   : > { %v5996_v53 = vadd.f32 %v5995_v51, %v5994_v48  ;;  %v5997_v54 = vpop.f32.mrb[42].mxu0 }
 0x14c   : > { %v5998_v55 = vpop.f32.mrb[43].mxu0 }
 0x14d   : > { %v7570_v56 = vadd.f32 %v5996_v53, %v7467_v2  ;;  %v5999_v58 = vadd.f32 %v5998_v55, %v5997_v54 }
 0x14f   : > { %v862_v61 = vsel %vm9264_vm0, %v7570_v56, 0.0  ;;  %v7575_v62 = vadd.f32 %v5999_v58, %v7467_v2 }
 0x150   : > { %v863_v63 = vadd.f32 %v862_v61, %v861_v60 }
 0x151   : > { %v864_v0 = vsel %vm9264_vm0, %v7575_v62, 0.0  ;;  %v6000_v1 = vpop.f32.mrb[44].mxu0 }
 0x152   : > { %v865_v4 = vadd.f32 %v864_v0, %v863_v63  ;;  %v6001_v5 = vpop.f32.mrb[45].mxu0 }
 0x153   : > { %v6002_v9 = vadd.f32 %v6001_v5, %v6000_v1  ;;  %v6003_v10 = vpop.f32.mrb[46].mxu0 }
 0x154   : > { %v6004_v12 = vpop.f32.mrb[47].mxu0 }
 0x155   : > { %v7580_v13 = vadd.f32 %v6002_v9, %v7467_v2  ;;  %v6005_v14 = vadd.f32 %v6004_v12, %v6003_v10 }
 0x157   : > { %v866_v16 = vsel %vm9264_vm0, %v7580_v13, 0.0  ;;  %v787_v18 = vadd.f32 %v6005_v14, %v7467_v2 }
 0x158   : > { %v867_v20 = vadd.f32 %v866_v16, %v865_v4 }
 0x159   : > { %v868_v21 = vsel %vm9264_vm0, %v787_v18, 0.0  ;;  %v6006_v22 = vpop.f32.mrb[48].mxu0 }
 0x15a   : > { %v869_v23 = vadd.f32 %v868_v21, %v867_v20  ;;  %v6007_v25 = vpop.f32.mrb[49].mxu0 }
 0x15b   : > { %v6008_v27 = vadd.f32 %v6007_v25, %v6006_v22  ;;  %v6009_v28 = vpop.f32.mrb[50].mxu0 }
 0x15c   : > { %v6010_v30 = vpop.f32.mrb[51].mxu0 }
 0x15d   : > { %v792_v32 = vadd.f32 %v6008_v27, %v7467_v2  ;;  %v6011_v33 = vadd.f32 %v6010_v30, %v6009_v28 }
 0x15f   : > { %v870_v34 = vsel %vm9264_vm0, %v792_v32, 0.0  ;;  %v795_v36 = vadd.f32 %v6011_v33, %v7467_v2 }
 0x160   : > { %v871_v37 = vadd.f32 %v870_v34, %v869_v23 }
 0x161   : > { %v872_v38 = vsel %vm9264_vm0, %v795_v36, 0.0  ;;  %v6012_v39 = vpop.f32.mrb[52].mxu0 }
 0x162   : > { %v873_v41 = vadd.f32 %v872_v38, %v871_v37  ;;  %v6013_v43 = vpop.f32.mrb[53].mxu0 }
 0x163   : > { %v6014_v44 = vadd.f32 %v6013_v43, %v6012_v39  ;;  %v6015_v47 = vpop.f32.mrb[54].mxu0 }
 0x164   : > { %v6016_v48 = vpop.f32.mrb[55].mxu0 }
 0x165   : > { %v800_v50 = vadd.f32 %v6014_v44, %v7467_v2  ;;  %v6017_v51 = vadd.f32 %v6016_v48, %v6015_v47 }
 0x167   : > { %v874_v52 = vsel %vm9264_vm0, %v800_v50, 0.0  ;;  %v803_v53 = vadd.f32 %v6017_v51, %v7467_v2 }
 0x168   : > { %v875_v54 = vadd.f32 %v874_v52, %v873_v41 }
 0x169   : > { %v876_v55 = vsel %vm9264_vm0, %v803_v53, 0.0  ;;  %v6018_v58 = vpop.f32.mrb[56].mxu0 }
 0x16a   : > { %v877_v60 = vadd.f32 %v876_v55, %v875_v54  ;;  %v6019_v61 = vpop.f32.mrb[57].mxu0 }
 0x16b   : > { %v6020_v63 = vadd.f32 %v6019_v61, %v6018_v58  ;;  %v6021_v0 = vpop.f32.mrb[58].mxu0 }
 0x16c   : > { %v6022_v1 = vpop.f32.mrb[59].mxu0 }
 0x16d   : > { %v808_v4 = vadd.f32 %v6020_v63, %v7467_v2  ;;  %v6023_v5 = vadd.f32 %v6022_v1, %v6021_v0 }
 0x16f   : > { %v878_v9 = vsel %vm9264_vm0, %v808_v4, 0.0  ;;  %v811_v10 = vadd.f32 %v6023_v5, %v7467_v2 }
 0x170   : > { %v879_v12 = vadd.f32 %v878_v9, %v877_v60 }
 0x171   : > { %v880_v14 = vsel %vm9264_vm0, %v811_v10, 0.0  ;;  %v6024_v16 = vpop.f32.mrb[60].mxu0 }
 0x172   : > { %v881_v20 = vadd.f32 %v880_v14, %v879_v12  ;;  %v6025_v21 = vpop.f32.mrb[61].mxu0 }
 0x173   : > { %v6026_v22 = vadd.f32 %v6025_v21, %v6024_v16  ;;  %v6027_v23 = vpop.f32.mrb[62].mxu0 }
 0x174   : > { %v6028_v25 = vpop.f32.mrb[63].mxu0 }
 0x175   : > { %v816_v27 = vadd.f32 %v6026_v22, %v7467_v2  ;;  %v6029_v28 = vadd.f32 %v6028_v25, %v6027_v23 }
 0x177   : > { %v882_v30 = vsel %vm9264_vm0, %v816_v27, 0.0  ;;  %v819_v33 = vadd.f32 %v6029_v28, %v7467_v2 }
 0x178   : > { %v883_v34 = vadd.f32 %v882_v30, %v881_v20 }
 0x179   : > { %v884_v37 = vsel %vm9264_vm0, %v819_v33, 0.0 }
 0x17a   : > { %v885_v38 = vadd.f32 %v884_v37, %v883_v34 }
 0x17c   : > { %v886_v39 = vrot.slane %v885_v38, 4 }
 0x17e   : > { %v887_v41 = vadd.f32 %v886_v39, %v885_v38 }
 0x180   : > { %v888_v43 = vrot.slane %v887_v41, 2 }
 0x182   : > { %v889_v44 = vadd.f32 %v888_v43, %v887_v41 }
 0x184   : > { %v890_v47 = vrot.slane %v889_v44, 1 }
 0x186   : > { %v891_v48 = vadd.f32 %v890_v47, %v889_v44 }
 0x188   : > { %v7602_v51 = vmul.f32 0.00390625, %v891_v48 }
 0x18a   : > { %v7606_v52 = vsub.f32 %v7570_v56, %v7602_v51  ;;  %v7610_v54 = vsub.f32 %v7575_v62, %v7602_v51  ;;  %v7614_v2 = vsub.f32 %v7580_v13, %v7602_v51  ;;  %v7617_v55 = vsub.f32 %v787_v18, %v7602_v51 }
 0x18b   : > { %v7620_v58 = vsub.f32 %v792_v32, %v7602_v51  ;;  %v7623_v60 = vsub.f32 %v795_v36, %v7602_v51  ;;  %v7626_v56 = vsub.f32 %v800_v50, %v7602_v51  ;;  %v7629_v61 = vsub.f32 %v803_v53, %v7602_v51 }
 0x18c   : > { %v7632_v62 = vsub.f32 %v808_v4, %v7602_v51  ;;  %v7635_v13 = vsub.f32 %v811_v10, %v7602_v51  ;;  %v7638_v18 = vsub.f32 %v816_v27, %v7602_v51  ;;  %v7641_v32 = vsub.f32 %v819_v33, %v7602_v51 }
 0x18d   : > { %v7645_v36 = vsub.f32 %v7473_v6, %v7602_v51  ;;  %v7649_v50 = vsub.f32 %v7470_v3, %v7602_v51  ;;  %v7653_v53 = vsub.f32 %v7476_v7, %v7602_v51  ;;  %v7657_v63 = vsub.f32 %v7485_v15, %v7602_v51 }
 0x18e   : > { %v7665_v6 = vsub.f32 %v7488_v17, %v7602_v51  ;;  %v7671_v7 = vsub.f32 %v7495_v26, %v7602_v51  ;;  %v7679_v10 = vsub.f32 %v7498_v29, %v7602_v51  ;;  %v7686_v26 = vsub.f32 %v7505_v35, %v7602_v51 }
 0x18f   : > { %v926_v0 = vmul.f32 %v7645_v36, %v7645_v36  ;;  %v927_v1 = vmul.f32 %v7649_v50, %v7649_v50  ;;  %v928_v3 = vmul.f32 %v7653_v53, %v7653_v53  ;;  %v929_v15 = vmul.f32 %v7657_v63, %v7657_v63 }
 0x190   : > { %v930_v17 = vmul.f32 %v7665_v6, %v7665_v6  ;;  %v931_v16 = vmul.f32 %v7671_v7, %v7671_v7  ;;  %v7693_v29 = vsub.f32 %v7508_v40, %v7602_v51  ;;  %v932_v22 = vmul.f32 %v7679_v10, %v7679_v10 }
 0x191   : > { %v958_v4 = vsel %vm9264_vm0, %v926_v0, 0.0  ;;  %v959_v5 = vsel %vm9264_vm0, %v927_v1, 0.0  ;;  %v961_v12 = vsel %vm9264_vm0, %v928_v3, 0.0  ;;  %v963_v20 = vsel %vm9264_vm0, %v929_v15, 0.0 }
 0x192   : > { %v960_v9 = vadd.f32 %v959_v5, %v958_v4  ;;  %v965_v23 = vsel %vm9264_vm0, %v930_v17, 0.0  ;;  %v7700_v35 = vsub.f32 %v7515_v45, %v7602_v51  ;;  %v933_v27 = vmul.f32 %v7686_v26, %v7686_v26 }
 0x193   : > { %v967_v28 = vsel %vm9264_vm0, %v931_v16, 0.0  ;;  %v7707_v40 = vsub.f32 %v7518_v49, %v7602_v51  ;;  %v934_v33 = vmul.f32 %v7693_v29, %v7693_v29  ;;  %v969_v34 = vsel %vm9264_vm0, %v932_v22, 0.0 }
 0x194   : > { %v962_v14 = vadd.f32 %v961_v12, %v960_v9  ;;  %v7714_v45 = vsub.f32 %v7525_v57, %v7602_v51  ;;  %v935_v38 = vmul.f32 %v7700_v35, %v7700_v35  ;;  %v971_v39 = vsel %vm9264_vm0, %v933_v27, 0.0 }
 0x195   : > { %v7721_v49 = vsub.f32 %v7528_v59, %v7602_v51  ;;  %v936_v43 = vmul.f32 %v7707_v40, %v7707_v40  ;;  %v973_v44 = vsel %vm9264_vm0, %v934_v33, 0.0  ;;  %v7728_v57 = vsub.f32 %v7535_v8, %v7602_v51 }
 0x196   : > { %v964_v21 = vadd.f32 %v963_v20, %v962_v14  ;;  %v937_v48 = vmul.f32 %v7714_v45, %v7714_v45  ;;  %v975_v0 = vsel %vm9264_vm0, %v935_v38, 0.0  ;;  %v7735_v59 = vsub.f32 %v7538_v11, %v7602_v51 }
 0x197   : > { %v938_v3 = vmul.f32 %v7721_v49, %v7721_v49  ;;  %v977_v15 = vsel %vm9264_vm0, %v936_v43, 0.0  ;;  %v7742_v8 = vsub.f32 %v7545_v19, %v7602_v51  ;;  %v939_v5 = vmul.f32 %v7728_v57, %v7728_v57 }
 0x198   : > { %v966_v25 = vadd.f32 %v965_v23, %v964_v21  ;;  %v979_v9 = vsel %vm9264_vm0, %v937_v48, 0.0  ;;  %v7749_v11 = vsub.f32 %v7548_v24, %v7602_v51  ;;  %v940_v12 = vmul.f32 %v7735_v59, %v7735_v59 }
 0x199   : > { %v981_v14 = vsel %vm9264_vm0, %v938_v3, 0.0  ;;  %v7756_v19 = vsub.f32 %v7555_v31, %v7602_v51  ;;  %v941_v20 = vmul.f32 %v7742_v8, %v7742_v8  ;;  %v983_v21 = vsel %vm9264_vm0, %v939_v5, 0.0 }
 0x19a   : > { %v968_v30 = vadd.f32 %v967_v28, %v966_v25  ;;  %v7763_v24 = vsub.f32 %v7560_v42, %v7602_v51  ;;  %v942_v23 = vmul.f32 %v7749_v11, %v7749_v11  ;;  %v985_v25 = vsel %vm9264_vm0, %v940_v12, 0.0  ;;  %v6932_v42 = vld [vmem:[%s9257_s3 + $0x84] ss:$8 sps:$4 sm:$0xff]  }
 0x19b   : > { %v7770_v31 = vsub.f32 %v7565_v46, %v7602_v51  ;;  %v943_v28 = vmul.f32 %v7756_v19, %v7756_v19  ;;  %1709 = vmatprep.mubr.bf16.mxu0 %v6932_v42  ;;  %v946_v43 = vmul.f32 %v7606_v52, %v7606_v52  ;;  %v947_v48 = vmul.f32 %v7610_v54, %v7610_v54 }
 0x19c   : > { %v970_v37 = vadd.f32 %v969_v34, %v968_v30  ;;  %v987_v30 = vsel %vm9264_vm0, %v941_v20, 0.0  ;;  %v6935_v34 = vld [vmem:[%s9257_s3 + $0x4] ss:$8 sps:$4 sm:$0xff]   ;;  %v989_v46 = vsel %vm9264_vm0, %v942_v23, 0.0  ;;  %v948_v3 = vmul.f32 %v7614_v2, %v7614_v2 }
 0x19d   : > { %1254 = vmatprep.mubr.bf16.mxu1 %v6935_v34  ;;  %v945_v38 = vmul.f32 %v7770_v31, %v7770_v31  ;;  %v949_v5 = vmul.f32 %v7617_v55, %v7617_v55  ;;  %v950_v12 = vmul.f32 %v7620_v58, %v7620_v58  ;;  %v951_v20 = vmul.f32 %v7623_v60, %v7623_v60 }
 0x19e   : > { %v972_v41 = vadd.f32 %v971_v39, %v970_v37  ;;  %v944_v37 = vmul.f32 %v7763_v24, %v7763_v24  ;;  %v991_v39 = vsel %vm9264_vm0, %v943_v28, 0.0  ;;  %v952_v23 = vmul.f32 %v7626_v56, %v7626_v56 }
 0x19f   : > { %v953_v28 = vmul.f32 %v7629_v61, %v7629_v61 }
 0x1a0   : > { %v974_v47 = vadd.f32 %v973_v44, %v972_v41  ;;  %v993_v44 = vsel %vm9264_vm0, %v944_v37, 0.0  ;;  %v1009_v34 = vsel %vm9264_vm0, %v952_v23, 0.0 }
 0x1a2   : > { %v976_v1 = vadd.f32 %v975_v0, %v974_v47  ;;  %v995_v0 = vsel %vm9264_vm0, %v945_v38, 0.0 }
 0x1a4   : > { %v978_v4 = vadd.f32 %v977_v15, %v976_v1  ;;  %v997_v15 = vsel %vm9264_vm0, %v946_v43, 0.0 }
 0x1a6   : > { %v980_v17 = vadd.f32 %v979_v9, %v978_v4  ;;  %v999_v9 = vsel %vm9264_vm0, %v947_v48, 0.0 }
 0x1a8   : > { %v982_v16 = vadd.f32 %v981_v14, %v980_v17  ;;  %v1001_v14 = vsel %vm9264_vm0, %v948_v3, 0.0 }
 0x1aa   : > { %v984_v22 = vadd.f32 %v983_v21, %v982_v16  ;;  %v1003_v21 = vsel %vm9264_vm0, %v949_v5, 0.0 }
 0x1ac   : > { %v986_v27 = vadd.f32 %v985_v25, %v984_v22  ;;  %v1005_v25 = vsel %vm9264_vm0, %v950_v12, 0.0 }
 0x1ae   : > { %v988_v33 = vadd.f32 %v987_v30, %v986_v27  ;;  %v1007_v30 = vsel %vm9264_vm0, %v951_v20, 0.0 }
 0x1b0   : > { %v990_v51 = vadd.f32 %v989_v46, %v988_v33  ;;  %v954_v33 = vmul.f32 %v7632_v62, %v7632_v62  ;;  %v955_v46 = vmul.f32 %v7635_v13, %v7635_v13 }
 0x1b2   : > { %v992_v41 = vadd.f32 %v991_v39, %v990_v51  ;;  %v1011_v51 = vsel %vm9264_vm0, %v953_v28, 0.0  ;;  %v956_v39 = vmul.f32 %v7638_v18, %v7638_v18 }
 0x1b4   : > { %v994_v47 = vadd.f32 %v993_v44, %v992_v41  ;;  %v1013_v41 = vsel %vm9264_vm0, %v954_v33, 0.0  ;;  %v957_v44 = vmul.f32 %v7641_v32, %v7641_v32 }
 0x1b6   : > { %v996_v1 = vadd.f32 %v995_v0, %v994_v47  ;;  %v1015_v47 = vsel %vm9264_vm0, %v955_v46, 0.0  ;;  %v1017_v0 = vsel %vm9264_vm0, %v956_v39, 0.0  ;;  %v1019_v3 = vsel %vm9264_vm0, %v957_v44, 0.0 }
 0x1b8   : > { %v998_v4 = vadd.f32 %v997_v15, %v996_v1 }
 0x1ba   : > { %v1000_v17 = vadd.f32 %v999_v9, %v998_v4 }
 0x1bc   : > { %v1002_v16 = vadd.f32 %v1001_v14, %v1000_v17 }
 0x1be   : > { %v1004_v22 = vadd.f32 %v1003_v21, %v1002_v16 }
 0x1c0   : > { %v1006_v27 = vadd.f32 %v1005_v25, %v1004_v22 }
 0x1c2   : > { %v1008_v42 = vadd.f32 %v1007_v30, %v1006_v27 }
 0x1c4   : > { %v1010_v37 = vadd.f32 %v1009_v34, %v1008_v42 }
 0x1c6   : > { %v1012_v38 = vadd.f32 %v1011_v51, %v1010_v37 }
 0x1c8   : > { %v1014_v43 = vadd.f32 %v1013_v41, %v1012_v38 }
 0x1ca   : > { %v1016_v48 = vadd.f32 %v1015_v47, %v1014_v43 }
 0x1cc   : > { %v1018_v1 = vadd.f32 %v1017_v0, %v1016_v48 }
 0x1ce   : > { %v1020_v15 = vadd.f32 %v1019_v3, %v1018_v1 }
 0x1d0   : > { %v1021_v4 = vrot.slane %v1020_v15, 4 }
 0x1d2   : > { %v1022_v5 = vadd.f32 %v1021_v4, %v1020_v15 }
 0x1d4   : > { %v1023_v9 = vrot.slane %v1022_v5, 2 }
 0x1d6   : > { %v1024_v17 = vadd.f32 %v1023_v9, %v1022_v5 }
 0x1d8   : > { %v1025_v12 = vrot.slane %v1024_v17, 1 }
 0x1da   : > { %v1026_v14 = vadd.f32 %v1025_v12, %v1024_v17 }
 0x1dc   : > { %v1027_v16 = vmul.f32 0.00390625, %v1026_v14 }
 0x1de   : > { %v1028_v20 = vadd.f32 1e-05, %v1027_v16 }
 0x1e0   : > { %7299 = vrsqrt.f32 %v1028_v20 }
 0x1ea   : > { %v7825_v21 = vpop.eup %7299 }
 0x1eb   : > { %v1060_v22 = vmul.f32 %v7825_v21, %v7638_v18  ;;  %v1061_v23 = vmul.f32 %v7825_v21, %v7641_v32  ;;  %v1046_v33 = vmul.f32 %v7825_v21, %v7749_v11  ;;  %v1047_v34 = vmul.f32 %v7825_v21, %v7756_v19 }
 0x1ec   : > { %v1048_v18 = vmul.f32 %v7825_v21, %v7763_v24  ;;  %v1049_v32 = vmul.f32 %v7825_v21, %v7770_v31  ;;  %v1050_v37 = vmul.f32 %v7825_v21, %v7606_v52  ;;  %v1051_v46 = vmul.f32 %v7825_v21, %v7610_v54 }
 0x1ed   : > { %vm1092_vm1 = vcmp.ge.f32.partialorder %v1060_v22, 0.0  ;;  %vm1093_vm2 = vcmp.ge.f32.partialorder %v1061_v23, 0.0  ;;  %v1124_v25 = vmul.f32 0.2, %v1060_v22  ;;  %v1125_v27 = vmul.f32 0.2, %v1061_v23 }
 0x1ee   : > { %v1052_v51 = vmul.f32 %v7825_v21, %v7614_v2  ;;  %v1053_v11 = vmul.f32 %v7825_v21, %v7617_v55  ;;  %v1054_v19 = vmul.f32 %v7825_v21, %v7620_v58  ;;  %v1055_v24 = vmul.f32 %v7825_v21, %v7623_v60 }
 0x1ef   : > { %v1156_v28 = vsel %vm1092_vm1, %v1060_v22, %v1124_v25  ;;  %v1157_v30 = vsel %vm1093_vm2, %v1061_v23, %v1125_v27  ;;  %v1056_v31 = vmul.f32 %v7825_v21, %v7626_v56  ;;  %v1057_v52 = vmul.f32 %v7825_v21, %v7629_v61 }
 0x1f0   : > { %v7831_v42 = vpack.c.bf16 %v1157_v30, %v1156_v28  ;;  %v1058_v54 = vmul.f32 %v7825_v21, %v7632_v62  ;;  %v1059_v2 = vmul.f32 %v7825_v21, %v7635_v13  ;;  %v1030_v55 = vmul.f32 %v7825_v21, %v7645_v36 }
 0x1f1   : > { %v1031_v58 = vmul.f32 %v7825_v21, %v7649_v50  ;;  %v1032_v60 = vmul.f32 %v7825_v21, %v7653_v53  ;;  %v7869_v56 = vmul.f32 %v7825_v21, %v7657_v63  ;;  %vm1078_vm5 = vcmp.ge.f32.partialorder %v1046_v33, 0.0 }
 0x1f2   : > { %vm1079_vm6 = vcmp.ge.f32.partialorder %v1047_v34, 0.0  ;;  %vm1080_vm7 = vcmp.ge.f32.partialorder %v1048_v18, 0.0  ;;  %vm1081_vm8 = vcmp.ge.f32.partialorder %v1049_v32, 0.0  ;;  %vm1082_vm9 = vcmp.ge.f32.partialorder %v1050_v37, 0.0 }
 0x1f3   : > { %vm1083_vm10 = vcmp.ge.f32.partialorder %v1051_v46, 0.0  ;;  %vm1084_vm11 = vcmp.ge.f32.partialorder %v1052_v51, 0.0  ;;  %vm1085_vm12 = vcmp.ge.f32.partialorder %v1053_v11, 0.0  ;;  %vm1086_vm13 = vcmp.ge.f32.partialorder %v1054_v19, 0.0 }
 0x1f4   : > { %vm1087_vm14 = vcmp.ge.f32.partialorder %v1055_v24, 0.0  ;;  %vm1088_vm1 = vcmp.ge.f32.partialorder %v1056_v31, 0.0  ;;  %vm1089_vm2 = vcmp.ge.f32.partialorder %v1057_v52, 0.0  ;;  %vm1090_vm0 = vcmp.ge.f32.partialorder %v1058_v54, 0.0 }
 0x1f5   : > { %vm1091_vm3 = vcmp.ge.f32.partialorder %v1059_v2, 0.0  ;;  %v1094_v61 = vmul.f32 0.2, %v1030_v55  ;;  %v1095_v62 = vmul.f32 0.2, %v1031_v58  ;;  %v1034_v63 = vmul.f32 %v7825_v21, %v7665_v6 }
 0x1f6   : > { %v1096_v13 = vmul.f32 0.2, %v1032_v60  ;;  %v1097_v36 = vmul.f32 0.2, %v7869_v56  ;;  %v1110_v50 = vmul.f32 0.2, %v1046_v33  ;;  %v1035_v43 = vmul.f32 %v7825_v21, %v7671_v7 }
 0x1f7   : > { %v1111_v53 = vmul.f32 0.2, %v1047_v34  ;;  %v1112_v38 = vmul.f32 0.2, %v1048_v18  ;;  %v1113_v39 = vmul.f32 0.2, %v1049_v32  ;;  %v7879_v0 = vmul.f32 %v7825_v21, %v7679_v10 }
 0x1f8   : > { %v1114_v41 = vmul.f32 0.2, %v1050_v37  ;;  %v1115_v44 = vmul.f32 0.2, %v1051_v46  ;;  %v1116_v47 = vmul.f32 0.2, %v1052_v51  ;;  %v1142_v12 = vsel %vm1078_vm5, %v1046_v33, %v1110_v50 }
 0x1f9   : > { %v1117_v48 = vmul.f32 0.2, %v1053_v11  ;;  %v1118_v1 = vmul.f32 0.2, %v1054_v19  ;;  %v1119_v3 = vmul.f32 0.2, %v1055_v24  ;;  %v1143_v7 = vsel %vm1079_vm6, %v1047_v34, %v1111_v53 }
 0x1fa   : > { %v1120_v15 = vmul.f32 0.2, %v1056_v31  ;;  %v1121_v4 = vmul.f32 0.2, %v1057_v52  ;;  %v1122_v5 = vmul.f32 0.2, %v1058_v54  ;;  %v1144_v14 = vsel %vm1080_vm7, %v1048_v18, %v1112_v38 }
 0x1fb   : > { %v1123_v9 = vmul.f32 0.2, %v1059_v2  ;;  %vm9265_vm4 = vcmp.ge.f32.partialorder %v1030_v55, 0.0  ;;  %vm9266_vm15 = vcmp.ge.f32.partialorder %v1031_v58, 0.0  ;;  %v1145_v16 = vsel %vm1081_vm8, %v1049_v32, %v1113_v39 }
 0x1fc   : > { %v1126_v6 = vsel %vm9265_vm4, %v1030_v55, %v1094_v61  ;;  %v1127_v17 = vsel %vm9266_vm15, %v1031_v58, %v1095_v62  ;;  %v1146_v10 = vsel %vm1082_vm9, %v1050_v37, %v1114_v41  ;;  %v1147_v20 = vsel %vm1083_vm10, %v1051_v46, %v1115_v44 }
 0x1fd   : > { %v1148_v22 = vsel %vm1084_vm11, %v1052_v51, %v1116_v47  ;;  %v1149_v23 = vsel %vm1085_vm12, %v1053_v11, %v1117_v48  ;;  %v1150_v25 = vsel %vm1086_vm13, %v1054_v19, %v1118_v1  ;;  %v1151_v27 = vsel %vm1087_vm14, %v1055_v24, %v1119_v3 }
 0x1fe   : > { %v1152_v28 = vsel %vm1088_vm1, %v1056_v31, %v1120_v15  ;;  %v1153_v30 = vsel %vm1089_vm2, %v1057_v52, %v1121_v4  ;;  %v1154_v33 = vsel %vm1090_vm0, %v1058_v54, %v1122_v5  ;;  %v1155_v34 = vsel %vm1091_vm3, %v1059_v2, %v1123_v9 }
 0x1ff   : > { %v7897_v18 = vpack.c.bf16 %v1127_v17, %v1126_v6  ;;  %v1037_v32 = vmul.f32 %v7825_v21, %v7686_v26  ;;  %v1098_v37 = vmul.f32 0.2, %v1034_v63  ;;  %vm9267_vm4 = vcmp.ge.f32.partialorder %v1032_v60, 0.0 }
 0x200   : > { %v1128_v46 = vsel %vm9267_vm4, %v1032_v60, %v1096_v13  ;;  %v7902_v51 = vpack.c.bf16 %v1143_v7, %v1142_v12  ;;  %v7904_v11 = vpack.c.bf16 %v1145_v16, %v1144_v14  ;;  %v7906_v19 = vpack.c.bf16 %v1147_v20, %v1146_v10  ;;  %v6930_v7 = vld [vmem:[%s9257_s3 + $0x80] ss:$8 sps:$4 sm:$0xff]   ;;  %v6936_v16 = vld [vmem:[%s9257_s3 + $0x94] ss:$8 sps:$4 sm:$0xff]   ;;  %v6938_v20 = vld [vmem:[%s9257_s3 + $0x90] ss:$8 sps:$4 sm:$0xff]  }
 0x201   : > { %v7908_v24 = vpack.c.bf16 %v1149_v23, %v1148_v22  ;;  %v7910_v31 = vpack.c.bf16 %v1151_v27, %v1150_v25  ;;  %v1099_v52 = vmul.f32 0.2, %v1035_v43  ;;  %vm9268_vm0 = vcmp.ge.f32.partialorder %v7869_v56, 0.0  ;;  %v6933_v14 = vld [vmem:[%s9257_s3] ss:$8 sps:$4 sm:$0xff]  }
 0x202   : > { %v1129_v54 = vsel %vm9268_vm0, %v7869_v56, %v1097_v36  ;;  %v7915_v2 = vpack.c.bf16 %v1153_v30, %v1152_v28  ;;  %v7917_v26 = vpack.c.bf16 %v1155_v34, %v1154_v33  ;;  %6030 = vmatprep.subr.bf16.mxu1 %v7902_v51  ;;  %6126 = vmatprep.subr.bf16.mxu0 %v7902_v51  ;;  %vm1066_vm3 = vcmp.ge.f32.partialorder %v1034_v63, 0.0  ;;  %v6939_v10 = vld [vmem:[%s9257_s3 + $0x14] ss:$8 sps:$4 sm:$0xff]   ;;  %v6941_v22 = vld [vmem:[%s9257_s3 + $0x10] ss:$8 sps:$4 sm:$0xff]  }
 0x203   : > { %vm1067_vm5 = vcmp.ge.f32.partialorder %v1035_v43, 0.0  ;;  %6031 = vmatpush3.bf16.msra.mxu1 %v7897_v18  ;;  %6127 = vmatpush3.bf16.msra.mxu0 %v7897_v18  ;;  %v1038_v55 = vmul.f32 %v7825_v21, %v7693_v29  ;;  %v1039_v58 = vmul.f32 %v7825_v21, %v7700_v35  ;;  %v7929_v60 = vpack.c.bf16 %v1129_v54, %v1128_v46  ;;  %v6942_v23 = vld [vmem:[%s9257_s3 + $0xa4] ss:$8 sps:$4 sm:$0xff]   ;;  %v6944_v27 = vld [vmem:[%s9257_s3 + $0xa0] ss:$8 sps:$4 sm:$0xff]  }
 0x204   : > { %6032 = vmatprep.subr.bf16.mxu1 %v7904_v11  ;;  %6128 = vmatprep.subr.bf16.mxu0 %v7904_v11  ;;  %v1100_v56 = vmul.f32 0.2, %v7879_v0  ;;  %v1101_v61 = vmul.f32 0.2, %v1037_v32  ;;  %v1130_v62 = vsel %vm1066_vm3, %v1034_v63, %v1098_v37  ;;  %v1131_v13 = vsel %vm1067_vm5, %v1035_v43, %v1099_v52  ;;  %v6945_v25 = vld [vmem:[%s9257_s3 + $0x24] ss:$8 sps:$4 sm:$0xff]  }
 0x205   : > { %vm1068_vm6 = vcmp.ge.f32.partialorder %v7879_v0, 0.0  ;;  %vm1069_vm7 = vcmp.ge.f32.partialorder %v1037_v32, 0.0  ;;  %v1040_v29 = vmul.f32 %v7825_v21, %v7707_v40  ;;  %v1041_v35 = vmul.f32 %v7825_v21, %v7714_v45  ;;  %v6947_v28 = vld [vmem:[%s9257_s3 + $0x20] ss:$8 sps:$4 sm:$0xff]   ;;  %v6948_v30 = vld [vmem:[%s9257_s3 + $0xb4] ss:$8 sps:$4 sm:$0xff]  }
 0x206   : > { %v7941_v36 = vpack.c.bf16 %v1131_v13, %v1130_v62  ;;  %v1102_v50 = vmul.f32 0.2, %v1038_v55  ;;  %v1103_v53 = vmul.f32 0.2, %v1039_v58  ;;  %v1132_v63 = vsel %vm1068_vm6, %v7879_v0, %v1100_v56  ;;  %v6951_v33 = vld [vmem:[%s9257_s3 + $0x34] ss:$8 sps:$4 sm:$0xff]  }
 0x207   : > { %6033 = vmatpush3.bf16.msra.mxu1 %v7929_v60  ;;  %6129 = vmatpush3.bf16.msra.mxu0 %v7929_v60  ;;  %v1133_v38 = vsel %vm1069_vm7, %v1037_v32, %v1101_v61  ;;  %vm1070_vm8 = vcmp.ge.f32.partialorder %v1038_v55, 0.0  ;;  %vm1071_vm9 = vcmp.ge.f32.partialorder %v1039_v58, 0.0  ;;  %v1042_v40 = vmul.f32 %v7825_v21, %v7721_v49  ;;  %v6950_v34 = vld [vmem:[%s9257_s3 + $0xb0] ss:$8 sps:$4 sm:$0xff]   ;;  %v6956_v37 = vld [vmem:[%s9257_s3 + $0xc4] ss:$8 sps:$4 sm:$0xff]  }
 0x208   : > { %6034 = vmatprep.subr.bf16.mxu1 %v7906_v19  ;;  %6130 = vmatprep.subr.bf16.mxu0 %v7906_v19  ;;  %v1043_v45 = vmul.f32 %v7825_v21, %v7728_v57  ;;  %v7952_v39 = vpack.c.bf16 %v1133_v38, %v1132_v63  ;;  %v1104_v41 = vmul.f32 0.2, %v1040_v29  ;;  %v1105_v43 = vmul.f32 0.2, %v1041_v35  ;;  %v6953_v32 = vld [vmem:[%s9257_s3 + $0x30] ss:$8 sps:$4 sm:$0xff]  }
 0x209   : > { %v1134_v44 = vsel %vm1070_vm8, %v1038_v55, %v1102_v50  ;;  %v1135_v47 = vsel %vm1071_vm9, %v1039_v58, %v1103_v53  ;;  %vm1072_vm10 = vcmp.ge.f32.partialorder %v1040_v29, 0.0  ;;  %vm1073_vm11 = vcmp.ge.f32.partialorder %v1041_v35, 0.0  ;;  %v6959_v46 = vld [vmem:[%s9257_s3 + $0x44] ss:$8 sps:$4 sm:$0xff]   ;;  %v6954_v52 = vld [vmem:[%s9257_s3 + $0xc0] ss:$8 sps:$4 sm:$0xff]  }
 0x20a   : > { %v1044_v49 = vmul.f32 %v7825_v21, %v7735_v59  ;;  %v1045_v57 = vmul.f32 %v7825_v21, %v7742_v8  ;;  %v7962_v48 = vpack.c.bf16 %v1135_v47, %v1134_v44  ;;  %v1106_v0 = vmul.f32 0.2, %v1042_v40  ;;  %v6957_v54 = vld [vmem:[%s9257_s3 + $0x40] ss:$8 sps:$4 sm:$0xff]   ;;  %v6960_v55 = vld [vmem:[%s9257_s3 + $0xd4] ss:$8 sps:$4 sm:$0xff]  }
 0x20b   : > { %6035 = vmatpush3.bf16.msra.mxu1 %v7941_v36  ;;  %6131 = vmatpush3.bf16.msra.mxu0 %v7941_v36  ;;  %v1107_v1 = vmul.f32 0.2, %v1043_v45  ;;  %v1136_v3 = vsel %vm1072_vm10, %v1040_v29, %v1104_v41  ;;  %v1137_v15 = vsel %vm1073_vm11, %v1041_v35, %v1105_v43  ;;  %vm1074_vm12 = vcmp.ge.f32.partialorder %v1042_v40, 0.0  ;;  %v6963_v58 = vld [vmem:[%s9257_s3 + $0x54] ss:$8 sps:$4 sm:$0xff]  }
 0x20c   : > { %6036 = vmatprep.subr.bf16.mxu1 %v7908_v24  ;;  %6132 = vmatprep.subr.bf16.mxu0 %v7908_v24  ;;  %vm1075_vm13 = vcmp.ge.f32.partialorder %v1043_v45, 0.0  ;;  %v7968_v59 = vpack.c.bf16 %v1137_v15, %v1136_v3  ;;  %v1108_v4 = vmul.f32 0.2, %v1044_v49  ;;  %v1109_v8 = vmul.f32 0.2, %v1045_v57 }
 0x20d   : > { %v1138_v21 = vsel %vm1074_vm12, %v1042_v40, %v1106_v0  ;;  %v1139_v5 = vsel %vm1075_vm13, %v1043_v45, %v1107_v1  ;;  %vm1076_vm14 = vcmp.ge.f32.partialorder %v1044_v49, 0.0  ;;  %vm1077_vm15 = vcmp.ge.f32.partialorder %v1045_v57, 0.0  ;;  %v6962_v56 = vld [vmem:[%s9257_s3 + $0xd0] ss:$8 sps:$4 sm:$0xff]   ;;  %v6966_v62 = vld [vmem:[%s9257_s3 + $0xe4] ss:$8 sps:$4 sm:$0xff]  }
 0x20e   : > { %v7974_v9 = vpack.c.bf16 %v1139_v5, %v1138_v21  ;;  %v1140_v6 = vsel %vm1076_vm14, %v1044_v49, %v1108_v4  ;;  %v1141_v17 = vsel %vm1077_vm15, %v1045_v57, %v1109_v8  ;;  %v6965_v61 = vld [vmem:[%s9257_s3 + $0x50] ss:$8 sps:$4 sm:$0xff]   ;;  %v6969_v13 = vld [vmem:[%s9257_s3 + $0x64] ss:$8 sps:$4 sm:$0xff]   ;;  %v6968_v29 = vld [vmem:[%s9257_s3 + $0xe0] ss:$8 sps:$4 sm:$0xff]  }
 0x20f   : > { %6037 = vmatpush3.bf16.msra.mxu1 %v7952_v39  ;;  %6133 = vmatpush3.bf16.msra.mxu0 %v7952_v39  ;;  %v7980_v12 = vpack.c.bf16 %v1141_v17, %v1140_v6  ;;  %v6971_v35 = vld [vmem:[%s9257_s3 + $0x60] ss:$8 sps:$4 sm:$0xff]   ;;  %v6972_v50 = vld [vmem:[%s9257_s3 + $0xf4] ss:$8 sps:$4 sm:$0xff]   ;;  %v6974_v63 = vld [vmem:[%s9257_s3 + $0xf0] ss:$8 sps:$4 sm:$0xff]  }
 0x210   : > { %6038 = vmatprep.subr.bf16.mxu1 %v7910_v31  ;;  %6134 = vmatprep.subr.bf16.mxu0 %v7910_v31  ;;  %v6975_v53 = vld [vmem:[%s9257_s3 + $0x74] ss:$8 sps:$4 sm:$0xff]   ;;  %v6977_v38 = vld [vmem:[%s9257_s3 + $0x70] ss:$8 sps:$4 sm:$0xff]   ;;  %v6980_v40 = vld [vmem:[%s9257_s3 + $0x104] ss:$8 sps:$4 sm:$0xff]  }
 0x211   : > { %v6978_v45 = vld [vmem:[%s9257_s3 + $0x100] ss:$8 sps:$4 sm:$0xff]   ;;  %v6981_v41 = vld [vmem:[%s9257_s3 + $0x114] ss:$8 sps:$4 sm:$0xff]   ;;  %v6983_v43 = vld [vmem:[%s9257_s3 + $0x110] ss:$8 sps:$4 sm:$0xff]  }
 0x212   : > { %v6984_v44 = vld [vmem:[%s9257_s3 + $0x124] ss:$8 sps:$4 sm:$0xff]   ;;  %v6986_v47 = vld [vmem:[%s9257_s3 + $0x120] ss:$8 sps:$4 sm:$0xff]   ;;  %v6987_v49 = vld [vmem:[%s9257_s3 + $0x134] ss:$8 sps:$4 sm:$0xff]  }
 0x213   : > { %6039 = vmatpush3.bf16.msra.mxu1 %v7962_v48  ;;  %6135 = vmatpush3.bf16.msra.mxu0 %v7962_v48  ;;  %v6989_v57 = vld [vmem:[%s9257_s3 + $0x130] ss:$8 sps:$4 sm:$0xff]   ;;  %v6992_v0 = vld [vmem:[%s9257_s3 + $0x144] ss:$8 sps:$4 sm:$0xff]   ;;  %v6990_v1 = vld [vmem:[%s9257_s3 + $0x140] ss:$8 sps:$4 sm:$0xff]  }
 0x214   : > { %6040 = vmatprep.subr.bf16.mxu1 %v7915_v2  ;;  %6136 = vmatprep.subr.bf16.mxu0 %v7915_v2  ;;  %v6993_v3 = vld [vmem:[%s9257_s3 + $0x154] ss:$8 sps:$4 sm:$0xff]   ;;  %v6995_v15 = vld [vmem:[%s9257_s3 + $0x150] ss:$8 sps:$4 sm:$0xff]   ;;  %v6996_v4 = vld [vmem:[%s9257_s3 + $0x164] ss:$8 sps:$4 sm:$0xff]  }
 0x215   : > { %v7038_v8 = vld [vmem:[%s9258_s4 + $0x20] sm:$0xff]   ;;  %v6999_v5 = vld [vmem:[%s9257_s3 + $0x174] ss:$8 sps:$4 sm:$0xff]   ;;  %v7039_v6 = vld [vmem:[%s9258_s4 + $0x28] sm:$0xff]   ;;  %vm9269_vm1 = vcmask 523264  }
 0x216   : > { %v6998_v21 = vld [vmem:[%s9257_s3 + $0x160] ss:$8 sps:$4 sm:$0xff]   ;;  %v7001_v17 = vld [vmem:[%s9257_s3 + $0x170] ss:$8 sps:$4 sm:$0xff]   ;;  %vm9270_vm2 = vmmov %vm9269_vm1 }
 0x217   : > { %6041 = vmatpush3.bf16.msra.mxu1 %v7968_v59  ;;  %6137 = vmatpush3.bf16.msra.mxu0 %v7968_v59  ;;  %vm9271_vm4 = vmmov %vm9269_vm1 }
 0x218   : > { %6042 = vmatprep.subr.bf16.mxu1 %v7917_v26  ;;  %6138 = vmatprep.subr.bf16.mxu0 %v7917_v26  ;;  %vm9272_vm0 = vmmov %vm9269_vm1 }
 0x219   : > { %vm9273_vm3 = vmmov %vm9272_vm0 }
 0x21a   : > { %vm9274_vm5 = vmmov %vm9272_vm0 }
 0x21b   : > { %6043 = vmatpush3.bf16.msra.mxu1 %v7974_v9  ;;  %6139 = vmatpush3.bf16.msra.mxu0 %v7974_v9  ;;  %vm9275_vm6 = vmmov %vm9272_vm0 }
 0x21c   : > { %6044 = vmatprep.subr.bf16.mxu1 %v7831_v42  ;;  %6140 = vmatprep.subr.bf16.mxu0 %v7831_v42  ;;  %vm9276_vm7 = vmmov %vm9272_vm0 }
 0x21d   : > { %vm9277_vm8 = vmmov %vm9272_vm0 }
 0x21e   : > { %vm9278_vm9 = vmmov %vm9272_vm0 }
 0x21f   : > { %6045 = vmatpush3.bf16.msra.mxu1 %v7980_v12  ;;  %6141 = vmatpush3.bf16.msra.mxu0 %v7980_v12  ;;  %vm9279_vm10 = vmmov %vm9272_vm0 }
 0x220   : > { %6070 = vmatprep.subr.bf16.mxu1 %v7902_v51  ;;  %6174 = vmatprep.subr.bf16.mxu0 %v7902_v51  ;;  %vm9280_vm11 = vmmov %vm9272_vm0 }
 0x221   : > { %vm9281_vm12 = vmmov %vm9272_vm0 }
 0x222   : > { %1710 = vmatmul.mubr.bf16.vlgmr.msra.gmra.mrb[64].mxu0 %v6930_v7  ;;  %1255 = vmatmul.mubr.bf16.vlgmr.msra.gmra.mrb[0].mxu1 %v6933_v14  ;;  %v7004_v7 = vld [vmem:[%s9257_s3 + $0x184] ss:$8 sps:$4 sm:$0xff]   ;;  %v7040_v14 = vld [vmem:[%s9258_s4 + $0x30] sm:$0xff]   ;;  %vm9282_vm13 = vmmov %vm9272_vm0 }
 0x223   : > { %6071 = vmatpush3.bf16.msra.mxu1 %v7897_v18  ;;  %6175 = vmatpush3.bf16.msra.mxu0 %v7897_v18  ;;  %vm9283_vm14 = vmmov %vm9272_vm0 }
 0x224   : > { %6072 = vmatprep.subr.bf16.mxu1 %v7904_v11  ;;  %6176 = vmatprep.subr.bf16.mxu0 %v7904_v11  ;;  %vm9284_vm15 = vmmov %vm9272_vm0 }
 0x225   : > { %1717 = vmatprep.mubr.bf16.mxu0 %v6936_v16  ;;  %1262 = vmatprep.mubr.bf16.mxu1 %v6939_v10  ;;  %v7002_v16 = vld [vmem:[%s9257_s3 + $0x180] ss:$8 sps:$4 sm:$0xff]   ;;  %v7005_v10 = vld [vmem:[%s9257_s3 + $0x194] ss:$8 sps:$4 sm:$0xff]  }
 0x227   : > { %6073 = vmatpush3.bf16.msra.mxu1 %v7929_v60  ;;  %6177 = vmatpush3.bf16.msra.mxu0 %v7929_v60 }
 0x228   : > { %6074 = vmatprep.subr.bf16.mxu1 %v7906_v19  ;;  %6178 = vmatprep.subr.bf16.mxu0 %v7906_v19 }
 0x22a   : > { %1718 = vmatmul.mubr.bf16.gmra.mrb[68].mxu0 %v6938_v20  ;;  %1263 = vmatmul.mubr.bf16.gmra.mrb[4].mxu1 %v6941_v22  ;;  %v7041_v20 = vld [vmem:[%s9258_s4 + $0x38] sm:$0xff]  }
 0x22b   : > { %6075 = vmatpush3.bf16.msra.mxu1 %v7941_v36  ;;  %6179 = vmatpush3.bf16.msra.mxu0 %v7941_v36  ;;  %v7007_v22 = vld [vmem:[%s9257_s3 + $0x190] ss:$8 sps:$4 sm:$0xff]  }
 0x22c   : > { %6076 = vmatprep.subr.bf16.mxu1 %v7908_v24  ;;  %6180 = vmatprep.subr.bf16.mxu0 %v7908_v24 }
 0x22d   : > { %1725 = vmatprep.mubr.bf16.mxu0 %v6942_v23  ;;  %1270 = vmatprep.mubr.bf16.mxu1 %v6945_v25  ;;  %v7008_v23 = vld [vmem:[%s9257_s3 + $0x1a4] ss:$8 sps:$4 sm:$0xff]  }
 0x22e   : > { %v8239_v25 = vld [vmem:[%s9258_s4] sm:$0xff]  }
 0x22f   : > { %6077 = vmatpush3.bf16.msra.mxu1 %v7952_v39  ;;  %6181 = vmatpush3.bf16.msra.mxu0 %v7952_v39 }
 0x230   : > { %6078 = vmatprep.subr.bf16.mxu1 %v7910_v31  ;;  %6182 = vmatprep.subr.bf16.mxu0 %v7910_v31 }
 0x232   : > { %1726 = vmatmul.mubr.bf16.gmra.mrb[72].mxu0 %v6944_v27  ;;  %1271 = vmatmul.mubr.bf16.gmra.mrb[8].mxu1 %v6947_v28  ;;  %v7010_v27 = vld [vmem:[%s9257_s3 + $0x1a0] ss:$8 sps:$4 sm:$0xff]   ;;  %v7011_v28 = vld [vmem:[%s9257_s3 + $0x1b4] ss:$8 sps:$4 sm:$0xff]  }
 0x233   : > { %6079 = vmatpush3.bf16.msra.mxu1 %v7962_v48  ;;  %6183 = vmatpush3.bf16.msra.mxu0 %v7962_v48 }
 0x234   : > { %6080 = vmatprep.subr.bf16.mxu1 %v7915_v2  ;;  %6184 = vmatprep.subr.bf16.mxu0 %v7915_v2 }
 0x235   : > { %1733 = vmatprep.mubr.bf16.mxu0 %v6948_v30  ;;  %1278 = vmatprep.mubr.bf16.mxu1 %v6951_v33  ;;  %v7013_v30 = vld [vmem:[%s9257_s3 + $0x1b0] ss:$8 sps:$4 sm:$0xff]   ;;  %v7016_v33 = vld [vmem:[%s9257_s3 + $0x1c4] ss:$8 sps:$4 sm:$0xff]  }
 0x237   : > { %6081 = vmatpush3.bf16.msra.mxu1 %v7968_v59  ;;  %6185 = vmatpush3.bf16.msra.mxu0 %v7968_v59 }
 0x238   : > { %6082 = vmatprep.subr.bf16.mxu1 %v7917_v26  ;;  %6186 = vmatprep.subr.bf16.mxu0 %v7917_v26 }
 0x23a   : > { %1734 = vmatmul.mubr.bf16.gmra.mrb[76].mxu0 %v6950_v34  ;;  %1279 = vmatmul.mubr.bf16.gmra.mrb[12].mxu1 %v6953_v32  ;;  %v7014_v34 = vld [vmem:[%s9257_s3 + $0x1c0] ss:$8 sps:$4 sm:$0xff]   ;;  %v7017_v32 = vld [vmem:[%s9257_s3 + $0x1d4] ss:$8 sps:$4 sm:$0xff]  }
 0x23b   : > { %6083 = vmatpush3.bf16.msra.mxu1 %v7974_v9  ;;  %6187 = vmatpush3.bf16.msra.mxu0 %v7974_v9 }
 0x23c   : > { %6084 = vmatprep.subr.bf16.mxu1 %v7831_v42  ;;  %6188 = vmatprep.subr.bf16.mxu0 %v7831_v42 }
 0x23d   : > { %1945 = vmatprep.mubr.bf16.mxu0 %v6956_v37  ;;  %1380 = vmatprep.mubr.bf16.mxu1 %v6959_v46  ;;  %v7019_v37 = vld [vmem:[%s9257_s3 + $0x1d0] ss:$8 sps:$4 sm:$0xff]   ;;  %v7020_v46 = vld [vmem:[%s9257_s3 + $0x1e4] ss:$8 sps:$4 sm:$0xff]  }
 0x23f   : > { %6085 = vmatpush3.bf16.msra.mxu1 %v7980_v12  ;;  %6189 = vmatpush3.bf16.msra.mxu0 %v7980_v12 }
 0x240   : > { %6222 = vmatprep.subr.bf16.mxu0 %v7902_v51  ;;  %6507 = vmatprep.subr.bf16.mxu1 %v7038_v8 }
 0x242   : > { %1946 = vmatmul.mubr.bf16.vlgmr.msra.gmra.mrb[80].mxu0 %v6954_v52  ;;  %1381 = vmatmul.mubr.bf16.vlgmr.msra.gmra.mrb[16].mxu1 %v6957_v54 }
 0x243   : > { %6223 = vmatpush3.bf16.msra.mxu0 %v7897_v18  ;;  %1953 = vmatprep.mubr.bf16.mxu0 %v6960_v55 }
 0x244   : > { %6224 = vmatprep.subr.bf16.mxu0 %v7904_v11  ;;  %1388 = vmatprep.mubr.bf16.mxu1 %v6963_v58 }
 0x245   : > { %6508 = vmatpush3.bf16.msra.mxu1 %v7038_v8 }
 0x246   : > { %6509 = vmatprep.subr.bf16.mxu1 %v7039_v6 }
 0x247   : > { %6225 = vmatpush3.bf16.msra.mxu0 %v7929_v60 }
 0x248   : > { %6226 = vmatprep.subr.bf16.mxu0 %v7906_v19 }
 0x249   : > { %6510 = vmatpush3.bf16.msra.mxu1 %v7039_v6 }
 0x24a   : > { %1954 = vmatmul.mubr.bf16.gmra.mrb[84].mxu0 %v6962_v56  ;;  %1389 = vmatmul.mubr.bf16.gmra.mrb[20].mxu1 %v6965_v61 }
 0x24b   : > { %6227 = vmatpush3.bf16.msra.mxu0 %v7941_v36  ;;  %1961 = vmatprep.mubr.bf16.mxu0 %v6966_v62 }
 0x24c   : > { %6228 = vmatprep.subr.bf16.mxu0 %v7908_v24  ;;  %1396 = vmatprep.mubr.bf16.mxu1 %v6969_v13 }
 0x24d   : > { %6511 = vmatprep.subr.bf16.mxu1 %v7040_v14 }
 0x24e   : > { %6512 = vmatpush3.bf16.msra.mxu1 %v7040_v14 }
 0x24f   : > { %6229 = vmatpush3.bf16.msra.mxu0 %v7952_v39  ;;  %6513 = vmatprep.subr.bf16.mxu1 %v7041_v20 }
 0x250   : > { %6230 = vmatprep.subr.bf16.mxu0 %v7910_v31 }
 0x252   : > { %1962 = vmatmul.mubr.bf16.gmra.mrb[88].mxu0 %v6968_v29  ;;  %1397 = vmatmul.mubr.bf16.gmra.mrb[24].mxu1 %v6971_v35 }
 0x253   : > { %6231 = vmatpush3.bf16.msra.mxu0 %v7962_v48  ;;  %1969 = vmatprep.mubr.bf16.mxu0 %v6972_v50 }
 0x254   : > { %6232 = vmatprep.subr.bf16.mxu0 %v7915_v2  ;;  %1404 = vmatprep.mubr.bf16.mxu1 %v6975_v53 }
 0x255   : > { %6514 = vmatpush3.bf16.msra.mxu1 %v7041_v20 }
 0x256   : > { %6523 = vmatprep.subr.bf16.mxu1 %v8239_v25 }
 0x257   : > { %6233 = vmatpush3.bf16.msra.mxu0 %v7968_v59 }
 0x258   : > { %6234 = vmatprep.subr.bf16.mxu0 %v7917_v26 }
 0x25a   : > { %1970 = vmatmul.mubr.bf16.gmra.mrb[92].mxu0 %v6974_v63  ;;  %1405 = vmatmul.mubr.bf16.gmra.mrb[28].mxu1 %v6977_v38 }
 0x25b   : > { %6235 = vmatpush3.bf16.msra.mxu0 %v7974_v9  ;;  %2181 = vmatprep.mubr.bf16.mxu0 %v6980_v40 }
 0x25c   : > { %6236 = vmatprep.subr.bf16.mxu0 %v7831_v42 }
 0x25f   : > { %6237 = vmatpush3.bf16.msra.mxu0 %v7980_v12 }
 0x260   : > { %6270 = vmatprep.subr.bf16.mxu0 %v7902_v51 }
 0x262   : > { %2182 = vmatmul.mubr.bf16.vlgmr.msra.gmra.mrb[96].mxu0 %v6978_v45 }
 0x263   : > { %6271 = vmatpush3.bf16.msra.mxu0 %v7897_v18  ;;  %2189 = vmatprep.mubr.bf16.mxu0 %v6981_v41 }
 0x264   : > { %6272 = vmatprep.subr.bf16.mxu0 %v7904_v11 }
 0x267   : > { %6273 = vmatpush3.bf16.msra.mxu0 %v7929_v60 }
 0x268   : > { %6274 = vmatprep.subr.bf16.mxu0 %v7906_v19 }
 0x26a   : > { %2190 = vmatmul.mubr.bf16.gmra.mrb[100].mxu0 %v6983_v43 }
 0x26b   : > { %6275 = vmatpush3.bf16.msra.mxu0 %v7941_v36  ;;  %2197 = vmatprep.mubr.bf16.mxu0 %v6984_v44 }
 0x26c   : > { %6276 = vmatprep.subr.bf16.mxu0 %v7908_v24 }
 0x26f   : > { %6277 = vmatpush3.bf16.msra.mxu0 %v7952_v39 }
 0x270   : > { %6278 = vmatprep.subr.bf16.mxu0 %v7910_v31 }
 0x272   : > { %2198 = vmatmul.mubr.bf16.gmra.mrb[104].mxu0 %v6986_v47 }
 0x273   : > { %6279 = vmatpush3.bf16.msra.mxu0 %v7962_v48  ;;  %2205 = vmatprep.mubr.bf16.mxu0 %v6987_v49 }
 0x274   : > { %6280 = vmatprep.subr.bf16.mxu0 %v7915_v2 }
 0x277   : > { %6281 = vmatpush3.bf16.msra.mxu0 %v7968_v59 }
 0x278   : > { %6282 = vmatprep.subr.bf16.mxu0 %v7917_v26 }
 0x27a   : > { %2206 = vmatmul.mubr.bf16.gmra.mrb[108].mxu0 %v6989_v57 }
 0x27b   : > { %6283 = vmatpush3.bf16.msra.mxu0 %v7974_v9  ;;  %2417 = vmatprep.mubr.bf16.mxu0 %v6992_v0 }
 0x27c   : > { %6284 = vmatprep.subr.bf16.mxu0 %v7831_v42 }
 0x27f   : > { %6285 = vmatpush3.bf16.msra.mxu0 %v7980_v12 }
 0x280   : > { %6318 = vmatprep.subr.bf16.mxu0 %v7902_v51 }
 0x282   : > { %2418 = vmatmul.mubr.bf16.vlgmr.msra.gmra.mrb[112].mxu0 %v6990_v1 }
 0x283   : > { %6319 = vmatpush3.bf16.msra.mxu0 %v7897_v18  ;;  %2425 = vmatprep.mubr.bf16.mxu0 %v6993_v3 }
 0x284   : > { %6320 = vmatprep.subr.bf16.mxu0 %v7904_v11 }
 0x287   : > { %6321 = vmatpush3.bf16.msra.mxu0 %v7929_v60 }
 0x288   : > { %6322 = vmatprep.subr.bf16.mxu0 %v7906_v19 }
 0x28a   : > { %2426 = vmatmul.mubr.bf16.gmra.mrb[116].mxu0 %v6995_v15 }
 0x28b   : > { %6323 = vmatpush3.bf16.msra.mxu0 %v7941_v36  ;;  %2433 = vmatprep.mubr.bf16.mxu0 %v6996_v4 }
 0x28c   : > { %6324 = vmatprep.subr.bf16.mxu0 %v7908_v24 }
 0x28f   : > { %6325 = vmatpush3.bf16.msra.mxu0 %v7952_v39 }
 0x290   : > { %6326 = vmatprep.subr.bf16.mxu0 %v7910_v31 }
 0x292   : > { %2434 = vmatmul.mubr.bf16.gmra.mrb[120].mxu0 %v6998_v21 }
 0x293   : > { %6327 = vmatpush3.bf16.msra.mxu0 %v7962_v48  ;;  %2441 = vmatprep.mubr.bf16.mxu0 %v6999_v5 }
 0x294   : > { %6328 = vmatprep.subr.bf16.mxu0 %v7915_v2 }
 0x297   : > { %6329 = vmatpush3.bf16.msra.mxu0 %v7968_v59 }
 0x298   : > { %6330 = vmatprep.subr.bf16.mxu0 %v7917_v26 }
 0x29a   : > { %2442 = vmatmul.mubr.bf16.gmra.mrb[124].mxu0 %v7001_v17 }
 0x29b   : > { %6331 = vmatpush3.bf16.msra.mxu0 %v7974_v9  ;;  %2653 = vmatprep.mubr.bf16.mxu0 %v7004_v7 }
 0x29c   : > { %6332 = vmatprep.subr.bf16.mxu0 %v7831_v42 }
 0x29f   : > { %6333 = vmatpush3.bf16.msra.mxu0 %v7980_v12 }
 0x2a0   : > { %6366 = vmatprep.subr.bf16.mxu0 %v7902_v51 }
 0x2a2   : > { %2654 = vmatmul.mubr.bf16.vlgmr.msra.gmra.mrb[128].mxu0 %v7002_v16 }
 0x2a3   : > { %6367 = vmatpush3.bf16.msra.mxu0 %v7897_v18  ;;  %2661 = vmatprep.mubr.bf16.mxu0 %v7005_v10 }
 0x2a4   : > { %6368 = vmatprep.subr.bf16.mxu0 %v7904_v11 }
 0x2a7   : > { %6369 = vmatpush3.bf16.msra.mxu0 %v7929_v60 }
 0x2a8   : > { %6370 = vmatprep.subr.bf16.mxu0 %v7906_v19 }
 0x2aa   : > { %2662 = vmatmul.mubr.bf16.gmra.mrb[132].mxu0 %v7007_v22 }
 0x2ab   : > { %6371 = vmatpush3.bf16.msra.mxu0 %v7941_v36  ;;  %2669 = vmatprep.mubr.bf16.mxu0 %v7008_v23 }
 0x2ac   : > { %6372 = vmatprep.subr.bf16.mxu0 %v7908_v24 }
 0x2af   : > { %6373 = vmatpush3.bf16.msra.mxu0 %v7952_v39 }
 0x2b0   : > { %6374 = vmatprep.subr.bf16.mxu0 %v7910_v31 }
 0x2b2   : > { %2670 = vmatmul.mubr.bf16.gmra.mrb[136].mxu0 %v7010_v27 }
 0x2b3   : > { %6375 = vmatpush3.bf16.msra.mxu0 %v7962_v48  ;;  %2677 = vmatprep.mubr.bf16.mxu0 %v7011_v28 }
 0x2b4   : > { %6376 = vmatprep.subr.bf16.mxu0 %v7915_v2 }
 0x2b7   : > { %6377 = vmatpush3.bf16.msra.mxu0 %v7968_v59 }
 0x2b8   : > { %6378 = vmatprep.subr.bf16.mxu0 %v7917_v26 }
 0x2ba   : > { %2678 = vmatmul.mubr.bf16.gmra.mrb[140].mxu0 %v7013_v30 }
 0x2bb   : > { %6379 = vmatpush3.bf16.msra.mxu0 %v7974_v9  ;;  %2889 = vmatprep.mubr.bf16.mxu0 %v7016_v33 }
 0x2bc   : > { %6380 = vmatprep.subr.bf16.mxu0 %v7831_v42 }
 0x2bf   : > { %6381 = vmatpush3.bf16.msra.mxu0 %v7980_v12 }
 0x2c0   : > { %6414 = vmatprep.subr.bf16.mxu0 %v7902_v51  ;;  %v7023_v51 = vld [vmem:[%s9257_s3 + $0x1f4] ss:$8 sps:$4 sm:$0xff]  }
 0x2c2   : > { %2890 = vmatmul.mubr.bf16.vlgmr.msra.gmra.mrb[144].mxu0 %v7014_v34 }
 0x2c3   : > { %6415 = vmatpush3.bf16.msra.mxu0 %v7897_v18  ;;  %2897 = vmatprep.mubr.bf16.mxu0 %v7017_v32  ;;  %v7022_v18 = vld [vmem:[%s9257_s3 + $0x1e0] ss:$8 sps:$4 sm:$0xff]  }
 0x2c4   : > { %6416 = vmatprep.subr.bf16.mxu0 %v7904_v11  ;;  %v7025_v11 = vld [vmem:[%s9257_s3 + $0x1f0] ss:$8 sps:$4 sm:$0xff]  }
 0x2c7   : > { %6417 = vmatpush3.bf16.msra.mxu0 %v7929_v60  ;;  %v7035_v60 = vld [vmem:[%s9257_s3 + $0x234] ss:$8 sps:$4 sm:$0xff]  }
 0x2c8   : > { %6418 = vmatprep.subr.bf16.mxu0 %v7906_v19  ;;  %v7028_v19 = vld [vmem:[%s9257_s3 + $0x204] ss:$8 sps:$4 sm:$0xff]  }
 0x2ca   : > { %2898 = vmatmul.mubr.bf16.gmra.mrb[148].mxu0 %v7019_v37 }
 0x2cb   : > { %6419 = vmatpush3.bf16.msra.mxu0 %v7941_v36  ;;  %2905 = vmatprep.mubr.bf16.mxu0 %v7020_v46 }
 0x2cc   : > { %6420 = vmatprep.subr.bf16.mxu0 %v7908_v24  ;;  %v7026_v24 = vld [vmem:[%s9257_s3 + $0x200] ss:$8 sps:$4 sm:$0xff]  }
 0x2cf   : > { %6421 = vmatpush3.bf16.msra.mxu0 %v7952_v39 }
 0x2d0   : > { %6422 = vmatprep.subr.bf16.mxu0 %v7910_v31  ;;  %v7029_v31 = vld [vmem:[%s9257_s3 + $0x214] ss:$8 sps:$4 sm:$0xff]  }
 0x2d2   : > { %2906 = vmatmul.mubr.bf16.gmra.mrb[152].mxu0 %v7022_v18 }
 0x2d3   : > { %6423 = vmatpush3.bf16.msra.mxu0 %v7962_v48  ;;  %2913 = vmatprep.mubr.bf16.mxu0 %v7023_v51  ;;  %v7037_v48 = vld [vmem:[%s9257_s3 + $0x230] ss:$8 sps:$4 sm:$0xff]  }
 0x2d4   : > { %6424 = vmatprep.subr.bf16.mxu0 %v7915_v2  ;;  %v7031_v2 = vld [vmem:[%s9257_s3 + $0x210] ss:$8 sps:$4 sm:$0xff]  }
 0x2d7   : > { %6425 = vmatpush3.bf16.msra.mxu0 %v7968_v59 }
 0x2d8   : > { %6426 = vmatprep.subr.bf16.mxu0 %v7917_v26  ;;  %v7034_v26 = vld [vmem:[%s9257_s3 + $0x220] ss:$8 sps:$4 sm:$0xff]  }
 0x2da   : > { %2914 = vmatmul.mubr.bf16.gmra.mrb[156].mxu0 %v7025_v11 }
 0x2db   : > { %6427 = vmatpush3.bf16.msra.mxu0 %v7974_v9  ;;  %3125 = vmatprep.mubr.bf16.mxu0 %v7028_v19 }
 0x2dc   : > { %6428 = vmatprep.subr.bf16.mxu0 %v7831_v42  ;;  %v7032_v42 = vld [vmem:[%s9257_s3 + $0x224] ss:$8 sps:$4 sm:$0xff]  }
 0x2df   : > { %6429 = vmatpush3.bf16.msra.mxu0 %v7980_v12 }
 0x2e2   : > { %3126 = vmatmul.mubr.bf16.vlgmr.msra.gmra.mrb[160].mxu0 %v7026_v24 }
 0x2e3   : > { %3133 = vmatprep.mubr.bf16.mxu0 %v7029_v31 }
 0x2ea   : > { %3134 = vmatmul.mubr.bf16.gmra.mrb[164].mxu0 %v7031_v2 }
 0x2eb   : > { %3141 = vmatprep.mubr.bf16.mxu0 %v7032_v42 }
 0x2f2   : > { %3142 = vmatmul.mubr.bf16.gmra.mrb[168].mxu0 %v7034_v26 }
 0x2f3   : > { %3149 = vmatprep.mubr.bf16.mxu0 %v7035_v60 }
 0x2f5   : > { %v6046_v36 = vpop.f32.mrb[0].mxu1  ;;  %v6142_v39 = vpop.f32.mrb[64].mxu0 }
 0x2f6   : > { %v6047_v59 = vpop.f32.mrb[1].mxu1  ;;  %v6143_v9 = vpop.f32.mrb[65].mxu0 }
 0x2f7   : > { %v8324_v12 = vadd.f32 %v6047_v59, %v6046_v36  ;;  %v6049_v52 = vpop.f32.mrb[2].mxu1  ;;  %v8326_v54 = vadd.f32 %v6143_v9, %v6142_v39  ;;  %v6145_v55 = vpop.f32.mrb[66].mxu0 }
 0x2f8   : > { %v6050_v58 = vpop.f32.mrb[3].mxu1  ;;  %v6146_v56 = vpop.f32.mrb[67].mxu0 }
 0x2f9   : > { %v8328_v61 = vadd.f32 %v6050_v58, %v6049_v52  ;;  %v8330_v62 = vadd.f32 %v6146_v56, %v6145_v55 }
 0x2fa   : > { %3150 = vmatmul.mubr.bf16.gmra.mrb[172].mxu0 %v7037_v48 }
 0x2fb   : > { %v1287_v13 = vpack.c.bf16 %v8328_v61, %v8324_v12  ;;  %v1742_v29 = vpack.c.bf16 %v8330_v62, %v8326_v54  ;;  %v7051_v54 = vld [vmem:[%s9258_s4 + $0x68] sm:$0xff]  }
 0x2fd   : > { %v6052_v35 = vpop.f32.mrb[4].mxu1  ;;  %v6148_v50 = vpop.f32.mrb[68].mxu0 }
 0x2fe   : > { %v6053_v53 = vpop.f32.mrb[5].mxu1  ;;  %v6149_v63 = vpop.f32.mrb[69].mxu0 }
 0x2ff   : > { %v8336_v38 = vadd.f32 %v6053_v53, %v6052_v35  ;;  %v6055_v40 = vpop.f32.mrb[6].mxu1  ;;  %v8338_v45 = vadd.f32 %v6149_v63, %v6148_v50  ;;  %v6151_v41 = vpop.f32.mrb[70].mxu0 }
 0x300   : > { %v6056_v43 = vpop.f32.mrb[7].mxu1  ;;  %v6152_v44 = vpop.f32.mrb[71].mxu0 }
 0x301   : > { %v8340_v47 = vadd.f32 %v6056_v43, %v6055_v40  ;;  %v8342_v49 = vadd.f32 %v6152_v44, %v6151_v41 }
 0x303   : > { %v1288_v57 = vpack.c.bf16 %v8340_v47, %v8336_v38  ;;  %v1743_v0 = vpack.c.bf16 %v8342_v49, %v8338_v45  ;;  %v7049_v47 = vld [vmem:[%s9258_s4 + $0x58] sm:$0xff]  }
 0x304   : > { %v7053_v49 = vld [vmem:[%s9258_s4 + $0x78] sm:$0xff]  }
 0x305   : > { %v6058_v1 = vpop.f32.mrb[8].mxu1  ;;  %v6154_v3 = vpop.f32.mrb[72].mxu0 }
 0x306   : > { %v6059_v15 = vpop.f32.mrb[9].mxu1  ;;  %v6155_v4 = vpop.f32.mrb[73].mxu0 }
 0x307   : > { %v8348_v8 = vadd.f32 %v6059_v15, %v6058_v1  ;;  %v6061_v21 = vpop.f32.mrb[10].mxu1  ;;  %v8350_v5 = vadd.f32 %v6155_v4, %v6154_v3  ;;  %v6157_v6 = vpop.f32.mrb[74].mxu0 }
 0x308   : > { %v6062_v17 = vpop.f32.mrb[11].mxu1  ;;  %v6158_v7 = vpop.f32.mrb[75].mxu0 }
 0x309   : > { %v8352_v14 = vadd.f32 %v6062_v17, %v6061_v21  ;;  %v8354_v16 = vadd.f32 %v6158_v7, %v6157_v6  ;;  %v7043_v21 = vld [vmem:[%s9258_s4 + $0x8] sm:$0xff]  }
 0x30b   : > { %v1289_v10 = vpack.c.bf16 %v8352_v14, %v8348_v8  ;;  %v1744_v20 = vpack.c.bf16 %v8354_v16, %v8350_v5 }
 0x30d   : > { %v6064_v22 = vpop.f32.mrb[12].mxu1  ;;  %v6160_v23 = vpop.f32.mrb[76].mxu0 }
 0x30e   : > { %v6065_v27 = vpop.f32.mrb[13].mxu1  ;;  %v6161_v28 = vpop.f32.mrb[77].mxu0 }
 0x30f   : > { %v8360_v30 = vadd.f32 %v6065_v27, %v6064_v22  ;;  %v6067_v33 = vpop.f32.mrb[14].mxu1  ;;  %v8362_v34 = vadd.f32 %v6161_v28, %v6160_v23  ;;  %v6163_v32 = vpop.f32.mrb[78].mxu0 }
 0x310   : > { %v6068_v37 = vpop.f32.mrb[15].mxu1  ;;  %v6164_v46 = vpop.f32.mrb[79].mxu0 }
 0x311   : > { %v8364_v18 = vadd.f32 %v6068_v37, %v6067_v33  ;;  %v8366_v51 = vadd.f32 %v6164_v46, %v6163_v32  ;;  %v7044_v33 = vld [vmem:[%s9258_s4 + $0x10] sm:$0xff]  }
 0x313   : > { %v1290_v11 = vpack.c.bf16 %v8364_v18, %v8360_v30  ;;  %v1745_v19 = vpack.c.bf16 %v8366_v51, %v8362_v34  ;;  %v7055_v34 = vld [vmem:[%s9258_s4 + $0x88] sm:$0xff]  }
 0x315   : > { %v6086_v24 = vpop.f32.mrb[16].mxu1  ;;  %v6190_v31 = vpop.f32.mrb[80].mxu0 }
 0x316   : > { %v6087_v2 = vpop.f32.mrb[17].mxu1  ;;  %v6191_v42 = vpop.f32.mrb[81].mxu0 }
 0x317   : > { %v6088_v26 = vadd.f32 %v6087_v2, %v6086_v24  ;;  %v6089_v60 = vpop.f32.mrb[18].mxu1  ;;  %v8372_v36 = vadd.f32 %v6191_v42, %v6190_v31  ;;  %v6193_v39 = vpop.f32.mrb[82].mxu0 }
 0x318   : > { %v6090_v48 = vpop.f32.mrb[19].mxu1  ;;  %v6194_v59 = vpop.f32.mrb[83].mxu0 }
 0x319   : > { %v6091_v9 = vadd.f32 %v6090_v48, %v6089_v60  ;;  %v8374_v52 = vadd.f32 %v6194_v59, %v6193_v39 }
 0x31b   : > { %v1413_v55 = vpack.c.bf16 %v6091_v9, %v6088_v26  ;;  %v1978_v58 = vpack.c.bf16 %v8374_v52, %v8372_v36  ;;  %v7056_v52 = vld [vmem:[%s9258_s4 + $0x90] sm:$0xff]  }
 0x31d   : > { %v6092_v56 = vpop.f32.mrb[20].mxu1  ;;  %6515 = vmatprep.mubr.msk.bf16.mxu1 %vm9269_vm1, %v1413_v55  ;;  %v6196_v35 = vpop.f32.mrb[84].mxu0  ;;  %vm9285_vm1 = vmmov %vm9272_vm0 }
 0x31e   : > { %v6093_v50 = vpop.f32.mrb[21].mxu1  ;;  %v6197_v53 = vpop.f32.mrb[85].mxu0 }
 0x31f   : > { %v6094_v63 = vadd.f32 %v6093_v50, %v6092_v56  ;;  %v6095_v40 = vpop.f32.mrb[22].mxu1  ;;  %v8379_v41 = vadd.f32 %v6197_v53, %v6196_v35  ;;  %v6199_v43 = vpop.f32.mrb[86].mxu0  ;;  %v7046_v56 = vld [vmem:[%s9258_s4 + $0x40] sm:$0xff]  }
 0x320   : > { %v6096_v44 = vpop.f32.mrb[23].mxu1  ;;  %v6200_v1 = vpop.f32.mrb[87].mxu0 }
 0x321   : > { %v6097_v3 = vadd.f32 %v6096_v44, %v6095_v40  ;;  %v8381_v15 = vadd.f32 %v6200_v1, %v6199_v43 }
 0x323   : > { %v1414_v4 = vpack.c.bf16 %v6097_v3, %v6094_v63  ;;  %v1979_v6 = vpack.c.bf16 %v8381_v15, %v8379_v41  ;;  %v7057_v41 = vld [vmem:[%s9258_s4 + $0x98] sm:$0xff]  }
 0x325   : > { %v6098_v17 = vpop.f32.mrb[24].mxu1  ;;  %6516 = vmatmul.mubr.msk.bf16.vlgmr.msra.gmra.mrb[32].mxu1 %vm9270_vm2, %v1414_v4  ;;  %v6202_v7 = vpop.f32.mrb[88].mxu0  ;;  %vm9286_vm2 = vmmov %vm9272_vm0 }
 0x326   : > { %v6099_v22 = vpop.f32.mrb[25].mxu1  ;;  %6524 = vmatpush3.bf16.msra.mxu1 %v8239_v25  ;;  %v6203_v23 = vpop.f32.mrb[89].mxu0  ;;  %v7045_v25 = vld [vmem:[%s9258_s4 + $0x18] sm:$0xff]  }
 0x327   : > { %v6100_v27 = vadd.f32 %v6099_v22, %v6098_v17  ;;  %v6101_v28 = vpop.f32.mrb[26].mxu1  ;;  %6525 = vmatprep.subr.bf16.mxu1 %v7043_v21  ;;  %v8393_v32 = vadd.f32 %v6203_v23, %v6202_v7  ;;  %v6205_v37 = vpop.f32.mrb[90].mxu0  ;;  %v7047_v23 = vld [vmem:[%s9258_s4 + $0x48] sm:$0xff]  }
 0x328   : > { %v6102_v46 = vpop.f32.mrb[27].mxu1  ;;  %v6206_v24 = vpop.f32.mrb[91].mxu0 }
 0x329   : > { %v6103_v31 = vadd.f32 %v6102_v46, %v6101_v28  ;;  %v8395_v2 = vadd.f32 %v6206_v24, %v6205_v37 }
 0x32a   : > { %6526 = vmatpush3.bf16.msra.mxu1 %v7043_v21 }
 0x32b   : > { %v1415_v42 = vpack.c.bf16 %v6103_v31, %v6100_v27  ;;  %6527 = vmatprep.subr.bf16.mxu1 %v7044_v33  ;;  %v1980_v26 = vpack.c.bf16 %v8395_v2, %v8393_v32  ;;  %v7058_v2 = vld [vmem:[%s9258_s4 + $0xa0] sm:$0xff]  }
 0x32d   : > { %v6104_v60 = vpop.f32.mrb[28].mxu1  ;;  %6519 = vmatprep.mubr.msk.bf16.mxu1 %vm9271_vm4, %v1415_v42  ;;  %v6208_v39 = vpop.f32.mrb[92].mxu0  ;;  %vm9287_vm4 = vmmov %vm9272_vm0 }
 0x32e   : > { %v6105_v48 = vpop.f32.mrb[29].mxu1  ;;  %6528 = vmatpush3.bf16.msra.mxu1 %v7044_v33  ;;  %v6209_v59 = vpop.f32.mrb[93].mxu0 }
 0x32f   : > { %v6106_v9 = vadd.f32 %v6105_v48, %v6104_v60  ;;  %v6107_v55 = vpop.f32.mrb[30].mxu1  ;;  %6529 = vmatprep.subr.bf16.mxu1 %v7045_v25  ;;  %v8406_v35 = vadd.f32 %v6209_v59, %v6208_v39  ;;  %v6211_v50 = vpop.f32.mrb[94].mxu0 }
 0x330   : > { %v6108_v53 = vpop.f32.mrb[31].mxu1  ;;  %v6212_v63 = vpop.f32.mrb[95].mxu0 }
 0x331   : > { %v6109_v40 = vadd.f32 %v6108_v53, %v6107_v55  ;;  %v8408_v43 = vadd.f32 %v6212_v63, %v6211_v50 }
 0x332   : > { %6530 = vmatpush3.bf16.msra.mxu1 %v7045_v25 }
 0x333   : > { %v1416_v44 = vpack.c.bf16 %v6109_v40, %v6106_v9  ;;  %6539 = vmatprep.subr.bf16.mxu1 %v7046_v56  ;;  %v1981_v1 = vpack.c.bf16 %v8408_v43, %v8406_v35  ;;  %v7059_v35 = vld [vmem:[%s9258_s4 + $0xa8] sm:$0xff]  }
 0x335   : > { %6520 = vmatmul.mubr.msk.bf16.gmra.mrb[36].mxu1 %vm9272_vm0, %v1416_v44  ;;  %v6238_v3 = vpop.f32.mrb[96].mxu0 }
 0x336   : > { %6531 = vmatprep.mubr.msk.bf16.mxu1 %vm9273_vm3, %v1287_v13  ;;  %v6239_v4 = vpop.f32.mrb[97].mxu0  ;;  %v7048_v13 = vld [vmem:[%s9258_s4 + $0x50] sm:$0xff]   ;;  %vm9288_vm3 = vmmov %vm9272_vm0 }
 0x337   : > { %v8417_v21 = vadd.f32 %v6239_v4, %v6238_v3  ;;  %v6241_v17 = vpop.f32.mrb[98].mxu0  ;;  %v7060_v3 = vld [vmem:[%s9258_s4 + $0xb0] sm:$0xff]  }
 0x338   : > { %v6242_v7 = vpop.f32.mrb[99].mxu0 }
 0x339   : > { %v8419_v22 = vadd.f32 %v6242_v7, %v6241_v17 }
 0x33b   : > { %v2214_v27 = vpack.c.bf16 %v8419_v22, %v8417_v21  ;;  %v7061_v22 = vld [vmem:[%s9258_s4 + $0xb8] sm:$0xff]  }
 0x33d   : > { %6532 = vmatmul.mubr.msk.bf16.vlgmr.msra.gmra.mrb[32].mxu1 %vm9274_vm5, %v1288_v57  ;;  %v6244_v12 = vpop.f32.mrb[100].mxu0  ;;  %vm9289_vm5 = vmmov %vm9272_vm0 }
 0x33e   : > { %6540 = vmatpush3.bf16.msra.mxu1 %v7046_v56  ;;  %6535 = vmatprep.mubr.msk.bf16.mxu1 %vm9275_vm6, %v1289_v10  ;;  %v6245_v61 = vpop.f32.mrb[101].mxu0  ;;  %v7050_v10 = vld [vmem:[%s9258_s4 + $0x60] sm:$0xff]   ;;  %vm9290_vm6 = vmmov %vm9272_vm0 }
 0x33f   : > { %6541 = vmatprep.subr.bf16.mxu1 %v7047_v23  ;;  %v8437_v28 = vadd.f32 %v6245_v61, %v6244_v12  ;;  %v6247_v33 = vpop.f32.mrb[102].mxu0  ;;  %v7062_v61 = vld [vmem:[%s9258_s4 + $0xc0] sm:$0xff]  }
 0x340   : > { %v6248_v37 = vpop.f32.mrb[103].mxu0 }
 0x341   : > { %v8439_v38 = vadd.f32 %v6248_v37, %v6247_v33 }
 0x342   : > { %6542 = vmatpush3.bf16.msra.mxu1 %v7047_v23 }
 0x343   : > { %6543 = vmatprep.subr.bf16.mxu1 %v7048_v13  ;;  %v2215_v57 = vpack.c.bf16 %v8439_v38, %v8437_v28  ;;  %v7063_v38 = vld [vmem:[%s9258_s4 + $0xc8] sm:$0xff]  }
 0x345   : > { %6536 = vmatmul.mubr.msk.bf16.gmra.mrb[36].mxu1 %vm9276_vm7, %v1290_v11  ;;  %v6250_v8 = vpop.f32.mrb[104].mxu0  ;;  %v7052_v11 = vld [vmem:[%s9258_s4 + $0x70] sm:$0xff]   ;;  %vm9291_vm7 = vmmov %vm9272_vm0 }
 0x346   : > { %6547 = vmatprep.mubr.msk.bf16.mxu1 %vm9277_vm8, %v1742_v29  ;;  %6544 = vmatpush3.bf16.msra.mxu1 %v7048_v13  ;;  %v6251_v14 = vpop.f32.mrb[105].mxu0  ;;  %vm9292_vm8 = vmmov %vm9272_vm0 }
 0x347   : > { %6545 = vmatprep.subr.bf16.mxu1 %v7049_v47  ;;  %v8457_v46 = vadd.f32 %v6251_v14, %v6250_v8  ;;  %v6253_v24 = vpop.f32.mrb[106].mxu0  ;;  %v7064_v14 = vld [vmem:[%s9258_s4 + $0xd0] sm:$0xff]  }
 0x348   : > { %v6254_v31 = vpop.f32.mrb[107].mxu0 }
 0x349   : > { %v8459_v30 = vadd.f32 %v6254_v31, %v6253_v24 }
 0x34a   : > { %6546 = vmatpush3.bf16.msra.mxu1 %v7049_v47 }
 0x34b   : > { %6555 = vmatprep.subr.bf16.mxu1 %v7050_v10  ;;  %v2216_v62 = vpack.c.bf16 %v8459_v30, %v8457_v46 }
 0x34d   : > { %6548 = vmatmul.mubr.msk.bf16.vlgmr.msra.gmra.mrb[32].mxu1 %vm9278_vm9, %v1743_v0  ;;  %v6256_v29 = vpop.f32.mrb[108].mxu0  ;;  %vm9293_vm9 = vmmov %vm9272_vm0 }
 0x34e   : > { %6551 = vmatprep.mubr.msk.bf16.mxu1 %vm9279_vm10, %v1744_v20  ;;  %6556 = vmatpush3.bf16.msra.mxu1 %v7050_v10  ;;  %v6257_v18 = vpop.f32.mrb[109].mxu0  ;;  %v7054_v20 = vld [vmem:[%s9258_s4 + $0x80] sm:$0xff]   ;;  %vm9294_vm10 = vmmov %vm9272_vm0 }
 0x34f   : > { %6557 = vmatprep.subr.bf16.mxu1 %v7051_v54  ;;  %v8477_v42 = vadd.f32 %v6257_v18, %v6256_v29  ;;  %v6259_v25 = vpop.f32.mrb[110].mxu0 }
 0x350   : > { %v6260_v60 = vpop.f32.mrb[111].mxu0 }
 0x351   : > { %v8479_v45 = vadd.f32 %v6260_v60, %v6259_v25 }
 0x352   : > { %6558 = vmatpush3.bf16.msra.mxu1 %v7051_v54  ;;  %v7065_v54 = vld [vmem:[%s9258_s4 + $0xd8] sm:$0xff]  }
 0x353   : > { %6559 = vmatprep.subr.bf16.mxu1 %v7052_v11  ;;  %v2217_v0 = vpack.c.bf16 %v8479_v45, %v8477_v42  ;;  %v7066_v42 = vld [vmem:[%s9258_s4 + $0xe0] sm:$0xff]  }
 0x355   : > { %6552 = vmatmul.mubr.msk.bf16.gmra.mrb[36].mxu1 %vm9280_vm11, %v1745_v19  ;;  %v6286_v5 = vpop.f32.mrb[112].mxu0  ;;  %vm9295_vm11 = vmmov %vm9272_vm0 }
 0x356   : > { %6563 = vmatprep.mubr.msk.bf16.mxu1 %vm9281_vm12, %v1978_v58  ;;  %6560 = vmatpush3.bf16.msra.mxu1 %v7052_v11  ;;  %v6287_v16 = vpop.f32.mrb[113].mxu0  ;;  %vm9296_vm12 = vmmov %vm9272_vm0 }
 0x357   : > { %6561 = vmatprep.subr.bf16.mxu1 %v7053_v49  ;;  %v6288_v39 = vadd.f32 %v6287_v16, %v6286_v5  ;;  %v6289_v48 = vpop.f32.mrb[114].mxu0 }
 0x358   : > { %v6290_v59 = vpop.f32.mrb[115].mxu0 }
 0x359   : > { %v6291_v9 = vadd.f32 %v6290_v59, %v6289_v48 }
 0x35a   : > { %6562 = vmatpush3.bf16.msra.mxu1 %v7053_v49  ;;  %v7067_v49 = vld [vmem:[%s9258_s4 + $0xe8] sm:$0xff]  }
 0x35b   : > { %6571 = vmatprep.subr.bf16.mxu1 %v7054_v20  ;;  %v2450_v51 = vpack.c.bf16 %v6291_v9, %v6288_v39  ;;  %v7068_v39 = vld [vmem:[%s9258_s4 + $0xf0] sm:$0xff]  }
 0x35d   : > { %6564 = vmatmul.mubr.msk.bf16.vlgmr.msra.gmra.mrb[32].mxu1 %vm9282_vm13, %v1979_v6  ;;  %v6292_v19 = vpop.f32.mrb[116].mxu0  ;;  %vm9297_vm13 = vmmov %vm9272_vm0 }
 0x35e   : > { %6572 = vmatpush3.bf16.msra.mxu1 %v7054_v20  ;;  %6567 = vmatprep.mubr.msk.bf16.mxu1 %vm9283_vm14, %v1980_v26  ;;  %v6293_v36 = vpop.f32.mrb[117].mxu0  ;;  %vm9298_vm14 = vmmov %vm9272_vm0 }
 0x35f   : > { %6573 = vmatprep.subr.bf16.mxu1 %v7055_v34  ;;  %v6294_v58 = vadd.f32 %v6293_v36, %v6292_v19  ;;  %v6295_v55 = vpop.f32.mrb[118].mxu0 }
 0x360   : > { %v6296_v56 = vpop.f32.mrb[119].mxu0 }
 0x361   : > { %v6297_v50 = vadd.f32 %v6296_v56, %v6295_v55 }
 0x362   : > { %6574 = vmatpush3.bf16.msra.mxu1 %v7055_v34  ;;  %v7069_v34 = vld [vmem:[%s9258_s4 + $0xf8] sm:$0xff]  }
 0x363   : > { %6575 = vmatprep.subr.bf16.mxu1 %v7056_v52  ;;  %v2451_v15 = vpack.c.bf16 %v6297_v50, %v6294_v58  ;;  %v7070_v58 = vld [vmem:[%s9258_s4 + $0x100] sm:$0xff]  }
 0x365   : > { %6568 = vmatmul.mubr.msk.bf16.gmra.mrb[36].mxu1 %vm9284_vm15, %v1981_v1  ;;  %v6298_v6 = vpop.f32.mrb[120].mxu0  ;;  %vm9299_vm15 = vmmov %vm9272_vm0 }
 0x366   : > { %6576 = vmatpush3.bf16.msra.mxu1 %v7056_v52  ;;  %6579 = vmatprep.mubr.msk.bf16.mxu1 %vm9285_vm1, %v2214_v27  ;;  %v6299_v32 = vpop.f32.mrb[121].mxu0  ;;  %vm9300_vm1 = vmmov %vm9272_vm0 }
 0x367   : > { %6577 = vmatprep.subr.bf16.mxu1 %v7057_v41  ;;  %v6300_v26 = vadd.f32 %v6299_v32, %v6298_v6  ;;  %v6301_v53 = vpop.f32.mrb[122].mxu0 }
 0x368   : > { %v6302_v63 = vpop.f32.mrb[123].mxu0 }
 0x369   : > { %v6303_v40 = vadd.f32 %v6302_v63, %v6301_v53  ;;  %v7071_v63 = vld [vmem:[%s9258_s4 + $0x108] sm:$0xff]  }
 0x36a   : > { %6578 = vmatpush3.bf16.msra.mxu1 %v7057_v41 }
 0x36b   : > { %6587 = vmatprep.subr.bf16.mxu1 %v7058_v2  ;;  %v2452_v43 = vpack.c.bf16 %v6303_v40, %v6300_v26 }
 0x36d   : > { %6580 = vmatmul.mubr.msk.bf16.vlgmr.msra.gmra.mrb[32].mxu1 %vm9286_vm2, %v2215_v57  ;;  %v6304_v44 = vpop.f32.mrb[124].mxu0  ;;  %vm9301_vm2 = vmmov %vm9272_vm0 }
 0x36e   : > { %6588 = vmatpush3.bf16.msra.mxu1 %v7058_v2  ;;  %6583 = vmatprep.mubr.msk.bf16.mxu1 %vm9287_vm4, %v2216_v62  ;;  %v6305_v1 = vpop.f32.mrb[125].mxu0  ;;  %vm9302_vm4 = vmmov %vm9272_vm0 }
 0x36f   : > { %6589 = vmatprep.subr.bf16.mxu1 %v7059_v35  ;;  %v6306_v4 = vadd.f32 %v6305_v1, %v6304_v44  ;;  %v6307_v21 = vpop.f32.mrb[126].mxu0  ;;  %v7072_v1 = vld [vmem:[%s9258_s4 + $0x110] sm:$0xff]  }
 0x370   : > { %v6308_v17 = vpop.f32.mrb[127].mxu0 }
 0x371   : > { %v6309_v7 = vadd.f32 %v6308_v17, %v6307_v21  ;;  %v7073_v17 = vld [vmem:[%s9258_s4 + $0x118] sm:$0xff]  }
 0x372   : > { %6590 = vmatpush3.bf16.msra.mxu1 %v7059_v35 }
 0x373   : > { %6591 = vmatprep.subr.bf16.mxu1 %v7060_v3  ;;  %v2453_v23 = vpack.c.bf16 %v6309_v7, %v6306_v4 }
 0x375   : > { %6584 = vmatmul.mubr.msk.bf16.gmra.mrb[36].mxu1 %vm9272_vm0, %v2217_v0  ;;  %v6334_v27 = vpop.f32.mrb[128].mxu0 }
 0x376   : > { %6592 = vmatpush3.bf16.msra.mxu1 %v7060_v3  ;;  %6595 = vmatprep.mubr.msk.bf16.mxu1 %vm9288_vm3, %v2450_v51  ;;  %v6335_v12 = vpop.f32.mrb[129].mxu0  ;;  %vm7316_vm3 = vmmov 0  }
 0x377   : > { %6593 = vmatprep.subr.bf16.mxu1 %v7061_v22  ;;  %v6336_v13 = vadd.f32 %v6335_v12, %v6334_v27  ;;  %v6337_v28 = vpop.f32.mrb[130].mxu0 }
 0x378   : > { %v6338_v33 = vpop.f32.mrb[131].mxu0 }
 0x379   : > { %v6339_v37 = vadd.f32 %v6338_v33, %v6337_v28 }
 0x37a   : > { %6594 = vmatpush3.bf16.msra.mxu1 %v7061_v22 }
 0x37b   : > { %6603 = vmatprep.subr.bf16.mxu1 %v7062_v61  ;;  %v2686_v47 = vpack.c.bf16 %v6339_v37, %v6336_v13 }
 0x37d   : > { %6596 = vmatmul.mubr.msk.bf16.vlgmr.msra.gmra.mrb[32].mxu1 %vm9289_vm5, %v2451_v15  ;;  %v6340_v57 = vpop.f32.mrb[132].mxu0 }
 0x37e   : > { %6604 = vmatpush3.bf16.msra.mxu1 %v7062_v61  ;;  %6599 = vmatprep.mubr.msk.bf16.mxu1 %vm9290_vm6, %v2452_v43  ;;  %v6341_v8 = vpop.f32.mrb[133].mxu0 }
 0x37f   : > { %6605 = vmatprep.subr.bf16.mxu1 %v7063_v38  ;;  %v6342_v10 = vadd.f32 %v6341_v8, %v6340_v57  ;;  %v6343_v46 = vpop.f32.mrb[134].mxu0 }
 0x380   : > { %v6344_v24 = vpop.f32.mrb[135].mxu0 }
 0x381   : > { %v6345_v31 = vadd.f32 %v6344_v24, %v6343_v46 }
 0x382   : > { %6606 = vmatpush3.bf16.msra.mxu1 %v7063_v38 }
 0x383   : > { %6607 = vmatprep.subr.bf16.mxu1 %v7064_v14  ;;  %v2687_v30 = vpack.c.bf16 %v6345_v31, %v6342_v10 }
 0x385   : > { %6600 = vmatmul.mubr.msk.bf16.gmra.mrb[36].mxu1 %vm9291_vm7, %v2453_v23  ;;  %v6346_v62 = vpop.f32.mrb[136].mxu0 }
 0x386   : > { %6608 = vmatpush3.bf16.msra.mxu1 %v7064_v14  ;;  %v6347_v29 = vpop.f32.mrb[137].mxu0  ;;  %6611 = vmatprep.mubr.msk.bf16.mxu1 %vm9292_vm8, %v2686_v47 }
 0x387   : > { %6609 = vmatprep.subr.bf16.mxu1 %v7065_v54  ;;  %v6348_v18 = vadd.f32 %v6347_v29, %v6346_v62  ;;  %v6349_v11 = vpop.f32.mrb[138].mxu0 }
 0x388   : > { %v6350_v25 = vpop.f32.mrb[139].mxu0 }
 0x389   : > { %v6351_v60 = vadd.f32 %v6350_v25, %v6349_v11 }
 0x38a   : > { %6610 = vmatpush3.bf16.msra.mxu1 %v7065_v54 }
 0x38b   : > { %v2688_v45 = vpack.c.bf16 %v6351_v60, %v6348_v18  ;;  %6619 = vmatprep.subr.bf16.mxu1 %v7066_v42 }
 0x38d   : > { %v6352_v0 = vpop.f32.mrb[140].mxu0  ;;  %6612 = vmatmul.mubr.msk.bf16.vlgmr.msra.gmra.mrb[32].mxu1 %vm9293_vm9, %v2687_v30 }
 0x38e   : > { %v6353_v5 = vpop.f32.mrb[141].mxu0  ;;  %6620 = vmatpush3.bf16.msra.mxu1 %v7066_v42  ;;  %6615 = vmatprep.mubr.msk.bf16.mxu1 %vm9294_vm10, %v2688_v45 }
 0x38f   : > { %v6354_v16 = vadd.f32 %v6353_v5, %v6352_v0  ;;  %v6355_v20 = vpop.f32.mrb[142].mxu0  ;;  %6621 = vmatprep.subr.bf16.mxu1 %v7067_v49 }
 0x390   : > { %v6356_v48 = vpop.f32.mrb[143].mxu0 }
 0x391   : > { %v6357_v59 = vadd.f32 %v6356_v48, %v6355_v20  ;;  %v7315_v48 = vmov 0.0  }
 0x392   : > { %6622 = vmatpush3.bf16.msra.mxu1 %v7067_v49  ;;  %6651 = vmatprep.subr.bf16.mxu0 %v7315_v48 }
 0x393   : > { %v2689_v9 = vpack.c.bf16 %v6357_v59, %v6354_v16  ;;  %6623 = vmatprep.subr.bf16.mxu1 %v7068_v39  ;;  %6659 = vmatprep.mubr.msk.bf16.mxu0 %vm7316_vm3, %v7315_v48 }
 0x395   : > { %v6382_v51 = vpop.f32.mrb[144].mxu0  ;;  %6616 = vmatmul.mubr.msk.bf16.gmra.mrb[36].mxu1 %vm9295_vm11, %v2689_v9  ;;  %v5607_v9 = vld [vmem:[%s9259_s5] ss:$0 sm:$0xff] }
 0x396   : > { %v6383_v19 = vpop.f32.mrb[145].mxu0  ;;  %6624 = vmatpush3.bf16.msra.mxu1 %v7068_v39 }
 0x397   : > { %v6384_v36 = vadd.f32 %v6383_v19, %v6382_v51  ;;  %v6385_v52 = vpop.f32.mrb[146].mxu0  ;;  %6625 = vmatprep.subr.bf16.mxu1 %v7069_v34 }
 0x398   : > { %v6386_v55 = vpop.f32.mrb[147].mxu0 }
 0x399   : > { %v6387_v56 = vadd.f32 %v6386_v55, %v6385_v52 }
 0x39a   : > { %6626 = vmatpush3.bf16.msra.mxu1 %v7069_v34 }
 0x39b   : > { %v2922_v50 = vpack.c.bf16 %v6387_v56, %v6384_v36  ;;  %6635 = vmatprep.subr.bf16.mxu1 %v7070_v58 }
 0x39d   : > { %v6388_v41 = vpop.f32.mrb[148].mxu0  ;;  %6627 = vmatprep.mubr.msk.bf16.mxu1 %vm9296_vm12, %v2922_v50 }
 0x39e   : > { %v6389_v15 = vpop.f32.mrb[149].mxu0 }
 0x39f   : > { %v6390_v6 = vadd.f32 %v6389_v15, %v6388_v41  ;;  %v6391_v32 = vpop.f32.mrb[150].mxu0 }
 0x3a0   : > { %v6392_v2 = vpop.f32.mrb[151].mxu0 }
 0x3a1   : > { %v6393_v26 = vadd.f32 %v6392_v2, %v6391_v32 }
 0x3a3   : > { %v2923_v53 = vpack.c.bf16 %v6393_v26, %v6390_v6 }
 0x3a5   : > { %v6394_v40 = vpop.f32.mrb[152].mxu0  ;;  %6628 = vmatmul.mubr.msk.bf16.vlgmr.msra.gmra.mrb[32].mxu1 %vm9297_vm13, %v2923_v53  ;;  %vm9303_vm13 = vmmov %vm9272_vm0 }
 0x3a6   : > { %v6395_v35 = vpop.f32.mrb[153].mxu0  ;;  %6636 = vmatpush3.bf16.msra.mxu1 %v7070_v58 }
 0x3a7   : > { %v6396_v43 = vadd.f32 %v6395_v35, %v6394_v40  ;;  %v6397_v44 = vpop.f32.mrb[154].mxu0  ;;  %6637 = vmatprep.subr.bf16.mxu1 %v7071_v63 }
 0x3a8   : > { %v6398_v3 = vpop.f32.mrb[155].mxu0 }
 0x3a9   : > { %v6399_v4 = vadd.f32 %v6398_v3, %v6397_v44 }
 0x3aa   : > { %6638 = vmatpush3.bf16.msra.mxu1 %v7071_v63 }
 0x3ab   : > { %v2924_v21 = vpack.c.bf16 %v6399_v4, %v6396_v43  ;;  %6639 = vmatprep.subr.bf16.mxu1 %v7072_v1 }
 0x3ad   : > { %v6400_v7 = vpop.f32.mrb[156].mxu0  ;;  %6631 = vmatprep.mubr.msk.bf16.mxu1 %vm9298_vm14, %v2924_v21  ;;  %vm9304_vm14 = vmmov %vm9272_vm0 }
 0x3ae   : > { %v6401_v22 = vpop.f32.mrb[157].mxu0  ;;  %6640 = vmatpush3.bf16.msra.mxu1 %v7072_v1 }
 0x3af   : > { %v6402_v23 = vadd.f32 %v6401_v22, %v6400_v7  ;;  %v6403_v27 = vpop.f32.mrb[158].mxu0  ;;  %6641 = vmatprep.subr.bf16.mxu1 %v7073_v17 }
 0x3b0   : > { %v6404_v12 = vpop.f32.mrb[159].mxu0 }
 0x3b1   : > { %v6405_v61 = vadd.f32 %v6404_v12, %v6403_v27 }
 0x3b2   : > { %6642 = vmatpush3.bf16.msra.mxu1 %v7073_v17 }
 0x3b3   : > { %v2925_v13 = vpack.c.bf16 %v6405_v61, %v6402_v23 }
 0x3b5   : > { %v6430_v28 = vpop.f32.mrb[160].mxu0  ;;  %6632 = vmatmul.mubr.msk.bf16.gmra.mrb[36].mxu1 %vm9299_vm15, %v2925_v13  ;;  %vm9305_vm15 = vmmov %vm9272_vm0 }
 0x3b6   : > { %v6431_v33 = vpop.f32.mrb[161].mxu0 }
 0x3b7   : > { %v6432_v37 = vadd.f32 %v6431_v33, %v6430_v28  ;;  %v6433_v38 = vpop.f32.mrb[162].mxu0 }
 0x3b8   : > { %v6434_v47 = vpop.f32.mrb[163].mxu0 }
 0x3b9   : > { %v6435_v57 = vadd.f32 %v6434_v47, %v6433_v38 }
 0x3bb   : > { %v3158_v8 = vpack.c.bf16 %v6435_v57, %v6432_v37 }
 0x3bd   : > { %v6436_v14 = vpop.f32.mrb[164].mxu0  ;;  %6643 = vmatprep.mubr.msk.bf16.mxu1 %vm9300_vm1, %v3158_v8  ;;  %vm9306_vm1 = vmmov %vm9272_vm0 }
 0x3be   : > { %v6437_v10 = vpop.f32.mrb[165].mxu0 }
 0x3bf   : > { %v6438_v46 = vadd.f32 %v6437_v10, %v6436_v14  ;;  %v6439_v24 = vpop.f32.mrb[166].mxu0 }
 0x3c0   : > { %v6440_v31 = vpop.f32.mrb[167].mxu0 }
 0x3c1   : > { %v6441_v30 = vadd.f32 %v6440_v31, %v6439_v24 }
 0x3c3   : > { %v3159_v54 = vpack.c.bf16 %v6441_v30, %v6438_v46 }
 0x3c5   : > { %6644 = vmatmul.mubr.msk.bf16.vlgmr.msra.gmra.mrb[32].mxu1 %vm9301_vm2, %v3159_v54  ;;  %v6442_v62 = vpop.f32.mrb[168].mxu0  ;;  %vm9307_vm2 = vmmov %vm9272_vm0 }
 0x3c6   : > { %v6443_v29 = vpop.f32.mrb[169].mxu0 }
 0x3c7   : > { %v6444_v18 = vadd.f32 %v6443_v29, %v6442_v62  ;;  %v6445_v11 = vpop.f32.mrb[170].mxu0 }
 0x3c8   : > { %v6446_v42 = vpop.f32.mrb[171].mxu0 }
 0x3c9   : > { %v6447_v25 = vadd.f32 %v6446_v42, %v6445_v11 }
 0x3cb   : > { %v3160_v60 = vpack.c.bf16 %v6447_v25, %v6444_v18 }
 0x3cd   : > { %v6448_v45 = vpop.f32.mrb[172].mxu0  ;;  %6647 = vmatprep.mubr.msk.bf16.mxu1 %vm9302_vm4, %v3160_v60  ;;  %vm9308_vm4 = vmmov %vm9272_vm0 }
 0x3ce   : > { %v6449_v49 = vpop.f32.mrb[173].mxu0 }
 0x3cf   : > { %v6450_v0 = vadd.f32 %v6449_v49, %v6448_v45  ;;  %v6451_v5 = vpop.f32.mrb[174].mxu0 }
 0x3d0   : > { %v6452_v16 = vpop.f32.mrb[175].mxu0 }
 0x3d1   : > { %v6453_v20 = vadd.f32 %v6452_v16, %v6451_v5 }
 0x3d3   : > { %v3161_v39 = vpack.c.bf16 %v6453_v20, %v6450_v0 }
 0x3d5   : > { %6648 = vmatmul.mubr.msk.bf16.gmra.mrb[36].mxu1 %vm9272_vm0, %v3161_v39 }
 0x498   : > { %v6645_v59 = vpop.f32.mrb[32].mxu1 }
 0x499   : > { %v3241_v34 = vpop.f32.mrb[33].mxu1  ;;  %v3289_v58 = vadd.f32 %v6645_v59, %v5607_v9 }
 0x49a   : > { %v6646_v51 = vpop.f32.mrb[34].mxu1  ;;  %v3287_v36 = vadd.f32 %v5607_v9, %v3241_v34 }
 0x49b   : > { %v3244_v19 = vpop.f32.mrb[35].mxu1  ;;  %v3290_v56 = vadd.f32 %v6646_v51, %v5607_v9 }
 0x49c   : > { %v3288_v52 = vadd.f32 %v5607_v9, %v3244_v19 }
 0x49e   : > { %v3295_v55 = vadd.f32 %v3288_v52, %v3287_v36 }
 0x4a0   : > { %v3296_v50 = vadd.f32 %v3295_v55, %v3289_v58 }
 0x4a2   : > { %v3297_v41 = vadd.f32 %v3296_v50, %v3290_v56 }
 0x4a8   : > { %v6649_v15 = vpop.f32.mrb[36].mxu1 }
 0x4a9   : > { %v3257_v6 = vpop.f32.mrb[37].mxu1  ;;  %v3293_v40 = vadd.f32 %v6649_v15, %v5607_v9 }
 0x4aa   : > { %v3291_v32 = vadd.f32 %v5607_v9, %v3257_v6  ;;  %v6650_v2 = vpop.f32.mrb[38].mxu1 }
 0x4ab   : > { %v3260_v26 = vpop.f32.mrb[39].mxu1  ;;  %v3294_v43 = vadd.f32 %v6650_v2, %v5607_v9 }
 0x4ac   : > { %v3298_v53 = vadd.f32 %v3297_v41, %v3291_v32  ;;  %v3292_v63 = vadd.f32 %v5607_v9, %v3260_v26 }
 0x4ae   : > { %v3299_v35 = vadd.f32 %v3298_v53, %v3292_v63 }
 0x4b0   : > { %v3300_v44 = vadd.f32 %v3299_v35, %v3293_v40 }
 0x4b2   : > { %v3301_v1 = vadd.f32 %v3300_v44, %v3294_v43 }
 0x4b4   : > { %v3302_v3 = vrot.slane %v3301_v1, 4 }
 0x4b6   : > { %v3303_v4 = vadd.f32 %v3302_v3, %v3301_v1 }
 0x4b8   : > { %v3304_v21 = vrot.slane %v3303_v4, 2 }
 0x4ba   : > { %v3305_v17 = vadd.f32 %v3304_v21, %v3303_v4 }
 0x4bc   : > { %v3306_v7 = vrot.slane %v3305_v17, 1 }
 0x4be   : > { %v3307_v22 = vadd.f32 %v3306_v7, %v3305_v17  ;;  %v7074_v7 = vld [vmem:[%s9260_s6] sm:$0xff]  }
 0x4c0   : > { %v3309_v23 = vmul.f32 0.015625, %v3307_v22  ;;  %v7082_v22 = vld [vmem:[%s9261_s7 + $0x80] ss:$8 sps:$4 sm:$0xff]  }
 0x4c2   : > { %v3310_v27 = vsub.f32 %v3287_v36, %v3309_v23  ;;  %v3311_v12 = vsub.f32 %v3288_v52, %v3309_v23  ;;  %v3312_v61 = vsub.f32 %v3289_v58, %v3309_v23  ;;  %v3313_v13 = vsub.f32 %v3290_v56, %v3309_v23 }
 0x4c3   : > { %v3314_v28 = vsub.f32 %v3291_v32, %v3309_v23  ;;  %v3315_v33 = vsub.f32 %v3292_v63, %v3309_v23  ;;  %v3316_v37 = vsub.f32 %v3293_v40, %v3309_v23  ;;  %v3317_v38 = vsub.f32 %v3294_v43, %v3309_v23  ;;  %v7084_v23 = vld [vmem:[%s9261_s7 + $0x84] ss:$8 sps:$4 sm:$0xff]  }
 0x4c4   : > { %v3318_v47 = vmul.f32 %v3310_v27, %v3310_v27  ;;  %v3319_v57 = vmul.f32 %v3311_v12, %v3311_v12  ;;  %v3320_v8 = vmul.f32 %v3312_v61, %v3312_v61  ;;  %v3321_v10 = vmul.f32 %v3313_v13, %v3313_v13  ;;  %3596 = vmatprep.subr.bf16.mxu1 %v7084_v23  ;;  %v7138_v23 = vld [vmem:[%s9261_s7 + $0x124] ss:$8 sps:$4 sm:$0xff]  }
 0x4c5   : > { %v3322_v24 = vmul.f32 %v3314_v28, %v3314_v28  ;;  %v3323_v30 = vmul.f32 %v3315_v33, %v3315_v33  ;;  %v3324_v62 = vmul.f32 %v3316_v37, %v3316_v37  ;;  %v3325_v18 = vmul.f32 %v3317_v38, %v3317_v38  ;;  %3597 = vmatpush1.bf16.msra.mxu1 %v7082_v22  ;;  %v7133_v22 = vld [vmem:[%s9261_s7 + $0x110] ss:$8 sps:$4 sm:$0xff]  }
 0x4c6   : > { %v3326_v14 = vadd.f32 %v3319_v57, %v3318_v47  ;;  %v7094_v47 = vld [vmem:[%s9261_s7 + $0xc0] ss:$8 sps:$4 sm:$0xff]   ;;  %v7099_v57 = vld [vmem:[%s9261_s7 + $0xd4] ss:$8 sps:$4 sm:$0xff]  }
 0x4c8   : > { %v3327_v46 = vadd.f32 %v3326_v14, %v3320_v8  ;;  %v7097_v8 = vld [vmem:[%s9261_s7 + $0xd0] ss:$8 sps:$4 sm:$0xff]  }
 0x4c9   : > { %v7076_v14 = vld [vmem:[%s9260_s6 + $0x10] sm:$0xff]  }
 0x4ca   : > { %v3328_v31 = vadd.f32 %v3327_v46, %v3321_v10  ;;  %v7077_v10 = vld [vmem:[%s9260_s6 + $0x18] sm:$0xff]   ;;  %v7078_v46 = vld [vmem:[%s9260_s6 + $0x20] sm:$0xff]  }
 0x4cc   : > { %v3329_v54 = vadd.f32 %v3328_v31, %v3322_v24  ;;  %v7079_v24 = vld [vmem:[%s9260_s6 + $0x28] sm:$0xff]  }
 0x4cd   : > { %v7100_v31 = vld [vmem:[%s9261_s7 + $0xe0] ss:$8 sps:$4 sm:$0xff]  }
 0x4ce   : > { %v3330_v29 = vadd.f32 %v3329_v54, %v3323_v30  ;;  %v7102_v30 = vld [vmem:[%s9261_s7 + $0xe4] ss:$8 sps:$4 sm:$0xff]   ;;  %v7080_v54 = vld [vmem:[%s9260_s6 + $0x30] sm:$0xff]  }
 0x4d0   : > { %v3331_v11 = vadd.f32 %v3330_v29, %v3324_v62  ;;  %v7105_v62 = vld [vmem:[%s9261_s7 + $0xf4] ss:$8 sps:$4 sm:$0xff]   ;;  %v7103_v29 = vld [vmem:[%s9261_s7 + $0xf0] ss:$8 sps:$4 sm:$0xff]  }
 0x4d2   : > { %v3332_v42 = vadd.f32 %v3331_v11, %v3325_v18  ;;  %v7108_v18 = vld [vmem:[%s9261_s7 + $0x4] ss:$8 sps:$4 sm:$0xff]   ;;  %v7317_v11 = vmov 0  }
 0x4d3   : > { %3628 = vmatprep.mubr.bf16.mxu1 %v7317_v11 }
 0x4d4   : > { %v3333_v25 = vrot.slane %v3332_v42, 4 }
 0x4d6   : > { %v3334_v60 = vadd.f32 %v3333_v25, %v3332_v42  ;;  %v7081_v42 = vld [vmem:[%s9260_s6 + $0x38] sm:$0xff]   ;;  %v7139_v25 = vld [vmem:[%s9260_s6 + $0x40] sm:$0xff]  }
 0x4d8   : > { %v3335_v45 = vrot.slane %v3334_v60, 2 }
 0x4da   : > { %v3336_v49 = vadd.f32 %v3335_v45, %v3334_v60 }
 0x4dc   : > { %v3337_v0 = vrot.slane %v3336_v49, 1 }
 0x4de   : > { %v3338_v5 = vadd.f32 %v3337_v0, %v3336_v49 }
 0x4e0   : > { %v3339_v16 = vmul.f32 0.015625, %v3338_v5 }
 0x4e2   : > { %v3340_v20 = vadd.f32 1e-05, %v3339_v16 }
 0x4e4   : > { %7301 = vrsqrt.f32 %v3340_v20 }
 0x4ee   : > { %v7302_v39 = vpop.eup %7301 }
 0x4ef   : > { %v3342_v59 = vmul.f32 %v7302_v39, %v3310_v27  ;;  %v3343_v9 = vmul.f32 %v7302_v39, %v3311_v12  ;;  %v3344_v34 = vmul.f32 %v7302_v39, %v3312_v61  ;;  %v3345_v51 = vmul.f32 %v7302_v39, %v3313_v13  ;;  %v7087_v27 = vld [vmem:[%s9261_s7 + $0x94] ss:$8 sps:$4 sm:$0xff]   ;;  %v7085_v12 = vld [vmem:[%s9261_s7 + $0x90] ss:$8 sps:$4 sm:$0xff]   ;;  %v7090_v61 = vld [vmem:[%s9261_s7 + $0xa4] ss:$8 sps:$4 sm:$0xff]  }
 0x4f0   : > { %v3346_v19 = vmul.f32 %v7302_v39, %v3314_v28  ;;  %v3347_v36 = vmul.f32 %v7302_v39, %v3315_v33  ;;  %v3348_v52 = vmul.f32 %v7302_v39, %v3316_v37  ;;  %v3349_v58 = vmul.f32 %v7302_v39, %v3317_v38  ;;  %3598 = vmatprep.subr.bf16.mxu1 %v7087_v27  ;;  %v7088_v13 = vld [vmem:[%s9261_s7 + $0xa0] ss:$8 sps:$4 sm:$0xff]   ;;  %v7093_v28 = vld [vmem:[%s9261_s7 + $0xb4] ss:$8 sps:$4 sm:$0xff]   ;;  %v7091_v33 = vld [vmem:[%s9261_s7 + $0xb0] ss:$8 sps:$4 sm:$0xff]  }
 0x4f1   : > { %vm3350_vm5 = vcmp.ge.f32.partialorder %v3342_v59, 0.0  ;;  %vm3351_vm6 = vcmp.ge.f32.partialorder %v3343_v9, 0.0  ;;  %vm3352_vm7 = vcmp.ge.f32.partialorder %v3344_v34, 0.0  ;;  %vm3353_vm8 = vcmp.ge.f32.partialorder %v3345_v51, 0.0  ;;  %3599 = vmatpush1.bf16.msra.mxu1 %v7085_v12  ;;  %v7096_v37 = vld [vmem:[%s9261_s7 + $0xc4] ss:$8 sps:$4 sm:$0xff]  }
 0x4f2   : > { %vm3354_vm9 = vcmp.ge.f32.partialorder %v3346_v19, 0.0  ;;  %vm3355_vm10 = vcmp.ge.f32.partialorder %v3347_v36, 0.0  ;;  %vm3356_vm11 = vcmp.ge.f32.partialorder %v3348_v52, 0.0  ;;  %vm3357_vm12 = vcmp.ge.f32.partialorder %v3349_v58, 0.0  ;;  %3600 = vmatprep.subr.bf16.mxu1 %v7090_v61  ;;  %v7075_v38 = vld [vmem:[%s9260_s6 + $0x8] sm:$0xff]  }
 0x4f3   : > { %v3358_v55 = vmul.f32 0.2, %v3342_v59  ;;  %v3359_v56 = vmul.f32 0.2, %v3343_v9  ;;  %v3360_v50 = vmul.f32 0.2, %v3344_v34 }
 0x4f4   : > { %v3361_v41 = vmul.f32 0.2, %v3345_v51  ;;  %v3362_v15 = vmul.f32 0.2, %v3346_v19  ;;  %v3363_v6 = vmul.f32 0.2, %v3347_v36 }
 0x4f5   : > { %v3364_v32 = vmul.f32 0.2, %v3348_v52  ;;  %v3365_v2 = vmul.f32 0.2, %v3349_v58  ;;  %v3366_v26 = vsel %vm3350_vm5, %v3342_v59, %v3358_v55  ;;  %v3367_v53 = vsel %vm3351_vm6, %v3343_v9, %v3359_v56  ;;  %3601 = vmatpush1.bf16.msra.mxu1 %v7088_v13  ;;  %vm9309_vm5 = vmmov %vm9272_vm0  ;;  %v7111_v9 = vld [vmem:[%s9261_s7 + $0x14] ss:$8 sps:$4 sm:$0xff]  }
 0x4f6   : > { %v3368_v63 = vsel %vm3352_vm7, %v3344_v34, %v3360_v50  ;;  %v3369_v40 = vsel %vm3353_vm8, %v3345_v51, %v3361_v41  ;;  %v3370_v35 = vsel %vm3354_vm9, %v3346_v19, %v3362_v15  ;;  %v3371_v43 = vsel %vm3355_vm10, %v3347_v36, %v3363_v6  ;;  %3602 = vmatprep.subr.bf16.mxu1 %v7093_v28  ;;  %vm9310_vm6 = vmmov %vm9272_vm0  ;;  %v7109_v51 = vld [vmem:[%s9261_s7 + $0x10] ss:$8 sps:$4 sm:$0xff]   ;;  %v7114_v19 = vld [vmem:[%s9261_s7 + $0x24] ss:$8 sps:$4 sm:$0xff]  }
 0x4f7   : > { %v3372_v44 = vsel %vm3356_vm11, %v3348_v52, %v3364_v32  ;;  %v3373_v1 = vsel %vm3357_vm12, %v3349_v58, %v3365_v2  ;;  %v8609_v3 = vpack.c.bf16 %v3367_v53, %v3366_v26  ;;  %v8611_v4 = vpack.c.bf16 %v3369_v40, %v3368_v63  ;;  %v7112_v36 = vld [vmem:[%s9261_s7 + $0x20] ss:$8 sps:$4 sm:$0xff]   ;;  %v7117_v52 = vld [vmem:[%s9261_s7 + $0x34] ss:$8 sps:$4 sm:$0xff]   ;;  %v7115_v58 = vld [vmem:[%s9261_s7 + $0x30] ss:$8 sps:$4 sm:$0xff]  }
 0x4f8   : > { %v8613_v21 = vpack.c.bf16 %v3371_v43, %v3370_v35  ;;  %v8615_v17 = vpack.c.bf16 %v3373_v1, %v3372_v44  ;;  %v7120_v55 = vld [vmem:[%s9261_s7 + $0x44] ss:$8 sps:$4 sm:$0xff]   ;;  %v7118_v41 = vld [vmem:[%s9261_s7 + $0x40] ss:$8 sps:$4 sm:$0xff]   ;;  %v7123_v6 = vld [vmem:[%s9261_s7 + $0x54] ss:$8 sps:$4 sm:$0xff]  }
 0x4f9   : > { %6652 = vmatpush3.bf16.msra.mxu0 %v8609_v3  ;;  %3603 = vmatpush1.bf16.msra.mxu1 %v7091_v33  ;;  %v7121_v26 = vld [vmem:[%s9261_s7 + $0x50] ss:$8 sps:$4 sm:$0xff]   ;;  %v7126_v53 = vld [vmem:[%s9261_s7 + $0x64] ss:$8 sps:$4 sm:$0xff]   ;;  %v7124_v63 = vld [vmem:[%s9261_s7 + $0x60] ss:$8 sps:$4 sm:$0xff]  }
 0x4fa   : > { %6653 = vmatprep.subr.bf16.mxu0 %v7315_v48  ;;  %3604 = vmatprep.subr.bf16.mxu1 %v7096_v37  ;;  %v7129_v40 = vld [vmem:[%s9261_s7 + $0x74] ss:$8 sps:$4 sm:$0xff]   ;;  %v7127_v35 = vld [vmem:[%s9261_s7 + $0x70] ss:$8 sps:$4 sm:$0xff]   ;;  %v7132_v43 = vld [vmem:[%s9261_s7 + $0x104] ss:$8 sps:$4 sm:$0xff]  }
 0x4fb   : > { %v7136_v27 = vld [vmem:[%s9261_s7 + $0x120] ss:$8 sps:$4 sm:$0xff]   ;;  %v7142_v12 = vld [vmem:[%s9261_s7 + $0x134] ss:$8 sps:$4 sm:$0xff]   ;;  %v7140_v61 = vld [vmem:[%s9261_s7 + $0x130] ss:$8 sps:$4 sm:$0xff]  }
 0x4fc   : > { %v7145_v13 = vld [vmem:[%s9261_s7 + $0x144] ss:$8 sps:$4 sm:$0xff]   ;;  %v7143_v37 = vld [vmem:[%s9261_s7 + $0x140] ss:$8 sps:$4 sm:$0xff]  }
 0x4fd   : > { %6654 = vmatpush3.bf16.msra.mxu0 %v8611_v4  ;;  %3605 = vmatpush1.bf16.msra.mxu1 %v7094_v47  ;;  %v7148_v47 = vld [vmem:[%s9261_s7 + $0x154] ss:$8 sps:$4 sm:$0xff]  }
 0x4fe   : > { %6655 = vmatprep.subr.bf16.mxu0 %v7315_v48  ;;  %3606 = vmatprep.subr.bf16.mxu1 %v7099_v57 }
 0x501   : > { %6656 = vmatpush3.bf16.msra.mxu0 %v8613_v21  ;;  %3607 = vmatpush1.bf16.msra.mxu1 %v7097_v8 }
 0x502   : > { %6657 = vmatprep.subr.bf16.mxu0 %v7315_v48  ;;  %3608 = vmatprep.subr.bf16.mxu1 %v7102_v30  ;;  %v7157_v30 = vld [vmem:[%s9261_s7 + $0x184] ss:$8 sps:$4 sm:$0xff]  }
 0x505   : > { %6658 = vmatpush3.bf16.msra.mxu0 %v8615_v17  ;;  %3609 = vmatpush1.bf16.msra.mxu1 %v7100_v31  ;;  %v7152_v31 = vld [vmem:[%s9261_s7 + $0x170] ss:$8 sps:$4 sm:$0xff]  }
 0x506   : > { %6663 = vmatprep.subr.bf16.mxu0 %v7315_v48  ;;  %3610 = vmatprep.subr.bf16.mxu1 %v7105_v62 }
 0x508   : > { %6660 = vmatmul.mubr.msk.bf16.vlgmr.msra.gmra.mrb[176].mxu0 %vm9303_vm13, %v7074_v7 }
 0x509   : > { %6664 = vmatpush3.bf16.msra.mxu0 %v8609_v3  ;;  %6671 = vmatprep.mubr.msk.bf16.mxu0 %vm7316_vm3, %v7315_v48 }
 0x50a   : > { %6665 = vmatprep.subr.bf16.mxu0 %v7315_v48  ;;  %3611 = vmatpush1.bf16.msra.mxu1 %v7103_v29  ;;  %v7155_v29 = vld [vmem:[%s9261_s7 + $0x180] ss:$8 sps:$4 sm:$0xff]  }
 0x50b   : > { %3719 = vmatprep.subr.bf16.mxu1 %v7108_v18 }
 0x50d   : > { %6666 = vmatpush3.bf16.msra.mxu0 %v8611_v4 }
 0x50e   : > { %6667 = vmatprep.subr.bf16.mxu0 %v7315_v48 }
 0x511   : > { %6668 = vmatpush3.bf16.msra.mxu0 %v8613_v21 }
 0x512   : > { %6669 = vmatprep.subr.bf16.mxu0 %v7315_v48 }
 0x515   : > { %6670 = vmatpush3.bf16.msra.mxu0 %v8615_v17 }
 0x516   : > { %6675 = vmatprep.subr.bf16.mxu0 %v7315_v48 }
 0x518   : > { %6672 = vmatmul.mubr.msk.bf16.vlgmr.msra.gmra.mrb[180].mxu0 %vm9304_vm14, %v7075_v38 }
 0x519   : > { %6676 = vmatpush3.bf16.msra.mxu0 %v8609_v3  ;;  %6683 = vmatprep.mubr.msk.bf16.mxu0 %vm7316_vm3, %v7315_v48 }
 0x51a   : > { %6677 = vmatprep.subr.bf16.mxu0 %v7315_v48 }
 0x51d   : > { %6678 = vmatpush3.bf16.msra.mxu0 %v8611_v4 }
 0x51e   : > { %6679 = vmatprep.subr.bf16.mxu0 %v7315_v48 }
 0x521   : > { %6680 = vmatpush3.bf16.msra.mxu0 %v8613_v21 }
 0x522   : > { %6681 = vmatprep.subr.bf16.mxu0 %v7315_v48 }
 0x525   : > { %6682 = vmatpush3.bf16.msra.mxu0 %v8615_v17 }
 0x526   : > { %6687 = vmatprep.subr.bf16.mxu0 %v7315_v48 }
 0x528   : > { %6684 = vmatmul.mubr.msk.bf16.vlgmr.msra.gmra.mrb[184].mxu0 %vm9305_vm15, %v7076_v14  ;;  %v7146_v14 = vld [vmem:[%s9261_s7 + $0x150] ss:$8 sps:$4 sm:$0xff]  }
 0x529   : > { %6688 = vmatpush3.bf16.msra.mxu0 %v8609_v3  ;;  %6695 = vmatprep.mubr.msk.bf16.mxu0 %vm7316_vm3, %v7315_v48 }
 0x52a   : > { %6689 = vmatprep.subr.bf16.mxu0 %v7315_v48 }
 0x52d   : > { %6690 = vmatpush3.bf16.msra.mxu0 %v8611_v4 }
 0x52e   : > { %6691 = vmatprep.subr.bf16.mxu0 %v7315_v48 }
 0x531   : > { %6692 = vmatpush3.bf16.msra.mxu0 %v8613_v21 }
 0x532   : > { %6693 = vmatprep.subr.bf16.mxu0 %v7315_v48 }
 0x535   : > { %6694 = vmatpush3.bf16.msra.mxu0 %v8615_v17 }
 0x536   : > { %6699 = vmatprep.subr.bf16.mxu0 %v7315_v48 }
 0x538   : > { %6696 = vmatmul.mubr.msk.bf16.vlgmr.msra.gmra.mrb[188].mxu0 %vm9306_vm1, %v7077_v10  ;;  %v7151_v10 = vld [vmem:[%s9261_s7 + $0x164] ss:$8 sps:$4 sm:$0xff]  }
 0x539   : > { %6700 = vmatpush3.bf16.msra.mxu0 %v8609_v3  ;;  %6707 = vmatprep.mubr.msk.bf16.mxu0 %vm7316_vm3, %v7315_v48 }
 0x53a   : > { %6701 = vmatprep.subr.bf16.mxu0 %v7315_v48 }
 0x53d   : > { %6702 = vmatpush3.bf16.msra.mxu0 %v8611_v4 }
 0x53e   : > { %6703 = vmatprep.subr.bf16.mxu0 %v7315_v48 }
 0x541   : > { %6704 = vmatpush3.bf16.msra.mxu0 %v8613_v21 }
 0x542   : > { %6705 = vmatprep.subr.bf16.mxu0 %v7315_v48 }
 0x545   : > { %6706 = vmatpush3.bf16.msra.mxu0 %v8615_v17 }
 0x546   : > { %6711 = vmatprep.subr.bf16.mxu0 %v7315_v48 }
 0x548   : > { %6708 = vmatmul.mubr.msk.bf16.vlgmr.msra.gmra.mrb[192].mxu0 %vm9307_vm2, %v7078_v46  ;;  %v7149_v46 = vld [vmem:[%s9261_s7 + $0x160] ss:$8 sps:$4 sm:$0xff]  }
 0x549   : > { %6712 = vmatpush3.bf16.msra.mxu0 %v8609_v3  ;;  %6719 = vmatprep.mubr.msk.bf16.mxu0 %vm7316_vm3, %v7315_v48 }
 0x54a   : > { %6713 = vmatprep.subr.bf16.mxu0 %v7315_v48 }
 0x54d   : > { %6714 = vmatpush3.bf16.msra.mxu0 %v8611_v4 }
 0x54e   : > { %6715 = vmatprep.subr.bf16.mxu0 %v7315_v48 }
 0x551   : > { %6716 = vmatpush3.bf16.msra.mxu0 %v8613_v21 }
 0x552   : > { %6717 = vmatprep.subr.bf16.mxu0 %v7315_v48 }
 0x555   : > { %6718 = vmatpush3.bf16.msra.mxu0 %v8615_v17 }
 0x556   : > { %6723 = vmatprep.subr.bf16.mxu0 %v7315_v48 }
 0x558   : > { %6720 = vmatmul.mubr.msk.bf16.vlgmr.msra.gmra.mrb[196].mxu0 %vm9308_vm4, %v7079_v24  ;;  %v7154_v24 = vld [vmem:[%s9261_s7 + $0x174] ss:$8 sps:$4 sm:$0xff]  }
 0x559   : > { %6724 = vmatpush3.bf16.msra.mxu0 %v8609_v3  ;;  %6731 = vmatprep.mubr.msk.bf16.mxu0 %vm7316_vm3, %v7315_v48 }
 0x55a   : > { %6725 = vmatprep.subr.bf16.mxu0 %v7315_v48 }
 0x55d   : > { %6726 = vmatpush3.bf16.msra.mxu0 %v8611_v4 }
 0x55e   : > { %6727 = vmatprep.subr.bf16.mxu0 %v7315_v48 }
 0x561   : > { %6728 = vmatpush3.bf16.msra.mxu0 %v8613_v21 }
 0x562   : > { %6729 = vmatprep.subr.bf16.mxu0 %v7315_v48 }
 0x565   : > { %6730 = vmatpush3.bf16.msra.mxu0 %v8615_v17 }
 0x566   : > { %6735 = vmatprep.subr.bf16.mxu0 %v7315_v48 }
 0x568   : > { %6732 = vmatmul.mubr.msk.bf16.vlgmr.msra.gmra.mrb[200].mxu0 %vm9272_vm0, %v7080_v54 }
 0x569   : > { %6736 = vmatpush3.bf16.msra.mxu0 %v8609_v3  ;;  %6743 = vmatprep.mubr.msk.bf16.mxu0 %vm7316_vm3, %v7315_v48 }
 0x56a   : > { %6737 = vmatprep.subr.bf16.mxu0 %v7315_v48 }
 0x56d   : > { %6738 = vmatpush3.bf16.msra.mxu0 %v8611_v4 }
 0x56e   : > { %6739 = vmatprep.subr.bf16.mxu0 %v7315_v48 }
 0x571   : > { %6740 = vmatpush3.bf16.msra.mxu0 %v8613_v21 }
 0x572   : > { %6741 = vmatprep.subr.bf16.mxu0 %v7315_v48 }
 0x575   : > { %6742 = vmatpush3.bf16.msra.mxu0 %v8615_v17 }
 0x576   : > { %6747 = vmatprep.subr.bf16.mxu0 %v7315_v48 }
 0x578   : > { %6744 = vmatmul.mubr.msk.bf16.vlgmr.msra.gmra.mrb[204].mxu0 %vm9309_vm5, %v7081_v42  ;;  %v7160_v42 = vld [vmem:[%s9261_s7 + $0x194] ss:$8 sps:$4 sm:$0xff]  }
 0x579   : > { %6748 = vmatpush3.bf16.msra.mxu0 %v8609_v3  ;;  %6755 = vmatprep.mubr.msk.bf16.mxu0 %vm7316_vm3, %v7315_v48  ;;  %v7130_v3 = vld [vmem:[%s9261_s7 + $0x100] ss:$8 sps:$4 sm:$0xff]  }
 0x57a   : > { %6749 = vmatprep.subr.bf16.mxu0 %v7315_v48 }
 0x57d   : > { %6750 = vmatpush3.bf16.msra.mxu0 %v8611_v4 }
 0x57e   : > { %6751 = vmatprep.subr.bf16.mxu0 %v7315_v48 }
 0x581   : > { %6752 = vmatpush3.bf16.msra.mxu0 %v8613_v21  ;;  %v7135_v21 = vld [vmem:[%s9261_s7 + $0x114] ss:$8 sps:$4 sm:$0xff]  }
 0x582   : > { %6753 = vmatprep.subr.bf16.mxu0 %v7315_v48  ;;  %v7106_v48 = vld [vmem:[%s9261_s7] ss:$8 sps:$4 sm:$0xff]  }
 0x585   : > { %6754 = vmatpush3.bf16.msra.mxu0 %v8615_v17 }
 0x588   : > { %6756 = vmatmul.mubr.msk.bf16.vlgmr.msra.gmra.mrb[208].mxu0 %vm9310_vm6, %v7139_v25 }
 0x5db   : > { %v3422_v60 = vpop.f32.mrb[176].mxu0 }
 0x5dc   : > { %v6661_v45 = vpop.f32.mrb[177].mxu0 }
 0x5dd   : > { %v3425_v49 = vpop.f32.mrb[178].mxu0  ;;  %v7158_v45 = vld [vmem:[%s9261_s7 + $0x190] ss:$8 sps:$4 sm:$0xff]  }
 0x5de   : > { %v3429_v0 = vpack.c.bf16 %v3425_v49, %v3422_v60  ;;  %v6662_v5 = vpop.f32.mrb[179].mxu0  ;;  %v7163_v49 = vld [vmem:[%s9261_s7 + $0x1a4] ss:$8 sps:$4 sm:$0xff]  }
 0x5df   : > { %v7166_v5 = vld [vmem:[%s9261_s7 + $0x1b4] ss:$8 sps:$4 sm:$0xff]  }
 0x5eb   : > { %v3491_v16 = vpop.f32.mrb[180].mxu0 }
 0x5ec   : > { %v6673_v20 = vpop.f32.mrb[181].mxu0 }
 0x5ed   : > { %v3494_v39 = vpop.f32.mrb[182].mxu0  ;;  %v7169_v20 = vld [vmem:[%s9261_s7 + $0x1c4] ss:$8 sps:$4 sm:$0xff]  }
 0x5ee   : > { %v3498_v59 = vpack.c.bf16 %v3494_v39, %v3491_v16  ;;  %v6674_v34 = vpop.f32.mrb[183].mxu0  ;;  %v7164_v16 = vld [vmem:[%s9261_s7 + $0x1b0] ss:$8 sps:$4 sm:$0xff]  }
 0x5ef   : > { %v7172_v34 = vld [vmem:[%s9261_s7 + $0x1d4] ss:$8 sps:$4 sm:$0xff]  }
 0x5f0   : > { %3629 = vmatmul.mubr.bf16.vlgmr.msra.gmra.mrb[40].mxu1 %v3498_v59  ;;  %v7167_v59 = vld [vmem:[%s9261_s7 + $0x1c0] ss:$8 sps:$4 sm:$0xff]  }
 0x5f1   : > { %3720 = vmatpush1.bf16.msra.mxu1 %v7106_v48  ;;  %3751 = vmatprep.mubr.bf16.mxu1 %v7317_v11 }
 0x5f2   : > { %3721 = vmatprep.subr.bf16.mxu1 %v7111_v9 }
 0x5f5   : > { %3722 = vmatpush1.bf16.msra.mxu1 %v7109_v51 }
 0x5f6   : > { %3723 = vmatprep.subr.bf16.mxu1 %v7114_v19 }
 0x5f9   : > { %3724 = vmatpush1.bf16.msra.mxu1 %v7112_v36  ;;  %v7170_v36 = vld [vmem:[%s9261_s7 + $0x1d0] ss:$8 sps:$4 sm:$0xff]  }
 0x5fa   : > { %3725 = vmatprep.subr.bf16.mxu1 %v7117_v52  ;;  %v7175_v52 = vld [vmem:[%s9261_s7 + $0x1e4] ss:$8 sps:$4 sm:$0xff]  }
 0x5fb   : > { %v8817_v56 = vpop.f32.mrb[184].mxu0 }
 0x5fc   : > { %v6685_v50 = vpop.f32.mrb[185].mxu0 }
 0x5fd   : > { %3726 = vmatpush1.bf16.msra.mxu1 %v7115_v58  ;;  %v8822_v15 = vpop.f32.mrb[186].mxu0  ;;  %v7173_v58 = vld [vmem:[%s9261_s7 + $0x1e0] ss:$8 sps:$4 sm:$0xff]   ;;  %v7181_v50 = vld [vmem:[%s9261_s7 + $0x204] ss:$8 sps:$4 sm:$0xff]  }
 0x5fe   : > { %3727 = vmatprep.subr.bf16.mxu1 %v7120_v55  ;;  %v3814_v32 = vpack.c.bf16 %v8822_v15, %v8817_v56  ;;  %v6686_v2 = vpop.f32.mrb[187].mxu0  ;;  %v7178_v55 = vld [vmem:[%s9261_s7 + $0x1f4] ss:$8 sps:$4 sm:$0xff]   ;;  %v7176_v56 = vld [vmem:[%s9261_s7 + $0x1f0] ss:$8 sps:$4 sm:$0xff]  }
 0x5ff   : > { %v7184_v2 = vld [vmem:[%s9261_s7 + $0x214] ss:$8 sps:$4 sm:$0xff]  }
 0x601   : > { %3728 = vmatpush1.bf16.msra.mxu1 %v7118_v41 }
 0x602   : > { %3729 = vmatprep.subr.bf16.mxu1 %v7123_v6  ;;  %v7179_v6 = vld [vmem:[%s9261_s7 + $0x200] ss:$8 sps:$4 sm:$0xff]  }
 0x605   : > { %3730 = vmatpush1.bf16.msra.mxu1 %v7121_v26 }
 0x606   : > { %3731 = vmatprep.subr.bf16.mxu1 %v7126_v53 }
 0x609   : > { %3732 = vmatpush1.bf16.msra.mxu1 %v7124_v63  ;;  %v7182_v63 = vld [vmem:[%s9261_s7 + $0x210] ss:$8 sps:$4 sm:$0xff]  }
 0x60a   : > { %3733 = vmatprep.subr.bf16.mxu1 %v7129_v40  ;;  %v7187_v40 = vld [vmem:[%s9261_s7 + $0x224] ss:$8 sps:$4 sm:$0xff]  }
 0x60b   : > { %v8847_v44 = vpop.f32.mrb[188].mxu0 }
 0x60c   : > { %v6697_v1 = vpop.f32.mrb[189].mxu0 }
 0x60d   : > { %3734 = vmatpush1.bf16.msra.mxu1 %v7127_v35  ;;  %v8852_v4 = vpop.f32.mrb[190].mxu0  ;;  %v7185_v35 = vld [vmem:[%s9261_s7 + $0x220] ss:$8 sps:$4 sm:$0xff]   ;;  %v7193_v1 = vld [vmem:[%s9261_s7 + $0x244] ss:$8 sps:$4 sm:$0xff]  }
 0x60e   : > { %3912 = vmatprep.subr.bf16.mxu1 %v7132_v43  ;;  %v4011_v17 = vpack.c.bf16 %v8852_v4, %v8847_v44  ;;  %v6698_v7 = vpop.f32.mrb[191].mxu0  ;;  %v7190_v43 = vld [vmem:[%s9261_s7 + $0x234] ss:$8 sps:$4 sm:$0xff]   ;;  %v7188_v44 = vld [vmem:[%s9261_s7 + $0x230] ss:$8 sps:$4 sm:$0xff]  }
 0x60f   : > { %v7196_v4 = vld [vmem:[%s9261_s7 + $0x254] ss:$8 sps:$4 sm:$0xff]   ;;  %v7197_v7 = vld [vmem:[%s9261_s7 + $0x260] ss:$8 sps:$4 sm:$0xff]  }
 0x610   : > { %3752 = vmatmul.mubr.bf16.vlgmr.msra.gmra.mrb[40].mxu1 %v3429_v0  ;;  %v7161_v0 = vld [vmem:[%s9261_s7 + $0x1a0] ss:$8 sps:$4 sm:$0xff]  }
 0x611   : > { %3913 = vmatpush1.bf16.msra.mxu1 %v7130_v3  ;;  %3944 = vmatprep.mubr.bf16.mxu1 %v7317_v11  ;;  %v7191_v3 = vld [vmem:[%s9261_s7 + $0x240] ss:$8 sps:$4 sm:$0xff]  }
 0x612   : > { %3914 = vmatprep.subr.bf16.mxu1 %v7135_v21  ;;  %v7194_v21 = vld [vmem:[%s9261_s7 + $0x250] ss:$8 sps:$4 sm:$0xff]  }
 0x615   : > { %3915 = vmatpush1.bf16.msra.mxu1 %v7133_v22  ;;  %v7202_v22 = vld [vmem:[%s9261_s7 + $0x274] ss:$8 sps:$4 sm:$0xff]  }
 0x616   : > { %3916 = vmatprep.subr.bf16.mxu1 %v7138_v23 }
 0x619   : > { %3917 = vmatpush1.bf16.msra.mxu1 %v7136_v27  ;;  %v7200_v27 = vld [vmem:[%s9261_s7 + $0x270] ss:$8 sps:$4 sm:$0xff]  }
 0x61a   : > { %3918 = vmatprep.subr.bf16.mxu1 %v7142_v12 }
 0x61b   : > { %v8878_v28 = vpop.f32.mrb[192].mxu0 }
 0x61c   : > { %v6709_v33 = vpop.f32.mrb[193].mxu0 }
 0x61d   : > { %3919 = vmatpush1.bf16.msra.mxu1 %v7140_v61  ;;  %v8883_v38 = vpop.f32.mrb[194].mxu0  ;;  %v7205_v61 = vld [vmem:[%s9261_s7 + $0x284] ss:$8 sps:$4 sm:$0xff]  }
 0x61e   : > { %3920 = vmatprep.subr.bf16.mxu1 %v7145_v13  ;;  %v4208_v57 = vpack.c.bf16 %v8883_v38, %v8878_v28  ;;  %v6710_v8 = vpop.f32.mrb[195].mxu0  ;;  %v7214_v28 = vld [vmem:[%s9261_s7 + $0x2b4] ss:$8 sps:$4 sm:$0xff]   ;;  %v7212_v38 = vld [vmem:[%s9261_s7 + $0x2b0] ss:$8 sps:$4 sm:$0xff]  }
 0x61f   : > { %v7208_v8 = vld [vmem:[%s9261_s7 + $0x294] ss:$8 sps:$4 sm:$0xff]  }
 0x621   : > { %3921 = vmatpush1.bf16.msra.mxu1 %v7143_v37 }
 0x622   : > { %3922 = vmatprep.subr.bf16.mxu1 %v7148_v47  ;;  %v7203_v47 = vld [vmem:[%s9261_s7 + $0x280] ss:$8 sps:$4 sm:$0xff]  }
 0x625   : > { %3923 = vmatpush1.bf16.msra.mxu1 %v7146_v14  ;;  %v7206_v14 = vld [vmem:[%s9261_s7 + $0x290] ss:$8 sps:$4 sm:$0xff]  }
 0x626   : > { %3924 = vmatprep.subr.bf16.mxu1 %v7151_v10  ;;  %v7211_v10 = vld [vmem:[%s9261_s7 + $0x2a4] ss:$8 sps:$4 sm:$0xff]  }
 0x629   : > { %3925 = vmatpush1.bf16.msra.mxu1 %v7149_v46  ;;  %v7209_v46 = vld [vmem:[%s9261_s7 + $0x2a0] ss:$8 sps:$4 sm:$0xff]  }
 0x62a   : > { %3926 = vmatprep.subr.bf16.mxu1 %v7154_v24  ;;  %v7215_v24 = vld [vmem:[%s9261_s7 + $0x2c0] ss:$8 sps:$4 sm:$0xff]  }
 0x62b   : > { %v8908_v54 = vpop.f32.mrb[196].mxu0 }
 0x62c   : > { %v6721_v62 = vpop.f32.mrb[197].mxu0 }
 0x62d   : > { %3927 = vmatpush1.bf16.msra.mxu1 %v7152_v31  ;;  %v8913_v18 = vpop.f32.mrb[198].mxu0  ;;  %v7220_v31 = vld [vmem:[%s9261_s7 + $0x2d4] ss:$8 sps:$4 sm:$0xff]   ;;  %v7223_v62 = vld [vmem:[%s9261_s7 + $0x2e4] ss:$8 sps:$4 sm:$0xff]  }
 0x62e   : > { %4109 = vmatprep.subr.bf16.mxu1 %v7157_v30  ;;  %v4405_v25 = vpack.c.bf16 %v8913_v18, %v8908_v54  ;;  %v6722_v60 = vpop.f32.mrb[199].mxu0  ;;  %v7218_v30 = vld [vmem:[%s9261_s7 + $0x2d0] ss:$8 sps:$4 sm:$0xff]   ;;  %v7238_v54 = vld [vmem:[%s9261_s7 + $0x334] ss:$8 sps:$4 sm:$0xff]  }
 0x62f   : > { %v7224_v60 = vld [vmem:[%s9261_s7 + $0x2f0] ss:$8 sps:$4 sm:$0xff]  }
 0x630   : > { %3945 = vmatmul.mubr.bf16.vlgmr.msra.gmra.mrb[40].mxu1 %v3814_v32  ;;  %v7236_v18 = vld [vmem:[%s9261_s7 + $0x330] ss:$8 sps:$4 sm:$0xff]  }
 0x631   : > { %4110 = vmatpush1.bf16.msra.mxu1 %v7155_v29  ;;  %4141 = vmatprep.mubr.bf16.mxu1 %v7317_v11  ;;  %v7221_v29 = vld [vmem:[%s9261_s7 + $0x2e0] ss:$8 sps:$4 sm:$0xff]  }
 0x632   : > { %4111 = vmatprep.subr.bf16.mxu1 %v7160_v42  ;;  %v7226_v42 = vld [vmem:[%s9261_s7 + $0x2f4] ss:$8 sps:$4 sm:$0xff]  }
 0x635   : > { %4112 = vmatpush1.bf16.msra.mxu1 %v7158_v45  ;;  %v7229_v45 = vld [vmem:[%s9261_s7 + $0x304] ss:$8 sps:$4 sm:$0xff]  }
 0x636   : > { %4113 = vmatprep.subr.bf16.mxu1 %v7163_v49  ;;  %v7227_v49 = vld [vmem:[%s9261_s7 + $0x300] ss:$8 sps:$4 sm:$0xff]  }
 0x639   : > { %4114 = vmatpush1.bf16.msra.mxu1 %v7161_v0  ;;  %v7232_v0 = vld [vmem:[%s9261_s7 + $0x314] ss:$8 sps:$4 sm:$0xff]  }
 0x63a   : > { %4115 = vmatprep.subr.bf16.mxu1 %v7166_v5  ;;  %v7230_v5 = vld [vmem:[%s9261_s7 + $0x310] ss:$8 sps:$4 sm:$0xff]  }
 0x63b   : > { %v8942_v39 = vpop.f32.mrb[200].mxu0 }
 0x63c   : > { %v6733_v48 = vpop.f32.mrb[201].mxu0 }
 0x63d   : > { %4116 = vmatpush1.bf16.msra.mxu1 %v7164_v16  ;;  %v8947_v9 = vpop.f32.mrb[202].mxu0  ;;  %v7235_v16 = vld [vmem:[%s9261_s7 + $0x324] ss:$8 sps:$4 sm:$0xff]   ;;  %v7239_v48 = vld [vmem:[%s9261_s7 + $0x340] ss:$8 sps:$4 sm:$0xff]  }
 0x63e   : > { %4117 = vmatprep.subr.bf16.mxu1 %v7169_v20  ;;  %v4602_v51 = vpack.c.bf16 %v8947_v9, %v8942_v39  ;;  %v6734_v19 = vpop.f32.mrb[203].mxu0  ;;  %v7233_v20 = vld [vmem:[%s9261_s7 + $0x320] ss:$8 sps:$4 sm:$0xff]   ;;  %v7262_v39 = vld [vmem:[%s9261_s7 + $0x3b4] ss:$8 sps:$4 sm:$0xff]  }
 0x63f   : > { %v7247_v19 = vld [vmem:[%s9261_s7 + $0x364] ss:$8 sps:$4 sm:$0xff]   ;;  %v7260_v9 = vld [vmem:[%s9261_s7 + $0x3b0] ss:$8 sps:$4 sm:$0xff]  }
 0x641   : > { %4118 = vmatpush1.bf16.msra.mxu1 %v7167_v59  ;;  %v7244_v59 = vld [vmem:[%s9261_s7 + $0x354] ss:$8 sps:$4 sm:$0xff]  }
 0x642   : > { %4119 = vmatprep.subr.bf16.mxu1 %v7172_v34  ;;  %v7242_v34 = vld [vmem:[%s9261_s7 + $0x350] ss:$8 sps:$4 sm:$0xff]  }
 0x645   : > { %4120 = vmatpush1.bf16.msra.mxu1 %v7170_v36  ;;  %v7245_v36 = vld [vmem:[%s9261_s7 + $0x360] ss:$8 sps:$4 sm:$0xff]  }
 0x646   : > { %4121 = vmatprep.subr.bf16.mxu1 %v7175_v52  ;;  %v7250_v52 = vld [vmem:[%s9261_s7 + $0x374] ss:$8 sps:$4 sm:$0xff]  }
 0x649   : > { %4122 = vmatpush1.bf16.msra.mxu1 %v7173_v58  ;;  %v7248_v58 = vld [vmem:[%s9261_s7 + $0x370] ss:$8 sps:$4 sm:$0xff]  }
 0x64a   : > { %4123 = vmatprep.subr.bf16.mxu1 %v7178_v55  ;;  %v7253_v55 = vld [vmem:[%s9261_s7 + $0x384] ss:$8 sps:$4 sm:$0xff]  }
 0x64b   : > { %v8972_v41 = vpop.f32.mrb[204].mxu0 }
 0x64c   : > { %v6745_v15 = vpop.f32.mrb[205].mxu0 }
 0x64d   : > { %4124 = vmatpush1.bf16.msra.mxu1 %v7176_v56  ;;  %v8977_v32 = vpop.f32.mrb[206].mxu0  ;;  %v7251_v56 = vld [vmem:[%s9261_s7 + $0x380] ss:$8 sps:$4 sm:$0xff]   ;;  %v7254_v15 = vld [vmem:[%s9261_s7 + $0x390] ss:$8 sps:$4 sm:$0xff]  }
 0x64e   : > { %4306 = vmatprep.subr.bf16.mxu1 %v7181_v50  ;;  %v4799_v26 = vpack.c.bf16 %v8977_v32, %v8972_v41  ;;  %v6746_v53 = vpop.f32.mrb[207].mxu0  ;;  %v7256_v50 = vld [vmem:[%s9261_s7 + $0x394] ss:$8 sps:$4 sm:$0xff]   ;;  %v7289_v32 = vld [vmem:[%s9261_s7 + $0x444] ss:$8 sps:$4 sm:$0xff]  }
 0x64f   : > { %v7263_v53 = vld [vmem:[%s9261_s7 + $0x3c0] ss:$8 sps:$4 sm:$0xff]   ;;  %v7286_v41 = vld [vmem:[%s9261_s7 + $0x434] ss:$8 sps:$4 sm:$0xff]  }
 0x650   : > { %4142 = vmatmul.mubr.bf16.vlgmr.msra.gmra.mrb[40].mxu1 %v4011_v17  ;;  %v7199_v17 = vld [vmem:[%s9261_s7 + $0x264] ss:$8 sps:$4 sm:$0xff]  }
 0x651   : > { %4307 = vmatpush1.bf16.msra.mxu1 %v7179_v6  ;;  %4338 = vmatprep.mubr.bf16.mxu1 %v7317_v11  ;;  %v7259_v6 = vld [vmem:[%s9261_s7 + $0x3a4] ss:$8 sps:$4 sm:$0xff]  }
 0x652   : > { %4308 = vmatprep.subr.bf16.mxu1 %v7184_v2  ;;  %v7257_v2 = vld [vmem:[%s9261_s7 + $0x3a0] ss:$8 sps:$4 sm:$0xff]  }
 0x655   : > { %4309 = vmatpush1.bf16.msra.mxu1 %v7182_v63  ;;  %v7268_v63 = vld [vmem:[%s9261_s7 + $0x3d4] ss:$8 sps:$4 sm:$0xff]  }
 0x656   : > { %4310 = vmatprep.subr.bf16.mxu1 %v7187_v40  ;;  %v7266_v40 = vld [vmem:[%s9261_s7 + $0x3d0] ss:$8 sps:$4 sm:$0xff]  }
 0x659   : > { %4311 = vmatpush1.bf16.msra.mxu1 %v7185_v35  ;;  %v7271_v35 = vld [vmem:[%s9261_s7 + $0x3e4] ss:$8 sps:$4 sm:$0xff]  }
 0x65a   : > { %4312 = vmatprep.subr.bf16.mxu1 %v7190_v43  ;;  %v7269_v43 = vld [vmem:[%s9261_s7 + $0x3e0] ss:$8 sps:$4 sm:$0xff]  }
 0x65b   : > { %v9024_v23 = vpop.f32.mrb[208].mxu0 }
 0x65c   : > { %v6757_v12 = vpop.f32.mrb[209].mxu0 }
 0x65d   : > { %4313 = vmatpush1.bf16.msra.mxu1 %v7188_v44  ;;  %v9032_v13 = vpop.f32.mrb[210].mxu0  ;;  %v7274_v44 = vld [vmem:[%s9261_s7 + $0x3f4] ss:$8 sps:$4 sm:$0xff]   ;;  %v7290_v12 = vld [vmem:[%s9261_s7 + $0x450] ss:$8 sps:$4 sm:$0xff]  }
 0x65e   : > { %4314 = vmatprep.subr.bf16.mxu1 %v7193_v1  ;;  %v4996_v33 = vpack.c.bf16 %v9032_v13, %v9024_v23  ;;  %v6758_v37 = vpop.f32.mrb[211].mxu0  ;;  %v7272_v1 = vld [vmem:[%s9261_s7 + $0x3f0] ss:$8 sps:$4 sm:$0xff]  }
 0x65f   : > { %v7293_v37 = vld [vmem:[%s9261_s7 + $0x460] ss:$8 sps:$4 sm:$0xff]  }
 0x661   : > { %4315 = vmatpush1.bf16.msra.mxu1 %v7191_v3  ;;  %v7277_v3 = vld [vmem:[%s9261_s7 + $0x404] ss:$8 sps:$4 sm:$0xff]  }
 0x662   : > { %4316 = vmatprep.subr.bf16.mxu1 %v7196_v4  ;;  %v7275_v4 = vld [vmem:[%s9261_s7 + $0x400] ss:$8 sps:$4 sm:$0xff]  }
 0x665   : > { %4317 = vmatpush1.bf16.msra.mxu1 %v7194_v21  ;;  %v7280_v21 = vld [vmem:[%s9261_s7 + $0x414] ss:$8 sps:$4 sm:$0xff]  }
 0x666   : > { %4318 = vmatprep.subr.bf16.mxu1 %v7199_v17  ;;  %v7278_v17 = vld [vmem:[%s9261_s7 + $0x410] ss:$8 sps:$4 sm:$0xff]  }
 0x669   : > { %4319 = vmatpush1.bf16.msra.mxu1 %v7197_v7  ;;  %v7283_v7 = vld [vmem:[%s9261_s7 + $0x424] ss:$8 sps:$4 sm:$0xff]  }
 0x66a   : > { %4320 = vmatprep.subr.bf16.mxu1 %v7202_v22  ;;  %v7281_v22 = vld [vmem:[%s9261_s7 + $0x420] ss:$8 sps:$4 sm:$0xff]  }
 0x66d   : > { %4321 = vmatpush1.bf16.msra.mxu1 %v7200_v27  ;;  %v7292_v27 = vld [vmem:[%s9261_s7 + $0x454] ss:$8 sps:$4 sm:$0xff]  }
 0x66e   : > { %4503 = vmatprep.subr.bf16.mxu1 %v7205_v61  ;;  %v7295_v61 = vld [vmem:[%s9261_s7 + $0x464] ss:$8 sps:$4 sm:$0xff]  }
 0x670   : > { %4339 = vmatmul.mubr.bf16.vlgmr.msra.gmra.mrb[40].mxu1 %v4208_v57  ;;  %v7217_v57 = vld [vmem:[%s9261_s7 + $0x2c4] ss:$8 sps:$4 sm:$0xff]  }
 0x671   : > { %4504 = vmatpush1.bf16.msra.mxu1 %v7203_v47  ;;  %4535 = vmatprep.mubr.bf16.mxu1 %v7317_v11  ;;  %v7298_v47 = vld [vmem:[%s9261_s7 + $0x474] ss:$8 sps:$4 sm:$0xff]  }
 0x672   : > { %4505 = vmatprep.subr.bf16.mxu1 %v7208_v8  ;;  %v7296_v8 = vld [vmem:[%s9261_s7 + $0x470] ss:$8 sps:$4 sm:$0xff]  }
 0x675   : > { %4506 = vmatpush1.bf16.msra.mxu1 %v7206_v14  ;;  %v5143_v14 = vlaneseq }
 0x676   : > { %4507 = vmatprep.subr.bf16.mxu1 %v7211_v10 }
 0x677   : > { %v5144_v10 = vshrl.u32 %v5143_v14, 7 }
 0x679   : > { %4508 = vmatpush1.bf16.msra.mxu1 %v7209_v46  ;;  %v5145_v46 = vsub.s32 0, %v5144_v10 }
 0x67a   : > { %4509 = vmatprep.subr.bf16.mxu1 %v7214_v28  ;;  %v5141_v28 = vld [vmem:[%s9262_s8] sm:$0x3] }
 0x67d   : > { %4510 = vmatpush1.bf16.msra.mxu1 %v7212_v38  ;;  %v5149_v38 = vsub.s32 1, %v5144_v10 }
 0x67e   : > { %4511 = vmatprep.subr.bf16.mxu1 %v7217_v57  ;;  %v5146_v57 = vrot.slane %v5141_v28, %v5145_v46 }
 0x681   : > { %4512 = vmatpush1.bf16.msra.mxu1 %v7215_v24 }
 0x682   : > { %4513 = vmatprep.subr.bf16.mxu1 %v7220_v31  ;;  %v5150_v31 = vrot.slane %v5141_v28, %v5149_v38 }
 0x685   : > { %4514 = vmatpush1.bf16.msra.mxu1 %v7218_v30 }
 0x686   : > { %4515 = vmatprep.subr.bf16.mxu1 %v7223_v62 }
 0x689   : > { %4516 = vmatpush1.bf16.msra.mxu1 %v7221_v29 }
 0x68a   : > { %4517 = vmatprep.subr.bf16.mxu1 %v7226_v42 }
 0x68d   : > { %4518 = vmatpush1.bf16.msra.mxu1 %v7224_v60 }
 0x68e   : > { %4700 = vmatprep.subr.bf16.mxu1 %v7229_v45 }
 0x690   : > { %4536 = vmatmul.mubr.bf16.vlgmr.msra.gmra.mrb[40].mxu1 %v4405_v25  ;;  %v7241_v25 = vld [vmem:[%s9261_s7 + $0x344] ss:$8 sps:$4 sm:$0xff]  }
 0x691   : > { %4701 = vmatpush1.bf16.msra.mxu1 %v7227_v49  ;;  %4732 = vmatprep.mubr.bf16.mxu1 %v7317_v11 }
 0x692   : > { %4702 = vmatprep.subr.bf16.mxu1 %v7232_v0 }
 0x695   : > { %4703 = vmatpush1.bf16.msra.mxu1 %v7230_v5 }
 0x696   : > { %4704 = vmatprep.subr.bf16.mxu1 %v7235_v16 }
 0x699   : > { %4705 = vmatpush1.bf16.msra.mxu1 %v7233_v20 }
 0x69a   : > { %4706 = vmatprep.subr.bf16.mxu1 %v7238_v54 }
 0x69d   : > { %4707 = vmatpush1.bf16.msra.mxu1 %v7236_v18 }
 0x69e   : > { %4708 = vmatprep.subr.bf16.mxu1 %v7241_v25 }
 0x6a1   : > { %4709 = vmatpush1.bf16.msra.mxu1 %v7239_v48 }
 0x6a2   : > { %4710 = vmatprep.subr.bf16.mxu1 %v7244_v59 }
 0x6a5   : > { %4711 = vmatpush1.bf16.msra.mxu1 %v7242_v34 }
 0x6a6   : > { %4712 = vmatprep.subr.bf16.mxu1 %v7247_v19 }
 0x6a9   : > { %4713 = vmatpush1.bf16.msra.mxu1 %v7245_v36 }
 0x6aa   : > { %4714 = vmatprep.subr.bf16.mxu1 %v7250_v52 }
 0x6ad   : > { %4715 = vmatpush1.bf16.msra.mxu1 %v7248_v58 }
 0x6ae   : > { %4897 = vmatprep.subr.bf16.mxu1 %v7253_v55 }
 0x6b0   : > { %4733 = vmatmul.mubr.bf16.vlgmr.msra.gmra.mrb[40].mxu1 %v4602_v51  ;;  %v7265_v51 = vld [vmem:[%s9261_s7 + $0x3c4] ss:$8 sps:$4 sm:$0xff]  }
 0x6b1   : > { %4898 = vmatpush1.bf16.msra.mxu1 %v7251_v56  ;;  %4929 = vmatprep.mubr.bf16.mxu1 %v7317_v11 }
 0x6b2   : > { %4899 = vmatprep.subr.bf16.mxu1 %v7256_v50 }
 0x6b5   : > { %4900 = vmatpush1.bf16.msra.mxu1 %v7254_v15 }
 0x6b6   : > { %4901 = vmatprep.subr.bf16.mxu1 %v7259_v6 }
 0x6b9   : > { %4902 = vmatpush1.bf16.msra.mxu1 %v7257_v2 }
 0x6ba   : > { %4903 = vmatprep.subr.bf16.mxu1 %v7262_v39 }
 0x6bd   : > { %4904 = vmatpush1.bf16.msra.mxu1 %v7260_v9 }
 0x6be   : > { %4905 = vmatprep.subr.bf16.mxu1 %v7265_v51 }
 0x6c1   : > { %4906 = vmatpush1.bf16.msra.mxu1 %v7263_v53 }
 0x6c2   : > { %4907 = vmatprep.subr.bf16.mxu1 %v7268_v63 }
 0x6c5   : > { %4908 = vmatpush1.bf16.msra.mxu1 %v7266_v40 }
 0x6c6   : > { %4909 = vmatprep.subr.bf16.mxu1 %v7271_v35 }
 0x6c9   : > { %4910 = vmatpush1.bf16.msra.mxu1 %v7269_v43 }
 0x6ca   : > { %4911 = vmatprep.subr.bf16.mxu1 %v7274_v44 }
 0x6cd   : > { %4912 = vmatpush1.bf16.msra.mxu1 %v7272_v1 }
 0x6ce   : > { %5094 = vmatprep.subr.bf16.mxu1 %v7277_v3 }
 0x6d0   : > { %4930 = vmatmul.mubr.bf16.vlgmr.msra.gmra.mrb[40].mxu1 %v4799_v26  ;;  %v7287_v26 = vld [vmem:[%s9261_s7 + $0x440] ss:$8 sps:$4 sm:$0xff]  }
 0x6d1   : > { %5095 = vmatpush1.bf16.msra.mxu1 %v7275_v4  ;;  %5126 = vmatprep.mubr.bf16.mxu1 %v7317_v11  ;;  %v7284_v11 = vld [vmem:[%s9261_s7 + $0x430] ss:$8 sps:$4 sm:$0xff]  }
 0x6d2   : > { %5096 = vmatprep.subr.bf16.mxu1 %v7280_v21 }
 0x6d5   : > { %5097 = vmatpush1.bf16.msra.mxu1 %v7278_v17 }
 0x6d6   : > { %5098 = vmatprep.subr.bf16.mxu1 %v7283_v7 }
 0x6d9   : > { %5099 = vmatpush1.bf16.msra.mxu1 %v7281_v22 }
 0x6da   : > { %5100 = vmatprep.subr.bf16.mxu1 %v7286_v41 }
 0x6dd   : > { %5101 = vmatpush1.bf16.msra.mxu1 %v7284_v11 }
 0x6de   : > { %5102 = vmatprep.subr.bf16.mxu1 %v7289_v32 }
 0x6e1   : > { %5103 = vmatpush1.bf16.msra.mxu1 %v7287_v26 }
 0x6e2   : > { %5104 = vmatprep.subr.bf16.mxu1 %v7292_v27 }
 0x6e5   : > { %5105 = vmatpush1.bf16.msra.mxu1 %v7290_v12 }
 0x6e6   : > { %5106 = vmatprep.subr.bf16.mxu1 %v7295_v61 }
 0x6e9   : > { %5107 = vmatpush1.bf16.msra.mxu1 %v7293_v37 }
 0x6ea   : > { %5108 = vmatprep.subr.bf16.mxu1 %v7298_v47 }
 0x6ed   : > { %5109 = vmatpush1.bf16.msra.mxu1 %v7296_v8 }
 0x6f0   : > { %5127 = vmatmul.mubr.bf16.vlgmr.msra.gmra.mrb[40].mxu1 %v4996_v33 }
 0x7c3   : > { %v5128_v24 = vpop.f32.mrb[40].mxu1 }
 0x7c4   : > { %v5130_v30 = vpop.f32.mrb[41].mxu1  ;;  %v5153_v29 = vadd.f32 %v5146_v57, %v5128_v24 }
 0x7c5   : > { %v5132_v62 = vpop.f32.mrb[42].mxu1  ;;  %v5154_v45 = vadd.f32 %v5150_v31, %v5130_v30 }
 0x7c6   : > { %v5155_v42 = vadd.f32 %v5146_v57, %v5132_v62  ;;  %v5134_v60 = vpop.f32.mrb[43].mxu1 }
 0x7c7   : > { %v5156_v49 = vadd.f32 %v5150_v31, %v5134_v60 }
 0x7c8   : > { %v5157_v23 = vadd.f32 %v5155_v42, %v5153_v29 }
 0x7c9   : > { %v5164_v13 = vadd.f32 %v5156_v49, %v5154_v45 }
 0x7ca   : > { %v5158_v33 = vrot.slane %v5157_v23, 4 }
 0x7cb   : > { %v5165_v0 = vrot.slane %v5164_v13, 4 }
 0x7cc   : > { %v5159_v5 = vadd.f32 %v5158_v33, %v5157_v23 }
 0x7cd   : > { %v5166_v16 = vadd.f32 %v5165_v0, %v5164_v13 }
 0x7ce   : > { %v5160_v20 = vrot.slane %v5159_v5, 2 }
 0x7cf   : > { %v5167_v54 = vrot.slane %v5166_v16, 2 }
 0x7d0   : > { %v5161_v18 = vadd.f32 %v5160_v20, %v5159_v5 }
 0x7d1   : > { %v5168_v25 = vadd.f32 %v5167_v54, %v5166_v16 }
 0x7d2   : > { %v5162_v48 = vrot.slane %v5161_v18, 1 }
 0x7d3   : > { %v5169_v59 = vrot.slane %v5168_v25, 1 }
 0x7d4   : > { %v5163_v34 = vadd.f32 %v5162_v48, %v5161_v18 }
 0x7d5   : > { %v5170_v19 = vadd.f32 %v5169_v59, %v5168_v25 }
 0x7d6   : > { %v5172_v36 = vmul.f32 0.0625, %v5163_v34 }
 0x7d7   : > { %v5173_v52 = vmul.f32 0.0625, %v5170_v19 }
 0x7d8   : > { %v5174_v58 = vsub.f32 %v5153_v29, %v5172_v36  ;;  %v5176_v55 = vsub.f32 %v5155_v42, %v5172_v36 }
 0x7d9   : > { %v5175_v56 = vsub.f32 %v5154_v45, %v5173_v52  ;;  %v5177_v50 = vsub.f32 %v5156_v49, %v5173_v52 }
 0x7da   : > { %v5178_v15 = vmul.f32 %v5174_v58, %v5174_v58  ;;  %v5180_v6 = vmul.f32 %v5176_v55, %v5176_v55 }
 0x7db   : > { %v5179_v2 = vmul.f32 %v5175_v56, %v5175_v56  ;;  %v5181_v39 = vmul.f32 %v5177_v50, %v5177_v50 }
 0x7dc   : > { %v5182_v9 = vadd.f32 %v5180_v6, %v5178_v15 }
 0x7dd   : > { %v5189_v51 = vadd.f32 %v5181_v39, %v5179_v2 }
 0x7de   : > { %v5183_v53 = vrot.slane %v5182_v9, 4 }
 0x7df   : > { %v5190_v63 = vrot.slane %v5189_v51, 4 }
 0x7e0   : > { %v5184_v40 = vadd.f32 %v5183_v53, %v5182_v9 }
 0x7e1   : > { %v5191_v35 = vadd.f32 %v5190_v63, %v5189_v51 }
 0x7e2   : > { %v5185_v43 = vrot.slane %v5184_v40, 2 }
 0x7e3   : > { %v5192_v44 = vrot.slane %v5191_v35, 2 }
 0x7e4   : > { %v5186_v1 = vadd.f32 %v5185_v43, %v5184_v40 }
 0x7e5   : > { %v5193_v3 = vadd.f32 %v5192_v44, %v5191_v35 }
 0x7e6   : > { %v5187_v4 = vrot.slane %v5186_v1, 1 }
 0x7e7   : > { %v5194_v21 = vrot.slane %v5193_v3, 1 }
 0x7e8   : > { %v5188_v17 = vadd.f32 %v5187_v4, %v5186_v1 }
 0x7e9   : > { %v5195_v7 = vadd.f32 %v5194_v21, %v5193_v3 }
 0x7ea   : > { %v5196_v22 = vmul.f32 0.0625, %v5188_v17 }
 0x7eb   : > { %v5197_v41 = vmul.f32 0.0625, %v5195_v7 }
 0x7ec   : > { %v5198_v11 = vadd.f32 1e-05, %v5196_v22 }
 0x7ed   : > { %v5199_v32 = vadd.f32 1e-05, %v5197_v41 }
 0x7ee   : > { %7303 = vrsqrt.f32 %v5198_v11 }
 0x7ef   : > { %7305 = vrsqrt.f32 %v5199_v32 }
 0x7f8   : > { %v7304_v26 = vpop.eup %7303 }
 0x7f9   : > { %v7306_v27 = vpop.eup %7305  ;;  %v5202_v12 = vmul.f32 %v7304_v26, %v5174_v58  ;;  %v5204_v61 = vmul.f32 %v7304_v26, %v5176_v55 }
 0x7fa   : > { %v5203_v37 = vmul.f32 %v7306_v27, %v5175_v56  ;;  %v5205_v47 = vmul.f32 %v7306_v27, %v5177_v50 }
 0x7fb   : > { %vm5206_vm3 = vcmp.ge.f32.partialorder %v5202_v12, 0.0  ;;  %vm5208_vm7 = vcmp.ge.f32.partialorder %v5204_v61, 0.0  ;;  %v5210_v8 = vmul.f32 0.2, %v5202_v12  ;;  %v5212_v14 = vmul.f32 0.2, %v5204_v61 }
 0x7fc   : > { %vm5207_vm8 = vcmp.ge.f32.partialorder %v5203_v37, 0.0  ;;  %vm5209_vm9 = vcmp.ge.f32.partialorder %v5205_v47, 0.0  ;;  %v5211_v10 = vmul.f32 0.2, %v5203_v37  ;;  %v5213_v46 = vmul.f32 0.2, %v5205_v47 }
 0x7fd   : > { %v5214_v28 = vsel %vm5206_vm3, %v5202_v12, %v5210_v8  ;;  %v5216_v38 = vsel %vm5208_vm7, %v5204_v61, %v5212_v14 }
 0x7fe   : > { %5218 = vst [vmem:[%s332_s27] sm:$0xff] %v5214_v28  ;;  %5220 = vst [vmem:[%s332_s27 + $0x10] sm:$0xff] %v5216_v38  ;;  %v5215_v57 = vsel %vm5207_vm8, %v5203_v37, %v5211_v10  ;;  %v5217_v24 = vsel %vm5209_vm9, %v5205_v47, %v5213_v46 }
 0x7ff   : > { %5219 = vst [vmem:[%s332_s27 + $0x8] sm:$0xff] %v5215_v57  ;;  %5221 = vst [vmem:[%s332_s27 + $0x18] sm:$0xff] %v5217_v24 }
 0x800 PF: > { %s19_s30 = sadd.s32 1, %s7313_s30  }
 0x801   : > { %p16_p4 = scmp.ge.s32.totalorder %s19_s30, 4  }
 0x803   :  { %18 = sbr.rel (!%p16_p4) target bundleno = 1 (0x1), region = 118 }

</bundles_post_ra>
